<compile_context>
chip_gen: v7x
topology: tpu7x:2x2x1
jax: 0.10.0
libtpu: 0.0.40
codegen_flags: <defaults>
</compile_context>

<pallas_src>
import numpy as np
import jax
import jax.numpy as jnp
from jax.experimental import pallas as pl
from jax.experimental.pallas import tpu as pltpu

# ----- model hyper-parameters (from the PyTorch script, shrunk to small sizes) -----
INPUT_SIZE = 1
HIDDEN_SIZE = 32
NUM_LAYERS = 4
NUM_CLASSES = 1
BATCH = 2
SEQ = 8


def lstm_fc_kernel(x_ref, wih0_ref, whh0_ref, wf_ref, b_ref, fcw_ref, fcb_ref, out_ref):
    """Stacked LSTM (fully unrolled time loop, state in registers) + final Linear.

    x_ref   : (S, B, 1)       time-major input (input_size == 1)
    wih0_ref: (1, 4H)         layer-0 input->gates weights (transposed)
    whh0_ref: (H, 4H)         layer-0 hidden->gates weights (transposed)
    wf_ref  : (L-1, 2H, 4H)   fused [W_ih; W_hh] (transposed) for layers 1..L-1
    b_ref   : (L, 1, 4H)      b_ih + b_hh  (gate order i, f, g, o)
    fcw_ref : (H, C)          fc weight (transposed)
    fcb_ref : (1, C)          fc bias
    out_ref : (B, C)
    """
    S, B, _ = x_ref.shape
    H = whh0_ref.shape[0]
    L = b_ref.shape[0]

    # ---- layer-0 input projection for ALL timesteps: (S,B,1) * (1,1,4H) + b0 -> (S,B,4H)
    #      (pure VPU broadcast-multiply; removes one matmul per step from the chain)
    x_proj = x_ref[...] * wih0_ref[...][None, :, :] + b_ref[0][None, :, :]

    # ---- hoist loop-invariant weights / biases above the time loop
    whh0 = whh0_ref[...]                                # (H, 4H)
    wfs = [wf_ref[l] for l in range(L - 1)]             # (2H, 4H) each, layers 1..L-1
    bs = [b_ref[l] for l in range(1, L)]                # (1, 4H)  each
    fcw = fcw_ref[...]                                  # (H, C)
    fcb = fcb_ref[...]                                  # (1, C)

    def cell(gates, c_prev):
        # Full-tile EUP: one sigmoid + one tanh over the whole (B, 4H) gates vreg,
        # then slice i/f/o and g out of the results.
        s = jax.nn.sigmoid(gates)
        t = jnp.tanh(gates)
        i = s[:, 0 * H:1 * H]
        f = s[:, 1 * H:2 * H]
        g = t[:, 2 * H:3 * H]
        o = s[:, 3 * H:4 * H]
        c_new = f * c_prev + i * g
        h_new = o * jnp.tanh(c_new)
        return h_new, c_new

    zero = jnp.zeros((B, H), jnp.float32)
    h = [zero] * L                                      # state carried in registers
    c = [zero] * L

    for t_step in range(S):                             # static, fully unrolled
        # layer 0: input path precomputed; only the recurrent matmul on the chain
        gates = x_proj[t_step] + jnp.dot(h[0], whh0, preferred_element_type=jnp.float32)
        h[0], c[0] = cell(gates, c[0])
        inp = h[0]
        # layers 1..L-1: single fused matmul per layer-step
        for l in range(1, L):
            xin = jnp.concatenate([inp, h[l]], axis=-1)               # (B, 2H)
            gates = jnp.dot(xin, wfs[l - 1],
                            preferred_element_type=jnp.float32) + bs[l - 1]
            h[l], c[l] = cell(gates, c[l])
            inp = h[l]

    # fc(out[:, -1, :]) == fc(top-layer h at the last timestep)
    out_ref[...] = jnp.dot(h[L - 1], fcw, preferred_element_type=jnp.float32) + fcb


def rnn_forward(x, params):
    """x: (batch, seq, input_size) float32 -> (batch, num_classes)."""
    wih0, whh0, wf, b, fcw, fcb = params
    B, S, I = x.shape
    C = fcw.shape[1]
    assert I == 1, "layer-0 projection is specialized for input_size == 1"

    # glue: go time-major and zero-pad batch to a multiple of 8 sublanes (f32) so
    # every matmul M-dim / VPU op uses full sublanes; padded rows are independent
    # of the real ones and are sliced off below.
    B_pad = ((B + 7) // 8) * 8
    x_tm = jnp.transpose(x, (1, 0, 2))                       # (S, B, 1)
    x_tm = jnp.pad(x_tm, ((0, 0), (0, B_pad - B), (0, 0)))   # (S, B_pad, 1)

    # Everything (x, all weights, state) fits comfortably in VMEM at these shapes,
    # so a single-program call with whole-array VMEM residency is used.
    # At realistic sizes (H=1024, long S) the weights/x would instead be streamed
    # via a grid + BlockSpec index_map (and cast to bf16 for the MXU on v6e/v7x).
    out = pl.pallas_call(
        lstm_fc_kernel,
        out_shape=jax.ShapeDtypeStruct((B_pad, C), jnp.float32),
        in_specs=[pl.BlockSpec(memory_space=pltpu.MemorySpace.VMEM)] * 7,
        out_specs=pl.BlockSpec(memory_space=pltpu.MemorySpace.VMEM),
    )(x_tm, wih0, whh0, wf, b, fcw, fcb)
    return out[:B]


def init_params(key, input_size, hidden_size, num_layers, num_classes):
    """Deterministic init mimicking PyTorch's U(-1/sqrt(H), 1/sqrt(H)), packed for the kernel."""
    H, L, C = hidden_size, num_layers, num_classes
    bound = 1.0 / np.sqrt(H)
    wf_list, b_list = [], []
    wih0 = whh0 = None
    for l in range(L):
        in_dim = input_size if l == 0 else H
        key, k1, k2, k3, k4 = jax.random.split(key, 5)
        w_ih = jax.random.uniform(k1, (4 * H, in_dim), jnp.float32, -bound, bound)
        w_hh = jax.random.uniform(k2, (4 * H, H), jnp.float32, -bound, bound)
        b_ih = jax.random.uniform(k3, (4 * H,), jnp.float32, -bound, bound)
        b_hh = jax.random.uniform(k4, (4 * H,), jnp.float32, -bound, bound)
        if l == 0:
            wih0 = w_ih.T                                            # (I, 4H)
            whh0 = w_hh.T                                            # (H, 4H)
        else:
            # fused [W_ih; W_hh] so gates = concat([x_l, h_l]) @ wf
            wf_list.append(jnp.concatenate([w_ih.T, w_hh.T], axis=0))  # (2H, 4H)
        b_list.append((b_ih + b_hh)[None, :])                        # (1, 4H)
    key, k5, k6 = jax.random.split(key, 3)
    fc_w = jax.random.uniform(k5, (C, H), jnp.float32, -bound, bound)
    fc_b = jax.random.uniform(k6, (C,), jnp.float32, -bound, bound)
    return (wih0,                     # (I, 4H)
            whh0,                     # (H, 4H)
            jnp.stack(wf_list),       # (L-1, 2H, 4H)
            jnp.stack(b_list),        # (L, 1, 4H)
            fc_w.T,                   # (H, C)
            fc_b[None, :])            # (1, C)


def reference_forward(x, params):
    """Pure-JAX reference (same math as torch.nn.LSTM + Linear) on the packed params."""
    wih0, whh0, wf, b, fcw, fcb = params
    B, S, I = x.shape
    H = whh0.shape[0]
    L = b.shape[0]

    def cell(gates, c_prev):
        i = jax.nn.sigmoid(gates[:, :H])
        f = jax.nn.sigmoid(gates[:, H:2 * H])
        g = jnp.tanh(gates[:, 2 * H:3 * H])
        o = jax.nn.sigmoid(gates[:, 3 * H:])
        c_new = f * c_prev + i * g
        return o * jnp.tanh(c_new), c_new

    h = [jnp.zeros((B, H), jnp.float32) for _ in range(L)]
    c = [jnp.zeros((B, H), jnp.float32) for _ in range(L)]
    for t in range(S):
        xt = x[:, t, :]                                              # (B, I)
        gates = xt @ wih0 + h[0] @ whh0 + b[0]
        h[0], c[0] = cell(gates, c[0])
        inp = h[0]
        for l in range(1, L):
            gates = jnp.concatenate([inp, h[l]], axis=-1) @ wf[l - 1] + b[l]
            h[l], c[l] = cell(gates, c[l])
            inp = h[l]
    return h[L - 1] @ fcw + fcb


if __name__ == "__main__":
    key = jax.random.PRNGKey(0)
    key_p, key_x = jax.random.split(key)
    params = init_params(key_p, INPUT_SIZE, HIDDEN_SIZE, NUM_LAYERS, NUM_CLASSES)
    x = jax.random.normal(key_x, (BATCH, SEQ, INPUT_SIZE), jnp.float32)

    out = rnn_forward(x, params)
    out = jax.block_until_ready(out)

    ref = reference_forward(x, params)
    np.testing.assert_allclose(np.asarray(out), np.asarray(ref), atol=1e-4, rtol=1e-4)
    assert out.shape == (BATCH, NUM_CLASSES)
    print("KERNEL_OK")
</pallas_src>

<mosaic_0001>
module attributes {stable_mosaic.version = 11 : i64} {
  func.func @lstm_fc_kernel(%arg0: memref<8x8x1xf32, #tpu.memory_space<vmem>>, %arg1: memref<1x128xf32, #tpu.memory_space<vmem>>, %arg2: memref<32x128xf32, #tpu.memory_space<vmem>>, %arg3: memref<3x64x128xf32, #tpu.memory_space<vmem>>, %arg4: memref<4x1x128xf32, #tpu.memory_space<vmem>>, %arg5: memref<32x1xf32, #tpu.memory_space<vmem>>, %arg6: memref<1x1xf32, #tpu.memory_space<vmem>>, %arg7: memref<8x1xf32, #tpu.memory_space<vmem>>) attributes {dimension_semantics = [], scalar_prefetch = 0 : i64, scratch_operands = 0 : i64, tpu.core_type = #tpu.core_type<tc>} {
    %c0 = arith.constant 0 : index
    %c0_0 = arith.constant 0 : index
    %c0_1 = arith.constant 0 : index
    %0 = vector.load %arg0[%c0, %c0_0, %c0_1] : memref<8x8x1xf32, #tpu.memory_space<vmem>>, vector<8x8x1xf32>
    %c0_2 = arith.constant 0 : index
    %c0_3 = arith.constant 0 : index
    %1 = vector.load %arg1[%c0_2, %c0_3] : memref<1x128xf32, #tpu.memory_space<vmem>>, vector<1x128xf32>
    %2 = vector.shape_cast %1 : vector<1x128xf32> to vector<1x1x128xf32>
    %3 = vector.broadcast %0 : vector<8x8x1xf32> to vector<8x8x128xf32>
    %4 = vector.broadcast %2 : vector<1x1x128xf32> to vector<8x8x128xf32>
    %5 = arith.mulf %3, %4 : vector<8x8x128xf32>
    %c0_4 = arith.constant 0 : index
    %c0_5 = arith.constant 0 : index
    %c0_6 = arith.constant 0 : index
    %6 = vector.load %arg4[%c0_4, %c0_5, %c0_6] : memref<4x1x128xf32, #tpu.memory_space<vmem>>, vector<1x1x128xf32>
    %7 = vector.shape_cast %6 : vector<1x1x128xf32> to vector<1x128xf32>
    %8 = vector.shape_cast %7 : vector<1x128xf32> to vector<1x1x128xf32>
    %9 = vector.broadcast %8 : vector<1x1x128xf32> to vector<8x8x128xf32>
    %10 = arith.addf %5, %9 : vector<8x8x128xf32>
    %c0_7 = arith.constant 0 : index
    %c0_8 = arith.constant 0 : index
    %11 = vector.load %arg2[%c0_7, %c0_8] : memref<32x128xf32, #tpu.memory_space<vmem>>, vector<32x128xf32>
    %c0_9 = arith.constant 0 : index
    %c0_10 = arith.constant 0 : index
    %c0_11 = arith.constant 0 : index
    %12 = vector.load %arg3[%c0_9, %c0_10, %c0_11] : memref<3x64x128xf32, #tpu.memory_space<vmem>>, vector<1x64x128xf32>
    %13 = vector.shape_cast %12 : vector<1x64x128xf32> to vector<64x128xf32>
    %c1 = arith.constant 1 : index
    %c0_12 = arith.constant 0 : index
    %c0_13 = arith.constant 0 : index
    %14 = vector.load %arg3[%c1, %c0_12, %c0_13] : memref<3x64x128xf32, #tpu.memory_space<vmem>>, vector<1x64x128xf32>
    %15 = vector.shape_cast %14 : vector<1x64x128xf32> to vector<64x128xf32>
    %c2 = arith.constant 2 : index
    %c0_14 = arith.constant 0 : index
    %c0_15 = arith.constant 0 : index
    %16 = vector.load %arg3[%c2, %c0_14, %c0_15] : memref<3x64x128xf32, #tpu.memory_space<vmem>>, vector<1x64x128xf32>
    %17 = vector.shape_cast %16 : vector<1x64x128xf32> to vector<64x128xf32>
    %c1_16 = arith.constant 1 : index
    %c0_17 = arith.constant 0 : index
    %c0_18 = arith.constant 0 : index
    %18 = vector.load %arg4[%c1_16, %c0_17, %c0_18] : memref<4x1x128xf32, #tpu.memory_space<vmem>>, vector<1x1x128xf32>
    %19 = vector.shape_cast %18 : vector<1x1x128xf32> to vector<1x128xf32>
    %c2_19 = arith.constant 2 : index
    %c0_20 = arith.constant 0 : index
    %c0_21 = arith.constant 0 : index
    %20 = vector.load %arg4[%c2_19, %c0_20, %c0_21] : memref<4x1x128xf32, #tpu.memory_space<vmem>>, vector<1x1x128xf32>
    %21 = vector.shape_cast %20 : vector<1x1x128xf32> to vector<1x128xf32>
    %c3 = arith.constant 3 : index
    %c0_22 = arith.constant 0 : index
    %c0_23 = arith.constant 0 : index
    %22 = vector.load %arg4[%c3, %c0_22, %c0_23] : memref<4x1x128xf32, #tpu.memory_space<vmem>>, vector<1x1x128xf32>
    %23 = vector.shape_cast %22 : vector<1x1x128xf32> to vector<1x128xf32>
    %c0_24 = arith.constant 0 : index
    %c0_25 = arith.constant 0 : index
    %24 = vector.load %arg5[%c0_24, %c0_25] : memref<32x1xf32, #tpu.memory_space<vmem>>, vector<32x1xf32>
    %c0_26 = arith.constant 0 : index
    %c0_27 = arith.constant 0 : index
    %25 = vector.load %arg6[%c0_26, %c0_27] : memref<1x1xf32, #tpu.memory_space<vmem>>, vector<1x1xf32>
    %cst = arith.constant 0.000000e+00 : f32
    %26 = vector.broadcast %cst : f32 to vector<8x32xf32>
    %27 = vector.extract_strided_slice %10 {offsets = [0, 0, 0], sizes = [1, 8, 128], strides = [1, 1, 1]} : vector<8x8x128xf32> to vector<1x8x128xf32>
    %28 = vector.shape_cast %27 : vector<1x8x128xf32> to vector<8x128xf32>
    %cst_28 = arith.constant dense<0.000000e+00> : vector<8x128xf32>
    %29 = tpu.matmul %26, %11, %cst_28 {dimension_numbers = #tpu.dot_dimension_numbers<[1], [0], [0], [1], [0, 0, 1, 1], [], []>} : vector<8x32xf32>, vector<32x128xf32>, vector<8x128xf32> -> vector<8x128xf32>
    %30 = arith.addf %28, %29 : vector<8x128xf32>
    %31 = arith.negf %30 : vector<8x128xf32>
    %32 = math.exp %31 : vector<8x128xf32>
    %cst_29 = arith.constant 1.000000e+00 : f32
    %33 = vector.broadcast %cst_29 : f32 to vector<8x128xf32>
    %34 = arith.addf %33, %32 : vector<8x128xf32>
    %35 = arith.divf %33, %34 : vector<8x128xf32>
    %36 = math.tanh %30 : vector<8x128xf32>
    %37 = vector.extract_strided_slice %35 {offsets = [0, 0], sizes = [8, 32], strides = [1, 1]} : vector<8x128xf32> to vector<8x32xf32>
    %38 = vector.extract_strided_slice %35 {offsets = [0, 32], sizes = [8, 32], strides = [1, 1]} : vector<8x128xf32> to vector<8x32xf32>
    %39 = vector.extract_strided_slice %36 {offsets = [0, 64], sizes = [8, 32], strides = [1, 1]} : vector<8x128xf32> to vector<8x32xf32>
    %40 = vector.extract_strided_slice %35 {offsets = [0, 96], sizes = [8, 32], strides = [1, 1]} : vector<8x128xf32> to vector<8x32xf32>
    %41 = arith.mulf %38, %26 : vector<8x32xf32>
    %42 = arith.mulf %37, %39 : vector<8x32xf32>
    %43 = arith.addf %41, %42 : vector<8x32xf32>
    %44 = math.tanh %43 : vector<8x32xf32>
    %45 = arith.mulf %40, %44 : vector<8x32xf32>
    %46 = tpu.concatenate %45, %26 in 1 : vector<8x32xf32>, vector<8x32xf32> -> vector<8x64xf32>
    %cst_30 = arith.constant dense<0.000000e+00> : vector<8x128xf32>
    %47 = tpu.matmul %46, %13, %cst_30 {dimension_numbers = #tpu.dot_dimension_numbers<[1], [0], [0], [1], [0, 0, 1, 1], [], []>} : vector<8x64xf32>, vector<64x128xf32>, vector<8x128xf32> -> vector<8x128xf32>
    %48 = vector.broadcast %19 : vector<1x128xf32> to vector<8x128xf32>
    %49 = arith.addf %47, %48 : vector<8x128xf32>
    %50 = arith.negf %49 : vector<8x128xf32>
    %51 = math.exp %50 : vector<8x128xf32>
    %cst_31 = arith.constant 1.000000e+00 : f32
    %52 = vector.broadcast %cst_31 : f32 to vector<8x128xf32>
    %53 = arith.addf %52, %51 : vector<8x128xf32>
    %54 = arith.divf %52, %53 : vector<8x128xf32>
    %55 = math.tanh %49 : vector<8x128xf32>
    %56 = vector.extract_strided_slice %54 {offsets = [0, 0], sizes = [8, 32], strides = [1, 1]} : vector<8x128xf32> to vector<8x32xf32>
    %57 = vector.extract_strided_slice %54 {offsets = [0, 32], sizes = [8, 32], strides = [1, 1]} : vector<8x128xf32> to vector<8x32xf32>
    %58 = vector.extract_strided_slice %55 {offsets = [0, 64], sizes = [8, 32], strides = [1, 1]} : vector<8x128xf32> to vector<8x32xf32>
    %59 = vector.extract_strided_slice %54 {offsets = [0, 96], sizes = [8, 32], strides = [1, 1]} : vector<8x128xf32> to vector<8x32xf32>
    %60 = arith.mulf %57, %26 : vector<8x32xf32>
    %61 = arith.mulf %56, %58 : vector<8x32xf32>
    %62 = arith.addf %60, %61 : vector<8x32xf32>
    %63 = math.tanh %62 : vector<8x32xf32>
    %64 = arith.mulf %59, %63 : vector<8x32xf32>
    %65 = tpu.concatenate %64, %26 in 1 : vector<8x32xf32>, vector<8x32xf32> -> vector<8x64xf32>
    %cst_32 = arith.constant dense<0.000000e+00> : vector<8x128xf32>
    %66 = tpu.matmul %65, %15, %cst_32 {dimension_numbers = #tpu.dot_dimension_numbers<[1], [0], [0], [1], [0, 0, 1, 1], [], []>} : vector<8x64xf32>, vector<64x128xf32>, vector<8x128xf32> -> vector<8x128xf32>
    %67 = vector.broadcast %21 : vector<1x128xf32> to vector<8x128xf32>
    %68 = arith.addf %66, %67 : vector<8x128xf32>
    %69 = arith.negf %68 : vector<8x128xf32>
    %70 = math.exp %69 : vector<8x128xf32>
    %cst_33 = arith.constant 1.000000e+00 : f32
    %71 = vector.broadcast %cst_33 : f32 to vector<8x128xf32>
    %72 = arith.addf %71, %70 : vector<8x128xf32>
    %73 = arith.divf %71, %72 : vector<8x128xf32>
    %74 = math.tanh %68 : vector<8x128xf32>
    %75 = vector.extract_strided_slice %73 {offsets = [0, 0], sizes = [8, 32], strides = [1, 1]} : vector<8x128xf32> to vector<8x32xf32>
    %76 = vector.extract_strided_slice %73 {offsets = [0, 32], sizes = [8, 32], strides = [1, 1]} : vector<8x128xf32> to vector<8x32xf32>
    %77 = vector.extract_strided_slice %74 {offsets = [0, 64], sizes = [8, 32], strides = [1, 1]} : vector<8x128xf32> to vector<8x32xf32>
    %78 = vector.extract_strided_slice %73 {offsets = [0, 96], sizes = [8, 32], strides = [1, 1]} : vector<8x128xf32> to vector<8x32xf32>
    %79 = arith.mulf %76, %26 : vector<8x32xf32>
    %80 = arith.mulf %75, %77 : vector<8x32xf32>
    %81 = arith.addf %79, %80 : vector<8x32xf32>
    %82 = math.tanh %81 : vector<8x32xf32>
    %83 = arith.mulf %78, %82 : vector<8x32xf32>
    %84 = tpu.concatenate %83, %26 in 1 : vector<8x32xf32>, vector<8x32xf32> -> vector<8x64xf32>
    %cst_34 = arith.constant dense<0.000000e+00> : vector<8x128xf32>
    %85 = tpu.matmul %84, %17, %cst_34 {dimension_numbers = #tpu.dot_dimension_numbers<[1], [0], [0], [1], [0, 0, 1, 1], [], []>} : vector<8x64xf32>, vector<64x128xf32>, vector<8x128xf32> -> vector<8x128xf32>
    %86 = vector.broadcast %23 : vector<1x128xf32> to vector<8x128xf32>
    %87 = arith.addf %85, %86 : vector<8x128xf32>
    %88 = arith.negf %87 : vector<8x128xf32>
    %89 = math.exp %88 : vector<8x128xf32>
    %cst_35 = arith.constant 1.000000e+00 : f32
    %90 = vector.broadcast %cst_35 : f32 to vector<8x128xf32>
    %91 = arith.addf %90, %89 : vector<8x128xf32>
    %92 = arith.divf %90, %91 : vector<8x128xf32>
    %93 = math.tanh %87 : vector<8x128xf32>
    %94 = vector.extract_strided_slice %92 {offsets = [0, 0], sizes = [8, 32], strides = [1, 1]} : vector<8x128xf32> to vector<8x32xf32>
    %95 = vector.extract_strided_slice %92 {offsets = [0, 32], sizes = [8, 32], strides = [1, 1]} : vector<8x128xf32> to vector<8x32xf32>
    %96 = vector.extract_strided_slice %93 {offsets = [0, 64], sizes = [8, 32], strides = [1, 1]} : vector<8x128xf32> to vector<8x32xf32>
    %97 = vector.extract_strided_slice %92 {offsets = [0, 96], sizes = [8, 32], strides = [1, 1]} : vector<8x128xf32> to vector<8x32xf32>
    %98 = arith.mulf %95, %26 : vector<8x32xf32>
    %99 = arith.mulf %94, %96 : vector<8x32xf32>
    %100 = arith.addf %98, %99 : vector<8x32xf32>
    %101 = math.tanh %100 : vector<8x32xf32>
    %102 = arith.mulf %97, %101 : vector<8x32xf32>
    %103 = vector.extract_strided_slice %10 {offsets = [1, 0, 0], sizes = [1, 8, 128], strides = [1, 1, 1]} : vector<8x8x128xf32> to vector<1x8x128xf32>
    %104 = vector.shape_cast %103 : vector<1x8x128xf32> to vector<8x128xf32>
    %cst_36 = arith.constant dense<0.000000e+00> : vector<8x128xf32>
    %105 = tpu.matmul %45, %11, %cst_36 {dimension_numbers = #tpu.dot_dimension_numbers<[1], [0], [0], [1], [0, 0, 1, 1], [], []>} : vector<8x32xf32>, vector<32x128xf32>, vector<8x128xf32> -> vector<8x128xf32>
    %106 = arith.addf %104, %105 : vector<8x128xf32>
    %107 = arith.negf %106 : vector<8x128xf32>
    %108 = math.exp %107 : vector<8x128xf32>
    %cst_37 = arith.constant 1.000000e+00 : f32
    %109 = vector.broadcast %cst_37 : f32 to vector<8x128xf32>
    %110 = arith.addf %109, %108 : vector<8x128xf32>
    %111 = arith.divf %109, %110 : vector<8x128xf32>
    %112 = math.tanh %106 : vector<8x128xf32>
    %113 = vector.extract_strided_slice %111 {offsets = [0, 0], sizes = [8, 32], strides = [1, 1]} : vector<8x128xf32> to vector<8x32xf32>
    %114 = vector.extract_strided_slice %111 {offsets = [0, 32], sizes = [8, 32], strides = [1, 1]} : vector<8x128xf32> to vector<8x32xf32>
    %115 = vector.extract_strided_slice %112 {offsets = [0, 64], sizes = [8, 32], strides = [1, 1]} : vector<8x128xf32> to vector<8x32xf32>
    %116 = vector.extract_strided_slice %111 {offsets = [0, 96], sizes = [8, 32], strides = [1, 1]} : vector<8x128xf32> to vector<8x32xf32>
    %117 = arith.mulf %114, %43 : vector<8x32xf32>
    %118 = arith.mulf %113, %115 : vector<8x32xf32>
    %119 = arith.addf %117, %118 : vector<8x32xf32>
    %120 = math.tanh %119 : vector<8x32xf32>
    %121 = arith.mulf %116, %120 : vector<8x32xf32>
    %122 = tpu.concatenate %121, %64 in 1 : vector<8x32xf32>, vector<8x32xf32> -> vector<8x64xf32>
    %cst_38 = arith.constant dense<0.000000e+00> : vector<8x128xf32>
    %123 = tpu.matmul %122, %13, %cst_38 {dimension_numbers = #tpu.dot_dimension_numbers<[1], [0], [0], [1], [0, 0, 1, 1], [], []>} : vector<8x64xf32>, vector<64x128xf32>, vector<8x128xf32> -> vector<8x128xf32>
    %124 = vector.broadcast %19 : vector<1x128xf32> to vector<8x128xf32>
    %125 = arith.addf %123, %124 : vector<8x128xf32>
    %126 = arith.negf %125 : vector<8x128xf32>
    %127 = math.exp %126 : vector<8x128xf32>
    %cst_39 = arith.constant 1.000000e+00 : f32
    %128 = vector.broadcast %cst_39 : f32 to vector<8x128xf32>
    %129 = arith.addf %128, %127 : vector<8x128xf32>
    %130 = arith.divf %128, %129 : vector<8x128xf32>
    %131 = math.tanh %125 : vector<8x128xf32>
    %132 = vector.extract_strided_slice %130 {offsets = [0, 0], sizes = [8, 32], strides = [1, 1]} : vector<8x128xf32> to vector<8x32xf32>
    %133 = vector.extract_strided_slice %130 {offsets = [0, 32], sizes = [8, 32], strides = [1, 1]} : vector<8x128xf32> to vector<8x32xf32>
    %134 = vector.extract_strided_slice %131 {offsets = [0, 64], sizes = [8, 32], strides = [1, 1]} : vector<8x128xf32> to vector<8x32xf32>
    %135 = vector.extract_strided_slice %130 {offsets = [0, 96], sizes = [8, 32], strides = [1, 1]} : vector<8x128xf32> to vector<8x32xf32>
    %136 = arith.mulf %133, %62 : vector<8x32xf32>
    %137 = arith.mulf %132, %134 : vector<8x32xf32>
    %138 = arith.addf %136, %137 : vector<8x32xf32>
    %139 = math.tanh %138 : vector<8x32xf32>
    %140 = arith.mulf %135, %139 : vector<8x32xf32>
    %141 = tpu.concatenate %140, %83 in 1 : vector<8x32xf32>, vector<8x32xf32> -> vector<8x64xf32>
    %cst_40 = arith.constant dense<0.000000e+00> : vector<8x128xf32>
    %142 = tpu.matmul %141, %15, %cst_40 {dimension_numbers = #tpu.dot_dimension_numbers<[1], [0], [0], [1], [0, 0, 1, 1], [], []>} : vector<8x64xf32>, vector<64x128xf32>, vector<8x128xf32> -> vector<8x128xf32>
    %143 = vector.broadcast %21 : vector<1x128xf32> to vector<8x128xf32>
    %144 = arith.addf %142, %143 : vector<8x128xf32>
    %145 = arith.negf %144 : vector<8x128xf32>
    %146 = math.exp %145 : vector<8x128xf32>
    %cst_41 = arith.constant 1.000000e+00 : f32
    %147 = vector.broadcast %cst_41 : f32 to vector<8x128xf32>
    %148 = arith.addf %147, %146 : vector<8x128xf32>
    %149 = arith.divf %147, %148 : vector<8x128xf32>
    %150 = math.tanh %144 : vector<8x128xf32>
    %151 = vector.extract_strided_slice %149 {offsets = [0, 0], sizes = [8, 32], strides = [1, 1]} : vector<8x128xf32> to vector<8x32xf32>
    %152 = vector.extract_strided_slice %149 {offsets = [0, 32], sizes = [8, 32], strides = [1, 1]} : vector<8x128xf32> to vector<8x32xf32>
    %153 = vector.extract_strided_slice %150 {offsets = [0, 64], sizes = [8, 32], strides = [1, 1]} : vector<8x128xf32> to vector<8x32xf32>
    %154 = vector.extract_strided_slice %149 {offsets = [0, 96], sizes = [8, 32], strides = [1, 1]} : vector<8x128xf32> to vector<8x32xf32>
    %155 = arith.mulf %152, %81 : vector<8x32xf32>
    %156 = arith.mulf %151, %153 : vector<8x32xf32>
    %157 = arith.addf %155, %156 : vector<8x32xf32>
    %158 = math.tanh %157 : vector<8x32xf32>
    %159 = arith.mulf %154, %158 : vector<8x32xf32>
    %160 = tpu.concatenate %159, %102 in 1 : vector<8x32xf32>, vector<8x32xf32> -> vector<8x64xf32>
    %cst_42 = arith.constant dense<0.000000e+00> : vector<8x128xf32>
    %161 = tpu.matmul %160, %17, %cst_42 {dimension_numbers = #tpu.dot_dimension_numbers<[1], [0], [0], [1], [0, 0, 1, 1], [], []>} : vector<8x64xf32>, vector<64x128xf32>, vector<8x128xf32> -> vector<8x128xf32>
    %162 = vector.broadcast %23 : vector<1x128xf32> to vector<8x128xf32>
    %163 = arith.addf %161, %162 : vector<8x128xf32>
    %164 = arith.negf %163 : vector<8x128xf32>
    %165 = math.exp %164 : vector<8x128xf32>
    %cst_43 = arith.constant 1.000000e+00 : f32
    %166 = vector.broadcast %cst_43 : f32 to vector<8x128xf32>
    %167 = arith.addf %166, %165 : vector<8x128xf32>
    %168 = arith.divf %166, %167 : vector<8x128xf32>
    %169 = math.tanh %163 : vector<8x128xf32>
    %170 = vector.extract_strided_slice %168 {offsets = [0, 0], sizes = [8, 32], strides = [1, 1]} : vector<8x128xf32> to vector<8x32xf32>
    %171 = vector.extract_strided_slice %168 {offsets = [0, 32], sizes = [8, 32], strides = [1, 1]} : vector<8x128xf32> to vector<8x32xf32>
    %172 = vector.extract_strided_slice %169 {offsets = [0, 64], sizes = [8, 32], strides = [1, 1]} : vector<8x128xf32> to vector<8x32xf32>
    %173 = vector.extract_strided_slice %168 {offsets = [0, 96], sizes = [8, 32], strides = [1, 1]} : vector<8x128xf32> to vector<8x32xf32>
    %174 = arith.mulf %171, %100 : vector<8x32xf32>
    %175 = arith.mulf %170, %172 : vector<8x32xf32>
    %176 = arith.addf %174, %175 : vector<8x32xf32>
    %177 = math.tanh %176 : vector<8x32xf32>
    %178 = arith.mulf %173, %177 : vector<8x32xf32>
    %179 = vector.extract_strided_slice %10 {offsets = [2, 0, 0], sizes = [1, 8, 128], strides = [1, 1, 1]} : vector<8x8x128xf32> to vector<1x8x128xf32>
    %180 = vector.shape_cast %179 : vector<1x8x128xf32> to vector<8x128xf32>
    %cst_44 = arith.constant dense<0.000000e+00> : vector<8x128xf32>
    %181 = tpu.matmul %121, %11, %cst_44 {dimension_numbers = #tpu.dot_dimension_numbers<[1], [0], [0], [1], [0, 0, 1, 1], [], []>} : vector<8x32xf32>, vector<32x128xf32>, vector<8x128xf32> -> vector<8x128xf32>
    %182 = arith.addf %180, %181 : vector<8x128xf32>
    %183 = arith.negf %182 : vector<8x128xf32>
    %184 = math.exp %183 : vector<8x128xf32>
    %cst_45 = arith.constant 1.000000e+00 : f32
    %185 = vector.broadcast %cst_45 : f32 to vector<8x128xf32>
    %186 = arith.addf %185, %184 : vector<8x128xf32>
    %187 = arith.divf %185, %186 : vector<8x128xf32>
    %188 = math.tanh %182 : vector<8x128xf32>
    %189 = vector.extract_strided_slice %187 {offsets = [0, 0], sizes = [8, 32], strides = [1, 1]} : vector<8x128xf32> to vector<8x32xf32>
    %190 = vector.extract_strided_slice %187 {offsets = [0, 32], sizes = [8, 32], strides = [1, 1]} : vector<8x128xf32> to vector<8x32xf32>
    %191 = vector.extract_strided_slice %188 {offsets = [0, 64], sizes = [8, 32], strides = [1, 1]} : vector<8x128xf32> to vector<8x32xf32>
    %192 = vector.extract_strided_slice %187 {offsets = [0, 96], sizes = [8, 32], strides = [1, 1]} : vector<8x128xf32> to vector<8x32xf32>
    %193 = arith.mulf %190, %119 : vector<8x32xf32>
    %194 = arith.mulf %189, %191 : vector<8x32xf32>
    %195 = arith.addf %193, %194 : vector<8x32xf32>
    %196 = math.tanh %195 : vector<8x32xf32>
    %197 = arith.mulf %192, %196 : vector<8x32xf32>
    %198 = tpu.concatenate %197, %140 in 1 : vector<8x32xf32>, vector<8x32xf32> -> vector<8x64xf32>
    %cst_46 = arith.constant dense<0.000000e+00> : vector<8x128xf32>
    %199 = tpu.matmul %198, %13, %cst_46 {dimension_numbers = #tpu.dot_dimension_numbers<[1], [0], [0], [1], [0, 0, 1, 1], [], []>} : vector<8x64xf32>, vector<64x128xf32>, vector<8x128xf32> -> vector<8x128xf32>
    %200 = vector.broadcast %19 : vector<1x128xf32> to vector<8x128xf32>
    %201 = arith.addf %199, %200 : vector<8x128xf32>
    %202 = arith.negf %201 : vector<8x128xf32>
    %203 = math.exp %202 : vector<8x128xf32>
    %cst_47 = arith.constant 1.000000e+00 : f32
    %204 = vector.broadcast %cst_47 : f32 to vector<8x128xf32>
    %205 = arith.addf %204, %203 : vector<8x128xf32>
    %206 = arith.divf %204, %205 : vector<8x128xf32>
    %207 = math.tanh %201 : vector<8x128xf32>
    %208 = vector.extract_strided_slice %206 {offsets = [0, 0], sizes = [8, 32], strides = [1, 1]} : vector<8x128xf32> to vector<8x32xf32>
    %209 = vector.extract_strided_slice %206 {offsets = [0, 32], sizes = [8, 32], strides = [1, 1]} : vector<8x128xf32> to vector<8x32xf32>
    %210 = vector.extract_strided_slice %207 {offsets = [0, 64], sizes = [8, 32], strides = [1, 1]} : vector<8x128xf32> to vector<8x32xf32>
    %211 = vector.extract_strided_slice %206 {offsets = [0, 96], sizes = [8, 32], strides = [1, 1]} : vector<8x128xf32> to vector<8x32xf32>
    %212 = arith.mulf %209, %138 : vector<8x32xf32>
    %213 = arith.mulf %208, %210 : vector<8x32xf32>
    %214 = arith.addf %212, %213 : vector<8x32xf32>
    %215 = math.tanh %214 : vector<8x32xf32>
    %216 = arith.mulf %211, %215 : vector<8x32xf32>
    %217 = tpu.concatenate %216, %159 in 1 : vector<8x32xf32>, vector<8x32xf32> -> vector<8x64xf32>
    %cst_48 = arith.constant dense<0.000000e+00> : vector<8x128xf32>
    %218 = tpu.matmul %217, %15, %cst_48 {dimension_numbers = #tpu.dot_dimension_numbers<[1], [0], [0], [1], [0, 0, 1, 1], [], []>} : vector<8x64xf32>, vector<64x128xf32>, vector<8x128xf32> -> vector<8x128xf32>
    %219 = vector.broadcast %21 : vector<1x128xf32> to vector<8x128xf32>
    %220 = arith.addf %218, %219 : vector<8x128xf32>
    %221 = arith.negf %220 : vector<8x128xf32>
    %222 = math.exp %221 : vector<8x128xf32>
    %cst_49 = arith.constant 1.000000e+00 : f32
    %223 = vector.broadcast %cst_49 : f32 to vector<8x128xf32>
    %224 = arith.addf %223, %222 : vector<8x128xf32>
    %225 = arith.divf %223, %224 : vector<8x128xf32>
    %226 = math.tanh %220 : vector<8x128xf32>
    %227 = vector.extract_strided_slice %225 {offsets = [0, 0], sizes = [8, 32], strides = [1, 1]} : vector<8x128xf32> to vector<8x32xf32>
    %228 = vector.extract_strided_slice %225 {offsets = [0, 32], sizes = [8, 32], strides = [1, 1]} : vector<8x128xf32> to vector<8x32xf32>
    %229 = vector.extract_strided_slice %226 {offsets = [0, 64], sizes = [8, 32], strides = [1, 1]} : vector<8x128xf32> to vector<8x32xf32>
    %230 = vector.extract_strided_slice %225 {offsets = [0, 96], sizes = [8, 32], strides = [1, 1]} : vector<8x128xf32> to vector<8x32xf32>
    %231 = arith.mulf %228, %157 : vector<8x32xf32>
    %232 = arith.mulf %227, %229 : vector<8x32xf32>
    %233 = arith.addf %231, %232 : vector<8x32xf32>
    %234 = math.tanh %233 : vector<8x32xf32>
    %235 = arith.mulf %230, %234 : vector<8x32xf32>
    %236 = tpu.concatenate %235, %178 in 1 : vector<8x32xf32>, vector<8x32xf32> -> vector<8x64xf32>
    %cst_50 = arith.constant dense<0.000000e+00> : vector<8x128xf32>
    %237 = tpu.matmul %236, %17, %cst_50 {dimension_numbers = #tpu.dot_dimension_numbers<[1], [0], [0], [1], [0, 0, 1, 1], [], []>} : vector<8x64xf32>, vector<64x128xf32>, vector<8x128xf32> -> vector<8x128xf32>
    %238 = vector.broadcast %23 : vector<1x128xf32> to vector<8x128xf32>
    %239 = arith.addf %237, %238 : vector<8x128xf32>
    %240 = arith.negf %239 : vector<8x128xf32>
    %241 = math.exp %240 : vector<8x128xf32>
    %cst_51 = arith.constant 1.000000e+00 : f32
    %242 = vector.broadcast %cst_51 : f32 to vector<8x128xf32>
    %243 = arith.addf %242, %241 : vector<8x128xf32>
    %244 = arith.divf %242, %243 : vector<8x128xf32>
    %245 = math.tanh %239 : vector<8x128xf32>
    %246 = vector.extract_strided_slice %244 {offsets = [0, 0], sizes = [8, 32], strides = [1, 1]} : vector<8x128xf32> to vector<8x32xf32>
    %247 = vector.extract_strided_slice %244 {offsets = [0, 32], sizes = [8, 32], strides = [1, 1]} : vector<8x128xf32> to vector<8x32xf32>
    %248 = vector.extract_strided_slice %245 {offsets = [0, 64], sizes = [8, 32], strides = [1, 1]} : vector<8x128xf32> to vector<8x32xf32>
    %249 = vector.extract_strided_slice %244 {offsets = [0, 96], sizes = [8, 32], strides = [1, 1]} : vector<8x128xf32> to vector<8x32xf32>
    %250 = arith.mulf %247, %176 : vector<8x32xf32>
    %251 = arith.mulf %246, %248 : vector<8x32xf32>
    %252 = arith.addf %250, %251 : vector<8x32xf32>
    %253 = math.tanh %252 : vector<8x32xf32>
    %254 = arith.mulf %249, %253 : vector<8x32xf32>
    %255 = vector.extract_strided_slice %10 {offsets = [3, 0, 0], sizes = [1, 8, 128], strides = [1, 1, 1]} : vector<8x8x128xf32> to vector<1x8x128xf32>
    %256 = vector.shape_cast %255 : vector<1x8x128xf32> to vector<8x128xf32>
    %cst_52 = arith.constant dense<0.000000e+00> : vector<8x128xf32>
    %257 = tpu.matmul %197, %11, %cst_52 {dimension_numbers = #tpu.dot_dimension_numbers<[1], [0], [0], [1], [0, 0, 1, 1], [], []>} : vector<8x32xf32>, vector<32x128xf32>, vector<8x128xf32> -> vector<8x128xf32>
    %258 = arith.addf %256, %257 : vector<8x128xf32>
    %259 = arith.negf %258 : vector<8x128xf32>
    %260 = math.exp %259 : vector<8x128xf32>
    %cst_53 = arith.constant 1.000000e+00 : f32
    %261 = vector.broadcast %cst_53 : f32 to vector<8x128xf32>
    %262 = arith.addf %261, %260 : vector<8x128xf32>
    %263 = arith.divf %261, %262 : vector<8x128xf32>
    %264 = math.tanh %258 : vector<8x128xf32>
    %265 = vector.extract_strided_slice %263 {offsets = [0, 0], sizes = [8, 32], strides = [1, 1]} : vector<8x128xf32> to vector<8x32xf32>
    %266 = vector.extract_strided_slice %263 {offsets = [0, 32], sizes = [8, 32], strides = [1, 1]} : vector<8x128xf32> to vector<8x32xf32>
    %267 = vector.extract_strided_slice %264 {offsets = [0, 64], sizes = [8, 32], strides = [1, 1]} : vector<8x128xf32> to vector<8x32xf32>
    %268 = vector.extract_strided_slice %263 {offsets = [0, 96], sizes = [8, 32], strides = [1, 1]} : vector<8x128xf32> to vector<8x32xf32>
    %269 = arith.mulf %266, %195 : vector<8x32xf32>
    %270 = arith.mulf %265, %267 : vector<8x32xf32>
    %271 = arith.addf %269, %270 : vector<8x32xf32>
    %272 = math.tanh %271 : vector<8x32xf32>
    %273 = arith.mulf %268, %272 : vector<8x32xf32>
    %274 = tpu.concatenate %273, %216 in 1 : vector<8x32xf32>, vector<8x32xf32> -> vector<8x64xf32>
    %cst_54 = arith.constant dense<0.000000e+00> : vector<8x128xf32>
    %275 = tpu.matmul %274, %13, %cst_54 {dimension_numbers = #tpu.dot_dimension_numbers<[1], [0], [0], [1], [0, 0, 1, 1], [], []>} : vector<8x64xf32>, vector<64x128xf32>, vector<8x128xf32> -> vector<8x128xf32>
    %276 = vector.broadcast %19 : vector<1x128xf32> to vector<8x128xf32>
    %277 = arith.addf %275, %276 : vector<8x128xf32>
    %278 = arith.negf %277 : vector<8x128xf32>
    %279 = math.exp %278 : vector<8x128xf32>
    %cst_55 = arith.constant 1.000000e+00 : f32
    %280 = vector.broadcast %cst_55 : f32 to vector<8x128xf32>
    %281 = arith.addf %280, %279 : vector<8x128xf32>
    %282 = arith.divf %280, %281 : vector<8x128xf32>
    %283 = math.tanh %277 : vector<8x128xf32>
    %284 = vector.extract_strided_slice %282 {offsets = [0, 0], sizes = [8, 32], strides = [1, 1]} : vector<8x128xf32> to vector<8x32xf32>
    %285 = vector.extract_strided_slice %282 {offsets = [0, 32], sizes = [8, 32], strides = [1, 1]} : vector<8x128xf32> to vector<8x32xf32>
    %286 = vector.extract_strided_slice %283 {offsets = [0, 64], sizes = [8, 32], strides = [1, 1]} : vector<8x128xf32> to vector<8x32xf32>
    %287 = vector.extract_strided_slice %282 {offsets = [0, 96], sizes = [8, 32], strides = [1, 1]} : vector<8x128xf32> to vector<8x32xf32>
    %288 = arith.mulf %285, %214 : vector<8x32xf32>
    %289 = arith.mulf %284, %286 : vector<8x32xf32>
    %290 = arith.addf %288, %289 : vector<8x32xf32>
    %291 = math.tanh %290 : vector<8x32xf32>
    %292 = arith.mulf %287, %291 : vector<8x32xf32>
    %293 = tpu.concatenate %292, %235 in 1 : vector<8x32xf32>, vector<8x32xf32> -> vector<8x64xf32>
    %cst_56 = arith.constant dense<0.000000e+00> : vector<8x128xf32>
    %294 = tpu.matmul %293, %15, %cst_56 {dimension_numbers = #tpu.dot_dimension_numbers<[1], [0], [0], [1], [0, 0, 1, 1], [], []>} : vector<8x64xf32>, vector<64x128xf32>, vector<8x128xf32> -> vector<8x128xf32>
    %295 = vector.broadcast %21 : vector<1x128xf32> to vector<8x128xf32>
    %296 = arith.addf %294, %295 : vector<8x128xf32>
    %297 = arith.negf %296 : vector<8x128xf32>
    %298 = math.exp %297 : vector<8x128xf32>
    %cst_57 = arith.constant 1.000000e+00 : f32
    %299 = vector.broadcast %cst_57 : f32 to vector<8x128xf32>
    %300 = arith.addf %299, %298 : vector<8x128xf32>
    %301 = arith.divf %299, %300 : vector<8x128xf32>
    %302 = math.tanh %296 : vector<8x128xf32>
    %303 = vector.extract_strided_slice %301 {offsets = [0, 0], sizes = [8, 32], strides = [1, 1]} : vector<8x128xf32> to vector<8x32xf32>
    %304 = vector.extract_strided_slice %301 {offsets = [0, 32], sizes = [8, 32], strides = [1, 1]} : vector<8x128xf32> to vector<8x32xf32>
    %305 = vector.extract_strided_slice %302 {offsets = [0, 64], sizes = [8, 32], strides = [1, 1]} : vector<8x128xf32> to vector<8x32xf32>
    %306 = vector.extract_strided_slice %301 {offsets = [0, 96], sizes = [8, 32], strides = [1, 1]} : vector<8x128xf32> to vector<8x32xf32>
    %307 = arith.mulf %304, %233 : vector<8x32xf32>
    %308 = arith.mulf %303, %305 : vector<8x32xf32>
    %309 = arith.addf %307, %308 : vector<8x32xf32>
    %310 = math.tanh %309 : vector<8x32xf32>
    %311 = arith.mulf %306, %310 : vector<8x32xf32>
    %312 = tpu.concatenate %311, %254 in 1 : vector<8x32xf32>, vector<8x32xf32> -> vector<8x64xf32>
    %cst_58 = arith.constant dense<0.000000e+00> : vector<8x128xf32>
    %313 = tpu.matmul %312, %17, %cst_58 {dimension_numbers = #tpu.dot_dimension_numbers<[1], [0], [0], [1], [0, 0, 1, 1], [], []>} : vector<8x64xf32>, vector<64x128xf32>, vector<8x128xf32> -> vector<8x128xf32>
    %314 = vector.broadcast %23 : vector<1x128xf32> to vector<8x128xf32>
    %315 = arith.addf %313, %314 : vector<8x128xf32>
    %316 = arith.negf %315 : vector<8x128xf32>
    %317 = math.exp %316 : vector<8x128xf32>
    %cst_59 = arith.constant 1.000000e+00 : f32
    %318 = vector.broadcast %cst_59 : f32 to vector<8x128xf32>
    %319 = arith.addf %318, %317 : vector<8x128xf32>
    %320 = arith.divf %318, %319 : vector<8x128xf32>
    %321 = math.tanh %315 : vector<8x128xf32>
    %322 = vector.extract_strided_slice %320 {offsets = [0, 0], sizes = [8, 32], strides = [1, 1]} : vector<8x128xf32> to vector<8x32xf32>
    %323 = vector.extract_strided_slice %320 {offsets = [0, 32], sizes = [8, 32], strides = [1, 1]} : vector<8x128xf32> to vector<8x32xf32>
    %324 = vector.extract_strided_slice %321 {offsets = [0, 64], sizes = [8, 32], strides = [1, 1]} : vector<8x128xf32> to vector<8x32xf32>
    %325 = vector.extract_strided_slice %320 {offsets = [0, 96], sizes = [8, 32], strides = [1, 1]} : vector<8x128xf32> to vector<8x32xf32>
    %326 = arith.mulf %323, %252 : vector<8x32xf32>
    %327 = arith.mulf %322, %324 : vector<8x32xf32>
    %328 = arith.addf %326, %327 : vector<8x32xf32>
    %329 = math.tanh %328 : vector<8x32xf32>
    %330 = arith.mulf %325, %329 : vector<8x32xf32>
    %331 = vector.extract_strided_slice %10 {offsets = [4, 0, 0], sizes = [1, 8, 128], strides = [1, 1, 1]} : vector<8x8x128xf32> to vector<1x8x128xf32>
    %332 = vector.shape_cast %331 : vector<1x8x128xf32> to vector<8x128xf32>
    %cst_60 = arith.constant dense<0.000000e+00> : vector<8x128xf32>
    %333 = tpu.matmul %273, %11, %cst_60 {dimension_numbers = #tpu.dot_dimension_numbers<[1], [0], [0], [1], [0, 0, 1, 1], [], []>} : vector<8x32xf32>, vector<32x128xf32>, vector<8x128xf32> -> vector<8x128xf32>
    %334 = arith.addf %332, %333 : vector<8x128xf32>
    %335 = arith.negf %334 : vector<8x128xf32>
    %336 = math.exp %335 : vector<8x128xf32>
    %cst_61 = arith.constant 1.000000e+00 : f32
    %337 = vector.broadcast %cst_61 : f32 to vector<8x128xf32>
    %338 = arith.addf %337, %336 : vector<8x128xf32>
    %339 = arith.divf %337, %338 : vector<8x128xf32>
    %340 = math.tanh %334 : vector<8x128xf32>
    %341 = vector.extract_strided_slice %339 {offsets = [0, 0], sizes = [8, 32], strides = [1, 1]} : vector<8x128xf32> to vector<8x32xf32>
    %342 = vector.extract_strided_slice %339 {offsets = [0, 32], sizes = [8, 32], strides = [1, 1]} : vector<8x128xf32> to vector<8x32xf32>
    %343 = vector.extract_strided_slice %340 {offsets = [0, 64], sizes = [8, 32], strides = [1, 1]} : vector<8x128xf32> to vector<8x32xf32>
    %344 = vector.extract_strided_slice %339 {offsets = [0, 96], sizes = [8, 32], strides = [1, 1]} : vector<8x128xf32> to vector<8x32xf32>
    %345 = arith.mulf %342, %271 : vector<8x32xf32>
    %346 = arith.mulf %341, %343 : vector<8x32xf32>
    %347 = arith.addf %345, %346 : vector<8x32xf32>
    %348 = math.tanh %347 : vector<8x32xf32>
    %349 = arith.mulf %344, %348 : vector<8x32xf32>
    %350 = tpu.concatenate %349, %292 in 1 : vector<8x32xf32>, vector<8x32xf32> -> vector<8x64xf32>
    %cst_62 = arith.constant dense<0.000000e+00> : vector<8x128xf32>
    %351 = tpu.matmul %350, %13, %cst_62 {dimension_numbers = #tpu.dot_dimension_numbers<[1], [0], [0], [1], [0, 0, 1, 1], [], []>} : vector<8x64xf32>, vector<64x128xf32>, vector<8x128xf32> -> vector<8x128xf32>
    %352 = vector.broadcast %19 : vector<1x128xf32> to vector<8x128xf32>
    %353 = arith.addf %351, %352 : vector<8x128xf32>
    %354 = arith.negf %353 : vector<8x128xf32>
    %355 = math.exp %354 : vector<8x128xf32>
    %cst_63 = arith.constant 1.000000e+00 : f32
    %356 = vector.broadcast %cst_63 : f32 to vector<8x128xf32>
    %357 = arith.addf %356, %355 : vector<8x128xf32>
    %358 = arith.divf %356, %357 : vector<8x128xf32>
    %359 = math.tanh %353 : vector<8x128xf32>
    %360 = vector.extract_strided_slice %358 {offsets = [0, 0], sizes = [8, 32], strides = [1, 1]} : vector<8x128xf32> to vector<8x32xf32>
    %361 = vector.extract_strided_slice %358 {offsets = [0, 32], sizes = [8, 32], strides = [1, 1]} : vector<8x128xf32> to vector<8x32xf32>
    %362 = vector.extract_strided_slice %359 {offsets = [0, 64], sizes = [8, 32], strides = [1, 1]} : vector<8x128xf32> to vector<8x32xf32>
    %363 = vector.extract_strided_slice %358 {offsets = [0, 96], sizes = [8, 32], strides = [1, 1]} : vector<8x128xf32> to vector<8x32xf32>
    %364 = arith.mulf %361, %290 : vector<8x32xf32>
    %365 = arith.mulf %360, %362 : vector<8x32xf32>
    %366 = arith.addf %364, %365 : vector<8x32xf32>
    %367 = math.tanh %366 : vector<8x32xf32>
    %368 = arith.mulf %363, %367 : vector<8x32xf32>
    %369 = tpu.concatenate %368, %311 in 1 : vector<8x32xf32>, vector<8x32xf32> -> vector<8x64xf32>
    %cst_64 = arith.constant dense<0.000000e+00> : vector<8x128xf32>
    %370 = tpu.matmul %369, %15, %cst_64 {dimension_numbers = #tpu.dot_dimension_numbers<[1], [0], [0], [1], [0, 0, 1, 1], [], []>} : vector<8x64xf32>, vector<64x128xf32>, vector<8x128xf32> -> vector<8x128xf32>
    %371 = vector.broadcast %21 : vector<1x128xf32> to vector<8x128xf32>
    %372 = arith.addf %370, %371 : vector<8x128xf32>
    %373 = arith.negf %372 : vector<8x128xf32>
    %374 = math.exp %373 : vector<8x128xf32>
    %cst_65 = arith.constant 1.000000e+00 : f32
    %375 = vector.broadcast %cst_65 : f32 to vector<8x128xf32>
    %376 = arith.addf %375, %374 : vector<8x128xf32>
    %377 = arith.divf %375, %376 : vector<8x128xf32>
    %378 = math.tanh %372 : vector<8x128xf32>
    %379 = vector.extract_strided_slice %377 {offsets = [0, 0], sizes = [8, 32], strides = [1, 1]} : vector<8x128xf32> to vector<8x32xf32>
    %380 = vector.extract_strided_slice %377 {offsets = [0, 32], sizes = [8, 32], strides = [1, 1]} : vector<8x128xf32> to vector<8x32xf32>
    %381 = vector.extract_strided_slice %378 {offsets = [0, 64], sizes = [8, 32], strides = [1, 1]} : vector<8x128xf32> to vector<8x32xf32>
    %382 = vector.extract_strided_slice %377 {offsets = [0, 96], sizes = [8, 32], strides = [1, 1]} : vector<8x128xf32> to vector<8x32xf32>
    %383 = arith.mulf %380, %309 : vector<8x32xf32>
    %384 = arith.mulf %379, %381 : vector<8x32xf32>
    %385 = arith.addf %383, %384 : vector<8x32xf32>
    %386 = math.tanh %385 : vector<8x32xf32>
    %387 = arith.mulf %382, %386 : vector<8x32xf32>
    %388 = tpu.concatenate %387, %330 in 1 : vector<8x32xf32>, vector<8x32xf32> -> vector<8x64xf32>
    %cst_66 = arith.constant dense<0.000000e+00> : vector<8x128xf32>
    %389 = tpu.matmul %388, %17, %cst_66 {dimension_numbers = #tpu.dot_dimension_numbers<[1], [0], [0], [1], [0, 0, 1, 1], [], []>} : vector<8x64xf32>, vector<64x128xf32>, vector<8x128xf32> -> vector<8x128xf32>
    %390 = vector.broadcast %23 : vector<1x128xf32> to vector<8x128xf32>
    %391 = arith.addf %389, %390 : vector<8x128xf32>
    %392 = arith.negf %391 : vector<8x128xf32>
    %393 = math.exp %392 : vector<8x128xf32>
    %cst_67 = arith.constant 1.000000e+00 : f32
    %394 = vector.broadcast %cst_67 : f32 to vector<8x128xf32>
    %395 = arith.addf %394, %393 : vector<8x128xf32>
    %396 = arith.divf %394, %395 : vector<8x128xf32>
    %397 = math.tanh %391 : vector<8x128xf32>
    %398 = vector.extract_strided_slice %396 {offsets = [0, 0], sizes = [8, 32], strides = [1, 1]} : vector<8x128xf32> to vector<8x32xf32>
    %399 = vector.extract_strided_slice %396 {offsets = [0, 32], sizes = [8, 32], strides = [1, 1]} : vector<8x128xf32> to vector<8x32xf32>
    %400 = vector.extract_strided_slice %397 {offsets = [0, 64], sizes = [8, 32], strides = [1, 1]} : vector<8x128xf32> to vector<8x32xf32>
    %401 = vector.extract_strided_slice %396 {offsets = [0, 96], sizes = [8, 32], strides = [1, 1]} : vector<8x128xf32> to vector<8x32xf32>
    %402 = arith.mulf %399, %328 : vector<8x32xf32>
    %403 = arith.mulf %398, %400 : vector<8x32xf32>
    %404 = arith.addf %402, %403 : vector<8x32xf32>
    %405 = math.tanh %404 : vector<8x32xf32>
    %406 = arith.mulf %401, %405 : vector<8x32xf32>
    %407 = vector.extract_strided_slice %10 {offsets = [5, 0, 0], sizes = [1, 8, 128], strides = [1, 1, 1]} : vector<8x8x128xf32> to vector<1x8x128xf32>
    %408 = vector.shape_cast %407 : vector<1x8x128xf32> to vector<8x128xf32>
    %cst_68 = arith.constant dense<0.000000e+00> : vector<8x128xf32>
    %409 = tpu.matmul %349, %11, %cst_68 {dimension_numbers = #tpu.dot_dimension_numbers<[1], [0], [0], [1], [0, 0, 1, 1], [], []>} : vector<8x32xf32>, vector<32x128xf32>, vector<8x128xf32> -> vector<8x128xf32>
    %410 = arith.addf %408, %409 : vector<8x128xf32>
    %411 = arith.negf %410 : vector<8x128xf32>
    %412 = math.exp %411 : vector<8x128xf32>
    %cst_69 = arith.constant 1.000000e+00 : f32
    %413 = vector.broadcast %cst_69 : f32 to vector<8x128xf32>
    %414 = arith.addf %413, %412 : vector<8x128xf32>
    %415 = arith.divf %413, %414 : vector<8x128xf32>
    %416 = math.tanh %410 : vector<8x128xf32>
    %417 = vector.extract_strided_slice %415 {offsets = [0, 0], sizes = [8, 32], strides = [1, 1]} : vector<8x128xf32> to vector<8x32xf32>
    %418 = vector.extract_strided_slice %415 {offsets = [0, 32], sizes = [8, 32], strides = [1, 1]} : vector<8x128xf32> to vector<8x32xf32>
    %419 = vector.extract_strided_slice %416 {offsets = [0, 64], sizes = [8, 32], strides = [1, 1]} : vector<8x128xf32> to vector<8x32xf32>
    %420 = vector.extract_strided_slice %415 {offsets = [0, 96], sizes = [8, 32], strides = [1, 1]} : vector<8x128xf32> to vector<8x32xf32>
    %421 = arith.mulf %418, %347 : vector<8x32xf32>
    %422 = arith.mulf %417, %419 : vector<8x32xf32>
    %423 = arith.addf %421, %422 : vector<8x32xf32>
    %424 = math.tanh %423 : vector<8x32xf32>
    %425 = arith.mulf %420, %424 : vector<8x32xf32>
    %426 = tpu.concatenate %425, %368 in 1 : vector<8x32xf32>, vector<8x32xf32> -> vector<8x64xf32>
    %cst_70 = arith.constant dense<0.000000e+00> : vector<8x128xf32>
    %427 = tpu.matmul %426, %13, %cst_70 {dimension_numbers = #tpu.dot_dimension_numbers<[1], [0], [0], [1], [0, 0, 1, 1], [], []>} : vector<8x64xf32>, vector<64x128xf32>, vector<8x128xf32> -> vector<8x128xf32>
    %428 = vector.broadcast %19 : vector<1x128xf32> to vector<8x128xf32>
    %429 = arith.addf %427, %428 : vector<8x128xf32>
    %430 = arith.negf %429 : vector<8x128xf32>
    %431 = math.exp %430 : vector<8x128xf32>
    %cst_71 = arith.constant 1.000000e+00 : f32
    %432 = vector.broadcast %cst_71 : f32 to vector<8x128xf32>
    %433 = arith.addf %432, %431 : vector<8x128xf32>
    %434 = arith.divf %432, %433 : vector<8x128xf32>
    %435 = math.tanh %429 : vector<8x128xf32>
    %436 = vector.extract_strided_slice %434 {offsets = [0, 0], sizes = [8, 32], strides = [1, 1]} : vector<8x128xf32> to vector<8x32xf32>
    %437 = vector.extract_strided_slice %434 {offsets = [0, 32], sizes = [8, 32], strides = [1, 1]} : vector<8x128xf32> to vector<8x32xf32>
    %438 = vector.extract_strided_slice %435 {offsets = [0, 64], sizes = [8, 32], strides = [1, 1]} : vector<8x128xf32> to vector<8x32xf32>
    %439 = vector.extract_strided_slice %434 {offsets = [0, 96], sizes = [8, 32], strides = [1, 1]} : vector<8x128xf32> to vector<8x32xf32>
    %440 = arith.mulf %437, %366 : vector<8x32xf32>
    %441 = arith.mulf %436, %438 : vector<8x32xf32>
    %442 = arith.addf %440, %441 : vector<8x32xf32>
    %443 = math.tanh %442 : vector<8x32xf32>
    %444 = arith.mulf %439, %443 : vector<8x32xf32>
    %445 = tpu.concatenate %444, %387 in 1 : vector<8x32xf32>, vector<8x32xf32> -> vector<8x64xf32>
    %cst_72 = arith.constant dense<0.000000e+00> : vector<8x128xf32>
    %446 = tpu.matmul %445, %15, %cst_72 {dimension_numbers = #tpu.dot_dimension_numbers<[1], [0], [0], [1], [0, 0, 1, 1], [], []>} : vector<8x64xf32>, vector<64x128xf32>, vector<8x128xf32> -> vector<8x128xf32>
    %447 = vector.broadcast %21 : vector<1x128xf32> to vector<8x128xf32>
    %448 = arith.addf %446, %447 : vector<8x128xf32>
    %449 = arith.negf %448 : vector<8x128xf32>
    %450 = math.exp %449 : vector<8x128xf32>
    %cst_73 = arith.constant 1.000000e+00 : f32
    %451 = vector.broadcast %cst_73 : f32 to vector<8x128xf32>
    %452 = arith.addf %451, %450 : vector<8x128xf32>
    %453 = arith.divf %451, %452 : vector<8x128xf32>
    %454 = math.tanh %448 : vector<8x128xf32>
    %455 = vector.extract_strided_slice %453 {offsets = [0, 0], sizes = [8, 32], strides = [1, 1]} : vector<8x128xf32> to vector<8x32xf32>
    %456 = vector.extract_strided_slice %453 {offsets = [0, 32], sizes = [8, 32], strides = [1, 1]} : vector<8x128xf32> to vector<8x32xf32>
    %457 = vector.extract_strided_slice %454 {offsets = [0, 64], sizes = [8, 32], strides = [1, 1]} : vector<8x128xf32> to vector<8x32xf32>
    %458 = vector.extract_strided_slice %453 {offsets = [0, 96], sizes = [8, 32], strides = [1, 1]} : vector<8x128xf32> to vector<8x32xf32>
    %459 = arith.mulf %456, %385 : vector<8x32xf32>
    %460 = arith.mulf %455, %457 : vector<8x32xf32>
    %461 = arith.addf %459, %460 : vector<8x32xf32>
    %462 = math.tanh %461 : vector<8x32xf32>
    %463 = arith.mulf %458, %462 : vector<8x32xf32>
    %464 = tpu.concatenate %463, %406 in 1 : vector<8x32xf32>, vector<8x32xf32> -> vector<8x64xf32>
    %cst_74 = arith.constant dense<0.000000e+00> : vector<8x128xf32>
    %465 = tpu.matmul %464, %17, %cst_74 {dimension_numbers = #tpu.dot_dimension_numbers<[1], [0], [0], [1], [0, 0, 1, 1], [], []>} : vector<8x64xf32>, vector<64x128xf32>, vector<8x128xf32> -> vector<8x128xf32>
    %466 = vector.broadcast %23 : vector<1x128xf32> to vector<8x128xf32>
    %467 = arith.addf %465, %466 : vector<8x128xf32>
    %468 = arith.negf %467 : vector<8x128xf32>
    %469 = math.exp %468 : vector<8x128xf32>
    %cst_75 = arith.constant 1.000000e+00 : f32
    %470 = vector.broadcast %cst_75 : f32 to vector<8x128xf32>
    %471 = arith.addf %470, %469 : vector<8x128xf32>
    %472 = arith.divf %470, %471 : vector<8x128xf32>
    %473 = math.tanh %467 : vector<8x128xf32>
    %474 = vector.extract_strided_slice %472 {offsets = [0, 0], sizes = [8, 32], strides = [1, 1]} : vector<8x128xf32> to vector<8x32xf32>
    %475 = vector.extract_strided_slice %472 {offsets = [0, 32], sizes = [8, 32], strides = [1, 1]} : vector<8x128xf32> to vector<8x32xf32>
    %476 = vector.extract_strided_slice %473 {offsets = [0, 64], sizes = [8, 32], strides = [1, 1]} : vector<8x128xf32> to vector<8x32xf32>
    %477 = vector.extract_strided_slice %472 {offsets = [0, 96], sizes = [8, 32], strides = [1, 1]} : vector<8x128xf32> to vector<8x32xf32>
    %478 = arith.mulf %475, %404 : vector<8x32xf32>
    %479 = arith.mulf %474, %476 : vector<8x32xf32>
    %480 = arith.addf %478, %479 : vector<8x32xf32>
    %481 = math.tanh %480 : vector<8x32xf32>
    %482 = arith.mulf %477, %481 : vector<8x32xf32>
    %483 = vector.extract_strided_slice %10 {offsets = [6, 0, 0], sizes = [1, 8, 128], strides = [1, 1, 1]} : vector<8x8x128xf32> to vector<1x8x128xf32>
    %484 = vector.shape_cast %483 : vector<1x8x128xf32> to vector<8x128xf32>
    %cst_76 = arith.constant dense<0.000000e+00> : vector<8x128xf32>
    %485 = tpu.matmul %425, %11, %cst_76 {dimension_numbers = #tpu.dot_dimension_numbers<[1], [0], [0], [1], [0, 0, 1, 1], [], []>} : vector<8x32xf32>, vector<32x128xf32>, vector<8x128xf32> -> vector<8x128xf32>
    %486 = arith.addf %484, %485 : vector<8x128xf32>
    %487 = arith.negf %486 : vector<8x128xf32>
    %488 = math.exp %487 : vector<8x128xf32>
    %cst_77 = arith.constant 1.000000e+00 : f32
    %489 = vector.broadcast %cst_77 : f32 to vector<8x128xf32>
    %490 = arith.addf %489, %488 : vector<8x128xf32>
    %491 = arith.divf %489, %490 : vector<8x128xf32>
    %492 = math.tanh %486 : vector<8x128xf32>
    %493 = vector.extract_strided_slice %491 {offsets = [0, 0], sizes = [8, 32], strides = [1, 1]} : vector<8x128xf32> to vector<8x32xf32>
    %494 = vector.extract_strided_slice %491 {offsets = [0, 32], sizes = [8, 32], strides = [1, 1]} : vector<8x128xf32> to vector<8x32xf32>
    %495 = vector.extract_strided_slice %492 {offsets = [0, 64], sizes = [8, 32], strides = [1, 1]} : vector<8x128xf32> to vector<8x32xf32>
    %496 = vector.extract_strided_slice %491 {offsets = [0, 96], sizes = [8, 32], strides = [1, 1]} : vector<8x128xf32> to vector<8x32xf32>
    %497 = arith.mulf %494, %423 : vector<8x32xf32>
    %498 = arith.mulf %493, %495 : vector<8x32xf32>
    %499 = arith.addf %497, %498 : vector<8x32xf32>
    %500 = math.tanh %499 : vector<8x32xf32>
    %501 = arith.mulf %496, %500 : vector<8x32xf32>
    %502 = tpu.concatenate %501, %444 in 1 : vector<8x32xf32>, vector<8x32xf32> -> vector<8x64xf32>
    %cst_78 = arith.constant dense<0.000000e+00> : vector<8x128xf32>
    %503 = tpu.matmul %502, %13, %cst_78 {dimension_numbers = #tpu.dot_dimension_numbers<[1], [0], [0], [1], [0, 0, 1, 1], [], []>} : vector<8x64xf32>, vector<64x128xf32>, vector<8x128xf32> -> vector<8x128xf32>
    %504 = vector.broadcast %19 : vector<1x128xf32> to vector<8x128xf32>
    %505 = arith.addf %503, %504 : vector<8x128xf32>
    %506 = arith.negf %505 : vector<8x128xf32>
    %507 = math.exp %506 : vector<8x128xf32>
    %cst_79 = arith.constant 1.000000e+00 : f32
    %508 = vector.broadcast %cst_79 : f32 to vector<8x128xf32>
    %509 = arith.addf %508, %507 : vector<8x128xf32>
    %510 = arith.divf %508, %509 : vector<8x128xf32>
    %511 = math.tanh %505 : vector<8x128xf32>
    %512 = vector.extract_strided_slice %510 {offsets = [0, 0], sizes = [8, 32], strides = [1, 1]} : vector<8x128xf32> to vector<8x32xf32>
    %513 = vector.extract_strided_slice %510 {offsets = [0, 32], sizes = [8, 32], strides = [1, 1]} : vector<8x128xf32> to vector<8x32xf32>
    %514 = vector.extract_strided_slice %511 {offsets = [0, 64], sizes = [8, 32], strides = [1, 1]} : vector<8x128xf32> to vector<8x32xf32>
    %515 = vector.extract_strided_slice %510 {offsets = [0, 96], sizes = [8, 32], strides = [1, 1]} : vector<8x128xf32> to vector<8x32xf32>
    %516 = arith.mulf %513, %442 : vector<8x32xf32>
    %517 = arith.mulf %512, %514 : vector<8x32xf32>
    %518 = arith.addf %516, %517 : vector<8x32xf32>
    %519 = math.tanh %518 : vector<8x32xf32>
    %520 = arith.mulf %515, %519 : vector<8x32xf32>
    %521 = tpu.concatenate %520, %463 in 1 : vector<8x32xf32>, vector<8x32xf32> -> vector<8x64xf32>
    %cst_80 = arith.constant dense<0.000000e+00> : vector<8x128xf32>
    %522 = tpu.matmul %521, %15, %cst_80 {dimension_numbers = #tpu.dot_dimension_numbers<[1], [0], [0], [1], [0, 0, 1, 1], [], []>} : vector<8x64xf32>, vector<64x128xf32>, vector<8x128xf32> -> vector<8x128xf32>
    %523 = vector.broadcast %21 : vector<1x128xf32> to vector<8x128xf32>
    %524 = arith.addf %522, %523 : vector<8x128xf32>
    %525 = arith.negf %524 : vector<8x128xf32>
    %526 = math.exp %525 : vector<8x128xf32>
    %cst_81 = arith.constant 1.000000e+00 : f32
    %527 = vector.broadcast %cst_81 : f32 to vector<8x128xf32>
    %528 = arith.addf %527, %526 : vector<8x128xf32>
    %529 = arith.divf %527, %528 : vector<8x128xf32>
    %530 = math.tanh %524 : vector<8x128xf32>
    %531 = vector.extract_strided_slice %529 {offsets = [0, 0], sizes = [8, 32], strides = [1, 1]} : vector<8x128xf32> to vector<8x32xf32>
    %532 = vector.extract_strided_slice %529 {offsets = [0, 32], sizes = [8, 32], strides = [1, 1]} : vector<8x128xf32> to vector<8x32xf32>
    %533 = vector.extract_strided_slice %530 {offsets = [0, 64], sizes = [8, 32], strides = [1, 1]} : vector<8x128xf32> to vector<8x32xf32>
    %534 = vector.extract_strided_slice %529 {offsets = [0, 96], sizes = [8, 32], strides = [1, 1]} : vector<8x128xf32> to vector<8x32xf32>
    %535 = arith.mulf %532, %461 : vector<8x32xf32>
    %536 = arith.mulf %531, %533 : vector<8x32xf32>
    %537 = arith.addf %535, %536 : vector<8x32xf32>
    %538 = math.tanh %537 : vector<8x32xf32>
    %539 = arith.mulf %534, %538 : vector<8x32xf32>
    %540 = tpu.concatenate %539, %482 in 1 : vector<8x32xf32>, vector<8x32xf32> -> vector<8x64xf32>
    %cst_82 = arith.constant dense<0.000000e+00> : vector<8x128xf32>
    %541 = tpu.matmul %540, %17, %cst_82 {dimension_numbers = #tpu.dot_dimension_numbers<[1], [0], [0], [1], [0, 0, 1, 1], [], []>} : vector<8x64xf32>, vector<64x128xf32>, vector<8x128xf32> -> vector<8x128xf32>
    %542 = vector.broadcast %23 : vector<1x128xf32> to vector<8x128xf32>
    %543 = arith.addf %541, %542 : vector<8x128xf32>
    %544 = arith.negf %543 : vector<8x128xf32>
    %545 = math.exp %544 : vector<8x128xf32>
    %cst_83 = arith.constant 1.000000e+00 : f32
    %546 = vector.broadcast %cst_83 : f32 to vector<8x128xf32>
    %547 = arith.addf %546, %545 : vector<8x128xf32>
    %548 = arith.divf %546, %547 : vector<8x128xf32>
    %549 = math.tanh %543 : vector<8x128xf32>
    %550 = vector.extract_strided_slice %548 {offsets = [0, 0], sizes = [8, 32], strides = [1, 1]} : vector<8x128xf32> to vector<8x32xf32>
    %551 = vector.extract_strided_slice %548 {offsets = [0, 32], sizes = [8, 32], strides = [1, 1]} : vector<8x128xf32> to vector<8x32xf32>
    %552 = vector.extract_strided_slice %549 {offsets = [0, 64], sizes = [8, 32], strides = [1, 1]} : vector<8x128xf32> to vector<8x32xf32>
    %553 = vector.extract_strided_slice %548 {offsets = [0, 96], sizes = [8, 32], strides = [1, 1]} : vector<8x128xf32> to vector<8x32xf32>
    %554 = arith.mulf %551, %480 : vector<8x32xf32>
    %555 = arith.mulf %550, %552 : vector<8x32xf32>
    %556 = arith.addf %554, %555 : vector<8x32xf32>
    %557 = math.tanh %556 : vector<8x32xf32>
    %558 = arith.mulf %553, %557 : vector<8x32xf32>
    %559 = vector.extract_strided_slice %10 {offsets = [7, 0, 0], sizes = [1, 8, 128], strides = [1, 1, 1]} : vector<8x8x128xf32> to vector<1x8x128xf32>
    %560 = vector.shape_cast %559 : vector<1x8x128xf32> to vector<8x128xf32>
    %cst_84 = arith.constant dense<0.000000e+00> : vector<8x128xf32>
    %561 = tpu.matmul %501, %11, %cst_84 {dimension_numbers = #tpu.dot_dimension_numbers<[1], [0], [0], [1], [0, 0, 1, 1], [], []>} : vector<8x32xf32>, vector<32x128xf32>, vector<8x128xf32> -> vector<8x128xf32>
    %562 = arith.addf %560, %561 : vector<8x128xf32>
    %563 = arith.negf %562 : vector<8x128xf32>
    %564 = math.exp %563 : vector<8x128xf32>
    %cst_85 = arith.constant 1.000000e+00 : f32
    %565 = vector.broadcast %cst_85 : f32 to vector<8x128xf32>
    %566 = arith.addf %565, %564 : vector<8x128xf32>
    %567 = arith.divf %565, %566 : vector<8x128xf32>
    %568 = math.tanh %562 : vector<8x128xf32>
    %569 = vector.extract_strided_slice %567 {offsets = [0, 0], sizes = [8, 32], strides = [1, 1]} : vector<8x128xf32> to vector<8x32xf32>
    %570 = vector.extract_strided_slice %567 {offsets = [0, 32], sizes = [8, 32], strides = [1, 1]} : vector<8x128xf32> to vector<8x32xf32>
    %571 = vector.extract_strided_slice %568 {offsets = [0, 64], sizes = [8, 32], strides = [1, 1]} : vector<8x128xf32> to vector<8x32xf32>
    %572 = vector.extract_strided_slice %567 {offsets = [0, 96], sizes = [8, 32], strides = [1, 1]} : vector<8x128xf32> to vector<8x32xf32>
    %573 = arith.mulf %570, %499 : vector<8x32xf32>
    %574 = arith.mulf %569, %571 : vector<8x32xf32>
    %575 = arith.addf %573, %574 : vector<8x32xf32>
    %576 = math.tanh %575 : vector<8x32xf32>
    %577 = arith.mulf %572, %576 : vector<8x32xf32>
    %578 = tpu.concatenate %577, %520 in 1 : vector<8x32xf32>, vector<8x32xf32> -> vector<8x64xf32>
    %cst_86 = arith.constant dense<0.000000e+00> : vector<8x128xf32>
    %579 = tpu.matmul %578, %13, %cst_86 {dimension_numbers = #tpu.dot_dimension_numbers<[1], [0], [0], [1], [0, 0, 1, 1], [], []>} : vector<8x64xf32>, vector<64x128xf32>, vector<8x128xf32> -> vector<8x128xf32>
    %580 = vector.broadcast %19 : vector<1x128xf32> to vector<8x128xf32>
    %581 = arith.addf %579, %580 : vector<8x128xf32>
    %582 = arith.negf %581 : vector<8x128xf32>
    %583 = math.exp %582 : vector<8x128xf32>
    %cst_87 = arith.constant 1.000000e+00 : f32
    %584 = vector.broadcast %cst_87 : f32 to vector<8x128xf32>
    %585 = arith.addf %584, %583 : vector<8x128xf32>
    %586 = arith.divf %584, %585 : vector<8x128xf32>
    %587 = math.tanh %581 : vector<8x128xf32>
    %588 = vector.extract_strided_slice %586 {offsets = [0, 0], sizes = [8, 32], strides = [1, 1]} : vector<8x128xf32> to vector<8x32xf32>
    %589 = vector.extract_strided_slice %586 {offsets = [0, 32], sizes = [8, 32], strides = [1, 1]} : vector<8x128xf32> to vector<8x32xf32>
    %590 = vector.extract_strided_slice %587 {offsets = [0, 64], sizes = [8, 32], strides = [1, 1]} : vector<8x128xf32> to vector<8x32xf32>
    %591 = vector.extract_strided_slice %586 {offsets = [0, 96], sizes = [8, 32], strides = [1, 1]} : vector<8x128xf32> to vector<8x32xf32>
    %592 = arith.mulf %589, %518 : vector<8x32xf32>
    %593 = arith.mulf %588, %590 : vector<8x32xf32>
    %594 = arith.addf %592, %593 : vector<8x32xf32>
    %595 = math.tanh %594 : vector<8x32xf32>
    %596 = arith.mulf %591, %595 : vector<8x32xf32>
    %597 = tpu.concatenate %596, %539 in 1 : vector<8x32xf32>, vector<8x32xf32> -> vector<8x64xf32>
    %cst_88 = arith.constant dense<0.000000e+00> : vector<8x128xf32>
    %598 = tpu.matmul %597, %15, %cst_88 {dimension_numbers = #tpu.dot_dimension_numbers<[1], [0], [0], [1], [0, 0, 1, 1], [], []>} : vector<8x64xf32>, vector<64x128xf32>, vector<8x128xf32> -> vector<8x128xf32>
    %599 = vector.broadcast %21 : vector<1x128xf32> to vector<8x128xf32>
    %600 = arith.addf %598, %599 : vector<8x128xf32>
    %601 = arith.negf %600 : vector<8x128xf32>
    %602 = math.exp %601 : vector<8x128xf32>
    %cst_89 = arith.constant 1.000000e+00 : f32
    %603 = vector.broadcast %cst_89 : f32 to vector<8x128xf32>
    %604 = arith.addf %603, %602 : vector<8x128xf32>
    %605 = arith.divf %603, %604 : vector<8x128xf32>
    %606 = math.tanh %600 : vector<8x128xf32>
    %607 = vector.extract_strided_slice %605 {offsets = [0, 0], sizes = [8, 32], strides = [1, 1]} : vector<8x128xf32> to vector<8x32xf32>
    %608 = vector.extract_strided_slice %605 {offsets = [0, 32], sizes = [8, 32], strides = [1, 1]} : vector<8x128xf32> to vector<8x32xf32>
    %609 = vector.extract_strided_slice %606 {offsets = [0, 64], sizes = [8, 32], strides = [1, 1]} : vector<8x128xf32> to vector<8x32xf32>
    %610 = vector.extract_strided_slice %605 {offsets = [0, 96], sizes = [8, 32], strides = [1, 1]} : vector<8x128xf32> to vector<8x32xf32>
    %611 = arith.mulf %608, %537 : vector<8x32xf32>
    %612 = arith.mulf %607, %609 : vector<8x32xf32>
    %613 = arith.addf %611, %612 : vector<8x32xf32>
    %614 = math.tanh %613 : vector<8x32xf32>
    %615 = arith.mulf %610, %614 : vector<8x32xf32>
    %616 = tpu.concatenate %615, %558 in 1 : vector<8x32xf32>, vector<8x32xf32> -> vector<8x64xf32>
    %cst_90 = arith.constant dense<0.000000e+00> : vector<8x128xf32>
    %617 = tpu.matmul %616, %17, %cst_90 {dimension_numbers = #tpu.dot_dimension_numbers<[1], [0], [0], [1], [0, 0, 1, 1], [], []>} : vector<8x64xf32>, vector<64x128xf32>, vector<8x128xf32> -> vector<8x128xf32>
    %618 = vector.broadcast %23 : vector<1x128xf32> to vector<8x128xf32>
    %619 = arith.addf %617, %618 : vector<8x128xf32>
    %620 = arith.negf %619 : vector<8x128xf32>
    %621 = math.exp %620 : vector<8x128xf32>
    %cst_91 = arith.constant 1.000000e+00 : f32
    %622 = vector.broadcast %cst_91 : f32 to vector<8x128xf32>
    %623 = arith.addf %622, %621 : vector<8x128xf32>
    %624 = arith.divf %622, %623 : vector<8x128xf32>
    %625 = math.tanh %619 : vector<8x128xf32>
    %626 = vector.extract_strided_slice %624 {offsets = [0, 0], sizes = [8, 32], strides = [1, 1]} : vector<8x128xf32> to vector<8x32xf32>
    %627 = vector.extract_strided_slice %624 {offsets = [0, 32], sizes = [8, 32], strides = [1, 1]} : vector<8x128xf32> to vector<8x32xf32>
    %628 = vector.extract_strided_slice %625 {offsets = [0, 64], sizes = [8, 32], strides = [1, 1]} : vector<8x128xf32> to vector<8x32xf32>
    %629 = vector.extract_strided_slice %624 {offsets = [0, 96], sizes = [8, 32], strides = [1, 1]} : vector<8x128xf32> to vector<8x32xf32>
    %630 = arith.mulf %627, %556 : vector<8x32xf32>
    %631 = arith.mulf %626, %628 : vector<8x32xf32>
    %632 = arith.addf %630, %631 : vector<8x32xf32>
    %633 = math.tanh %632 : vector<8x32xf32>
    %634 = arith.mulf %629, %633 : vector<8x32xf32>
    %cst_92 = arith.constant dense<0.000000e+00> : vector<8x1xf32>
    %635 = tpu.matmul %634, %24, %cst_92 {dimension_numbers = #tpu.dot_dimension_numbers<[1], [0], [0], [1], [0, 0, 1, 1], [], []>} : vector<8x32xf32>, vector<32x1xf32>, vector<8x1xf32> -> vector<8x1xf32>
    %636 = vector.broadcast %25 : vector<1x1xf32> to vector<8x1xf32>
    %637 = arith.addf %635, %636 : vector<8x1xf32>
    %c0_93 = arith.constant 0 : index
    %c0_94 = arith.constant 0 : index
    %638 = vector.load %arg7[%c0_93, %c0_94] : memref<8x1xf32, #tpu.memory_space<vmem>>, vector<8x1xf32>
    tpu.vector_store %arg7[%c0_93, %c0_94], %637 {strides = array<i32>} : memref<8x1xf32, #tpu.memory_space<vmem>>, vector<8x1xf32>,
    return
  }
}

</mosaic_0001>

<bundles_post_ra>
// kernel: tpu_custom_call.1
= control target key start
LH: loop header
LB: loop body
LE: loop exit
PB: predicated region body
PF: predicated region fallthrough
CT: control target
= control target key end

     0   :  { %s5967_s0 = inlined_call_operand.vmem [shape: f32[8,8,1], index: 0, kind: input, shape index: {}]   ;;  %s5968_s1 = inlined_call_operand.vmem [shape: f32[1,128], index: 1, kind: input, shape index: {}]   ;;  %s5969_s2 = inlined_call_operand.vmem [shape: f32[32,128], index: 2, kind: input, shape index: {}]   ;;  %s5970_s3 = inlined_call_operand.hbm [shape: f32[3,64,128], index: 3, kind: input, shape index: {}]   ;;  %s5971_s4 = inlined_call_operand.vmem [shape: f32[4,1,128], index: 4, kind: input, shape index: {}]   ;;  %s5972_s5 = inlined_call_operand.vmem [shape: f32[32,1], index: 5, kind: input, shape index: {}]   ;;  %s5973_s6 = inlined_call_operand.<no memory space> [shape: f32[1,1], index: 6, kind: input, shape index: {}]   ;;  %s5974_s7 = inlined_call_operand.vmem [shape: f32[8,1], index: 7, kind: output, shape index: {}]  }
   0x1   :  { %v12_v0 = vstv %s5973_s6 }
   0x2   :  { %13 = vst [vmem:[#allocation2] sm:$0x1] %v12_v0 }
   0x3   :  { %14 = vsyncpa [#allocation4], 0  ;;  %s5091_s26 = smov [#allocation3]   ;;  %s5067_s30 = scalar_lea.hbm %s5970_s3, 3072 }
   0x4   :  { %s26_s27 = sshll.u32 %s5091_s26, 4  ;;  %p5068_p0 = scmp.ne.s32.totalorder %s5970_s3, %s5067_s30  ;;  %s27_s27 = int_to_ptr.vmem [resolvable:$true] %s26_s27 }
   0x5   :  { %p5071_p1 = scmp.lt.u32.totalorder %s5067_s30, %s5970_s3 }
   0x7   :  { %p5073_p2 = pnand %p5071_p1, %p5068_p0 }
   0x9   :  { %5076 = shalt.err (!%p5073_p2)
}
   0xa   :  { %s5077_s6 = scalar_lea.vmem %s27_s27, 3072  ;;  %p5082_p4 = scmp.lt.s32.totalorder %s27_s27, %s27_s27 }
   0xb   :  { %p5078_p3 = scmp.ne.s32.totalorder %s27_s27, %s5077_s6  ;;  %p5083_p5 = scmp.lt.s32.totalorder %s5077_s6, %s5077_s6 }
   0xd   :  { %p5084_p6 = por %p5083_p5, %p5082_p4 }
   0xf   :  { %p5085_p7 = pnand %p5084_p6, %p5078_p3 }
  0x11   :  { %5088 = shalt.err (!%p5085_p7)
}
  0x12   :  { %s5092_s12 = smov 128   ;;  %s5093_s13 = smov 8  }
  0x13   :  { %32 = dma.hbm_to_vmem [thread:$0]  %s5970_s3, 3072, %s27_s27, [#allocation4], %s5092_s12, %s5092_s12, %s5093_s13  }
  0x14   :  { %5089 = dma.done.wait [#allocation4], 3072  }
  0x15   :  { %5090 = vsyncadd [#allocation4], 4294964224  ;;  %v5094_v1 = vmov 0.0|0.0   ;;  %vm5095_vm0 = vmmov 0   ;;  %v5096_v2 = vmov 0.0   ;;  %v5097_v3 = vmov 0  }
  0x16   :  { %4453 = vmatprep.subr.bf16.mxu0 %v5094_v1  ;;  %3906 = vmatprep.mubr.msk.f32.mxu0 %vm5095_vm0, %v5096_v2  ;;  %v120_v4 = vld [vmem:[%s5969_s2] sm:$0xff]  ;;  %v121_v5 = vld [vmem:[%s5969_s2 + $0x8] sm:$0xff]  ;;  %v122_v6 = vld [vmem:[%s5969_s2 + $0x10] sm:$0xff]  ;;  %s5098_s28 = smov 64   ;;  %s5099_s29 = smov 32   ;;  %vm161_vm1 = vcmask 261120  }
  0x17   :  { %4804 = vset.pattern.permute.xlu0 %v5097_v3  ;;  %4459 = vmatprep.subr.bf16.mxu1 %v5094_v1  ;;  %v5170_v7 = vpack.c.bf16 %v121_v5, %v120_v4  ;;  %v123_v8 = vld [vmem:[%s5969_s2 + $0x18] sm:$0xff]  ;;  %v42_v9 = vld [vmem:[%s5967_s0] sm:$0xff]  ;;  %v125_v30 = vld [vmem:[#allocation3 + $0x8] sm:$0xff]  ;;  %vm271_vm2 = vcmask 523264   ;;  %vm3557_vm3 = vcmask 7168  }
  0x18   :  { %3925 = vmatprep.mubr.msk.f32.mxu1 %vm5095_vm0, %v5096_v2  ;;  %4805 = vset.pattern.permute.xlu1 %v5097_v3  ;;  %v5179_v10 = vpack.c.bf16 %v123_v8, %v122_v6  ;;  %v5190_v11 = vld [vmem:[%s5968_s1] ss:$0 sm:$0xff]  ;;  %v124_v29 = vld [vmem:[#allocation3] sm:$0xff]  ;;  %v126_v31 = vld [vmem:[#allocation3 + $0x10] sm:$0xff] }
  0x19   :  { %53 = vperm.xlu0 %4804, %v42_v9   ;;  %4455 = vmatpush3.bf16.msra.mxu0 %v5170_v7  ;;  %v5196_v14 = vld [vmem:[%s5971_s4] ss:$0 sm:$0xff]  ;;  %v5204_v32 = vpack.c.bf16 %v125_v30, %v124_v29  ;;  %v128_v35 = vld [vmem:[#allocation3 + $0x20] sm:$0xff]  ;;  %v129_v36 = vld [vmem:[#allocation3 + $0x28] sm:$0xff] }
  0x1a   :  { %4456 = vmatprep.subr.bf16.mxu0 %v5094_v1  ;;  %v127_v33 = vld [vmem:[#allocation3 + $0x18] sm:$0xff]  ;;  %v5211_v37 = vpack.c.bf16 %v129_v36, %v128_v35  ;;  %v130_v38 = vld [vmem:[#allocation3 + $0x30] sm:$0xff]  ;;  %v5229_v46 = vld [vmem:[%s5971_s4 + $0x1] ss:$0 sm:$0xff] }
  0x1b   :  { %4461 = vmatpush3.bf16.msra.mxu1 %v5204_v32  ;;  %v5207_v34 = vpack.c.bf16 %v127_v33, %v126_v31  ;;  %v131_v39 = vld [vmem:[#allocation3 + $0x38] sm:$0xff]  ;;  %v133_v60 = vld [vmem:[#allocation3 + $0x40] sm:$0xff]  ;;  %v134_v61 = vld [vmem:[#allocation3 + $0x48] sm:$0xff] }
  0x1c   :  { %4462 = vmatprep.subr.bf16.mxu1 %v5094_v1  ;;  %v5216_v41 = vpack.c.bf16 %v131_v39, %v130_v38  ;;  %v135_v62 = vld [vmem:[#allocation3 + $0x50] sm:$0xff]  ;;  %v5237_v63 = vpack.c.bf16 %v134_v61, %v133_v60  ;;  %v136_v0 = vld [vmem:[#allocation3 + $0x58] sm:$0xff]  ;;  %v137_v4 = vld [vmem:[#allocation3 + $0x60] sm:$0xff] }
  0x1d   :  { %4458 = vmatpush3.bf16.msra.mxu0 %v5179_v10  ;;  %v5240_v3 = vpack.c.bf16 %v136_v0, %v135_v62  ;;  %v138_v5 = vld [vmem:[#allocation3 + $0x68] sm:$0xff]  ;;  %v139_v8 = vld [vmem:[#allocation3 + $0x70] sm:$0xff]  ;;  %v140_v9 = vld [vmem:[#allocation3 + $0x78] sm:$0xff] }
  0x1e   :  { %4471 = vmatprep.subr.bf16.mxu0 %v5094_v1  ;;  %v5244_v6 = vpack.c.bf16 %v138_v5, %v137_v4 }
  0x1f   :  { %4464 = vmatpush3.bf16.msra.mxu1 %v5207_v34 }
  0x20   :  { %3907 = vmatmul.mubr.f32.vlgmr.msra.gmra.mrb[0].mxu0 %v5096_v2  ;;  %4465 = vmatprep.subr.bf16.mxu1 %v5094_v1 }
  0x21   :  { %3944 = vmatprep.mubr.msk.f32.mxu0 %vm5095_vm0, %v5096_v2  ;;  %4473 = vmatpush3.bf16.msra.mxu0 %v5237_v63 }
  0x22   :  { %4474 = vmatprep.subr.bf16.mxu0 %v5094_v1 }
  0x23   :  { %4467 = vmatpush3.bf16.msra.mxu1 %v5211_v37 }
  0x24   :  { %4468 = vmatprep.subr.bf16.mxu1 %v5094_v1 }
  0x25   :  { %4476 = vmatpush3.bf16.msra.mxu0 %v5240_v3 }
  0x26   :  { %4477 = vmatprep.subr.bf16.mxu0 %v5094_v1 }
  0x27   :  { %4470 = vmatpush3.bf16.msra.mxu1 %v5216_v41 }
  0x28   :  { %4483 = vmatprep.subr.bf16.mxu1 %v5094_v1 }
  0x29   :  { %4479 = vmatpush3.bf16.msra.mxu0 %v5244_v6 }
  0x2a   :  { %4480 = vmatprep.subr.bf16.mxu0 %v5094_v1 }
  0x98   :  { %v54_v12 = vpop.permute.xlu0 %53 }
  0x99   :  { %v97_v13 = vmul.f32 %v5190_v11, %v54_v12 }
  0x9b   :  { %v112_v15 = vadd.f32 %v5196_v14, %v97_v13  ;;  %v5249_v13 = vpack.c.bf16 %v140_v9, %v139_v8  ;;  %v142_v8 = vld [vmem:[#allocation3 + $0x80] sm:$0xff]  ;;  %v143_v9 = vld [vmem:[#allocation3 + $0x88] sm:$0xff] }
  0x9d   :  { %4482 = vmatpush3.bf16.msra.mxu0 %v5249_v13 }
  0x9e   :  { %4495 = vmatprep.subr.bf16.mxu0 %v5094_v1 }
  0xf3   :  { %v231_v16 = vpop.f32.mrb[0].mxu0 }
  0xf4   :  { %v235_v17 = vadd.f32 %v231_v16, %v112_v15  ;;  %v3908_v18 = vpop.f32.mrb[1].mxu0  ;;  %v43_v15 = vld [vmem:[%s5967_s0 + $0x8] sm:$0xff] }
  0xf6   :  { %4806 = vtanh.f32 %v235_v17  ;;  %v3569_v20 = vmul.f32 -1.442695, %v235_v17 }
  0xf8   :  { %4808 = vpow2.f32 %v3569_v20 }
 0x100   :  { %v4807_v19 = vpop.eup %4806 }
 0x101   :  { %245 = vrot.lane.b32.xlu0 %v4807_v19, %s5098_s28 }
 0x102   :  { %v4809_v21 = vpop.eup %4808 }
 0x103   :  { %v239_v22 = vadd.f32 1.0, %v4809_v21 }
 0x105   :  { %4810 = vrcp.f32 %v239_v22 }
 0x10f   :  { %v4811_v23 = vpop.eup %4810 }
 0x110   :  { %v243_v26 = vmul.f32 0.0, %v4811_v23 }
 0x173   :  { %v246_v24 = vpop.permute.xlu0 %245 }
 0x174   :  { %v248_v25 = vmul.f32 %v4811_v23, %v246_v24 }
 0x176   :  { %250 = vrot.lane.b32.xlu1 %v248_v25, %s5099_s29 }
 0x1e8   :  { %v251_v27 = vpop.permute.xlu1 %250 }
 0x1e9   :  { %v5201_v28 = vadd.f32 %v251_v27, %v243_v26 }
 0x1eb   :  { %4812 = vtanh.f32 %v5201_v28 }
 0x1f5   :  { %v4813_v40 = vpop.eup %4812 }
 0x1f6   :  { %256 = vrot.lane.b32.xlu1 %v4813_v40, %s5098_s28 }
 0x268   :  { %v257_v42 = vpop.permute.xlu1 %256 }
 0x269   :  { %v259_v43 = vmul.f32 %v4811_v23, %v257_v42 }
 0x26b   :  { %261 = vrot.lane.b32.xlu0 %v259_v43, %s5099_s29 }
 0x2dd   :  { %v262_v44 = vpop.permute.xlu0 %261 }
 0x2de   :  { %v264_v45 = vsel %vm161_vm1, %v262_v44, 0.0 }
 0x2df   :  { %3926 = vmatmul.mubr.msk.f32.vlgmr.msra.gmra.mrb[0].mxu1 %vm271_vm2, %v264_v45 }
 0x2e0   :  { %3963 = vmatprep.mubr.msk.f32.mxu1 %vm5095_vm0, %v5096_v2 }
 0x3b2   :  { %v341_v47 = vpop.f32.mrb[0].mxu1 }
 0x3b3   :  { %v342_v48 = vadd.f32 %v5229_v46, %v341_v47  ;;  %v3927_v49 = vpop.f32.mrb[1].mxu1 }
 0x3b5   :  { %4814 = vtanh.f32 %v342_v48  ;;  %v3572_v51 = vmul.f32 -1.442695, %v342_v48 }
 0x3b7   :  { %4816 = vpow2.f32 %v3572_v51 }
 0x3bf   :  { %v4815_v50 = vpop.eup %4814 }
 0x3c0   :  { %354 = vrot.lane.b32.xlu1 %v4815_v50, %s5098_s28 }
 0x3c1   :  { %v4817_v52 = vpop.eup %4816 }
 0x3c2   :  { %v348_v53 = vadd.f32 1.0, %v4817_v52 }
 0x3c4   :  { %4818 = vrcp.f32 %v348_v53 }
 0x3ce   :  { %v4819_v54 = vpop.eup %4818 }
 0x3cf   :  { %v352_v57 = vmul.f32 0.0, %v4819_v54 }
 0x432   :  { %v355_v55 = vpop.permute.xlu1 %354 }
 0x433   :  { %v357_v56 = vmul.f32 %v4819_v54, %v355_v55 }
 0x435   :  { %359 = vrot.lane.b32.xlu0 %v357_v56, %s5099_s29 }
 0x4a7   :  { %v360_v58 = vpop.permute.xlu0 %359 }
 0x4a8   :  { %v5234_v59 = vadd.f32 %v360_v58, %v352_v57 }
 0x4aa   :  { %4820 = vtanh.f32 %v5234_v59 }
 0x4b4   :  { %v4821_v12 = vpop.eup %4820 }
 0x4b5   :  { %365 = vrot.lane.b32.xlu1 %v4821_v12, %s5098_s28  ;;  %v144_v12 = vld [vmem:[#allocation3 + $0x90] sm:$0xff] }
 0x4b9   :  { %58 = vperm.xlu1 %4805, %v43_v15   ;;  %v5308_v15 = vpack.c.bf16 %v143_v9, %v142_v8 }
 0x4bb   :  { %4485 = vmatpush3.bf16.msra.mxu1 %v5308_v15 }
 0x4bc   :  { %4486 = vmatprep.subr.bf16.mxu1 %v5094_v1 }
 0x527   :  { %v366_v16 = vpop.permute.xlu1 %365 }
 0x528   :  { %v368_v17 = vmul.f32 %v4819_v54, %v366_v16  ;;  %v145_v16 = vld [vmem:[#allocation3 + $0x98] sm:$0xff] }
 0x52a   :  { %370 = vrot.lane.b32.xlu0 %v368_v17, %s5099_s29 }
 0x538   :  { %v59_v20 = vpop.permute.xlu1 %58 }
 0x539   :  { %v98_v23 = vmul.f32 %v5190_v11, %v59_v20 }
 0x53b   :  { %v113_v24 = vadd.f32 %v5196_v14, %v98_v23 }
 0x59c   :  { %v371_v18 = vpop.permute.xlu0 %370 }
 0x59d   :  { %v373_v19 = vsel %vm161_vm1, %v371_v18, 0.0  ;;  %v146_v18 = vld [vmem:[#allocation3 + $0xa0] sm:$0xff] }
 0x59e   :  { %3945 = vmatmul.mubr.msk.f32.vlgmr.msra.gmra.mrb[2].mxu0 %vm271_vm2, %v373_v19  ;;  %v147_v19 = vld [vmem:[#allocation3 + $0xa8] sm:$0xff] }
 0x59f   :  { %4497 = vmatpush3.bf16.msra.mxu0 %v5170_v7  ;;  %3974 = vmatprep.mubr.msk.f32.mxu0 %vm5095_vm0, %v5096_v2  ;;  %v5317_v20 = vpack.c.bf16 %v147_v19, %v146_v18 }
 0x5a0   :  { %4498 = vmatprep.subr.bf16.mxu0 %v5094_v1 }
 0x5a3   :  { %4500 = vmatpush3.bf16.msra.mxu0 %v5179_v10 }
 0x5a4   :  { %4501 = vmatprep.subr.bf16.mxu0 %v5094_v1 }
 0x5a6   :  { %3975 = vmatmul.mubr.msk.f32.vlgmr.msra.gmra.mrb[4].mxu0 %vm161_vm1, %v262_v44  ;;  %v5290_v44 = vld [vmem:[%s5971_s4 + $0x2] ss:$0 sm:$0xff] }
 0x5a7   :  { %4503 = vmatpush3.bf16.msra.mxu0 %v5204_v32  ;;  %3993 = vmatprep.mubr.msk.f32.mxu0 %vm5095_vm0, %v5096_v2 }
 0x5a8   :  { %4504 = vmatprep.subr.bf16.mxu0 %v5094_v1 }
 0x5ab   :  { %4506 = vmatpush3.bf16.msra.mxu0 %v5207_v34 }
 0x5ac   :  { %4507 = vmatprep.subr.bf16.mxu0 %v5094_v1 }
 0x5af   :  { %4509 = vmatpush3.bf16.msra.mxu0 %v5211_v37 }
 0x5b0   :  { %4510 = vmatprep.subr.bf16.mxu0 %v5094_v1 }
 0x5b3   :  { %4512 = vmatpush3.bf16.msra.mxu0 %v5216_v41 }
 0x5b4   :  { %4525 = vmatprep.subr.bf16.mxu0 %v5094_v1 }
 0x671   :  { %v449_v21 = vpop.f32.mrb[2].mxu0 }
 0x672   :  { %v3946_v22 = vpop.f32.mrb[3].mxu0  ;;  %v450_v45 = vadd.f32 %v5290_v44, %v449_v21  ;;  %v148_v21 = vld [vmem:[#allocation3 + $0xb0] sm:$0xff] }
 0x673   :  { %v149_v22 = vld [vmem:[#allocation3 + $0xb8] sm:$0xff] }
 0x674   :  { %v3575_v49 = vmul.f32 -1.442695, %v450_v45 }
 0x679   :  { %v653_v25 = vpop.f32.mrb[4].mxu0 }
 0x67a   :  { %v657_v26 = vadd.f32 %v653_v25, %v113_v24  ;;  %v3976_v27 = vpop.f32.mrb[5].mxu0  ;;  %v5324_v24 = vpack.c.bf16 %v149_v22, %v148_v21 }
 0x67c   :  { %4822 = vtanh.f32 %v657_v26  ;;  %v3580_v30 = vmul.f32 -1.442695, %v657_v26 }
 0x67e   :  { %4824 = vpow2.f32 %v3580_v30 }
 0x686   :  { %v4823_v29 = vpop.eup %4822 }
 0x687   :  { %667 = vrot.lane.b32.xlu0 %v4823_v29, %s5098_s28 }
 0x688   :  { %v4825_v31 = vpop.eup %4824 }
 0x689   :  { %v661_v33 = vadd.f32 1.0, %v4825_v31 }
 0x68b   :  { %4826 = vrcp.f32 %v661_v33 }
 0x695   :  { %v4827_v35 = vpop.eup %4826 }
 0x696   :  { %v665_v39 = vmul.f32 %v4827_v35, %v5201_v28 }
 0x6f9   :  { %v668_v36 = vpop.permute.xlu0 %667 }
 0x6fa   :  { %v670_v38 = vmul.f32 %v4827_v35, %v668_v36 }
 0x6fc   :  { %672 = vrot.lane.b32.xlu1 %v670_v38, %s5099_s29 }
 0x76e   :  { %v673_v40 = vpop.permute.xlu1 %672 }
 0x76f   :  { %v5282_v42 = vadd.f32 %v673_v40, %v665_v39 }
 0x771   :  { %4828 = vtanh.f32 %v5282_v42 }
 0x772   :  { %4830 = vtanh.f32 %v450_v45 }
 0x773   :  { %4832 = vpow2.f32 %v3575_v49 }
 0x77b   :  { %v4829_v43 = vpop.eup %4828 }
 0x77c   :  { %678 = vrot.lane.b32.xlu0 %v4829_v43, %s5098_s28  ;;  %v4831_v48 = vpop.eup %4830 }
 0x77d   :  { %v4833_v50 = vpop.eup %4832 }
 0x77e   :  { %v456_v51 = vadd.f32 1.0, %v4833_v50  ;;  %v44_v50 = vld [vmem:[%s5967_s0 + $0x10] sm:$0xff] }
 0x780   :  { %686 = vrot.lane.b32.xlu0 %v368_v17, %s5098_s28  ;;  %4834 = vrcp.f32 %v456_v51  ;;  %v5311_v17 = vpack.c.bf16 %v145_v16, %v144_v12 }
 0x782   :  { %4488 = vmatpush3.bf16.msra.mxu1 %v5311_v17 }
 0x783   :  { %4489 = vmatprep.subr.bf16.mxu1 %v5094_v1 }
 0x786   :  { %4491 = vmatpush3.bf16.msra.mxu1 %v5317_v20 }
 0x787   :  { %4492 = vmatprep.subr.bf16.mxu1 %v5094_v1 }
 0x78a   :  { %v4835_v55 = vpop.eup %4834  ;;  %4494 = vmatpush3.bf16.msra.mxu1 %v5324_v24 }
 0x78b   :  { %v460_v58 = vmul.f32 0.0, %v4835_v55  ;;  %4513 = vmatprep.subr.bf16.mxu1 %v5094_v1 }
 0x7ee   :  { %v679_v47 = vpop.permute.xlu0 %678 }
 0x7ef   :  { %v681_v28 = vmul.f32 %v4827_v35, %v679_v47 }
 0x7f1   :  { %683 = vrot.lane.b32.xlu1 %v681_v28, %s5099_s29 }
 0x7f2   :  { %v687_v52 = vpop.permute.xlu0 %686 }
 0x7f5   :  { %462 = vrot.lane.b32.xlu1 %v4831_v48, %s5098_s28 }
 0x863   :  { %v5295_v53 = vpop.permute.xlu1 %683 }
 0x864   :  { %v689_v54 = vsel %vm161_vm1, %v5295_v53, %v687_v52 }
 0x865   :  { %3994 = vmatmul.mubr.msk.f32.vlgmr.msra.gmra.mrb[6].mxu0 %vm271_vm2, %v689_v54 }
 0x866   :  { %4031 = vmatprep.mubr.msk.f32.mxu0 %vm5095_vm0, %v5096_v2  ;;  %4527 = vmatpush3.bf16.msra.mxu0 %v5308_v15 }
 0x867   :  { %v463_v56 = vpop.permute.xlu1 %462  ;;  %4528 = vmatprep.subr.bf16.mxu0 %v5094_v1 }
 0x868   :  { %v465_v57 = vmul.f32 %v4835_v55, %v463_v56 }
 0x86a   :  { %467 = vrot.lane.b32.xlu1 %v465_v57, %s5099_s29  ;;  %4530 = vmatpush3.bf16.msra.mxu0 %v5311_v17 }
 0x86b   :  { %4531 = vmatprep.subr.bf16.mxu0 %v5094_v1 }
 0x86e   :  { %4533 = vmatpush3.bf16.msra.mxu0 %v5317_v20 }
 0x86f   :  { %4534 = vmatprep.subr.bf16.mxu0 %v5094_v1 }
 0x872   :  { %4536 = vmatpush3.bf16.msra.mxu0 %v5324_v24 }
 0x873   :  { %4555 = vmatprep.subr.bf16.mxu0 %v5094_v1 }
 0x8dc   :  { %v468_v60 = vpop.permute.xlu1 %467 }
 0x8dd   :  { %v5303_v61 = vadd.f32 %v468_v60, %v460_v58 }
 0x8df   :  { %4836 = vtanh.f32 %v5303_v61 }
 0x8e9   :  { %v4837_v62 = vpop.eup %4836 }
 0x8ea   :  { %473 = vrot.lane.b32.xlu1 %v4837_v62, %s5098_s28 }
 0x938   :  { %v759_v0 = vpop.f32.mrb[6].mxu0 }
 0x939   :  { %v760_v4 = vadd.f32 %v5229_v46, %v759_v0  ;;  %v3995_v5 = vpop.f32.mrb[7].mxu0 }
 0x93b   :  { %4838 = vtanh.f32 %v760_v4  ;;  %v3582_v27 = vmul.f32 -1.442695, %v760_v4 }
 0x93d   :  { %4840 = vpow2.f32 %v3582_v27 }
 0x945   :  { %v4839_v23 = vpop.eup %4838 }
 0x946   :  { %772 = vrot.lane.b32.xlu0 %v4839_v23, %s5098_s28 }
 0x947   :  { %v4841_v29 = vpop.eup %4840 }
 0x948   :  { %v766_v30 = vadd.f32 1.0, %v4841_v29 }
 0x94a   :  { %4842 = vrcp.f32 %v766_v30 }
 0x954   :  { %v4843_v31 = vpop.eup %4842 }
 0x955   :  { %v770_v39 = vmul.f32 %v4843_v31, %v5234_v59 }
 0x95c   :  { %v474_v25 = vpop.permute.xlu1 %473 }
 0x95d   :  { %v476_v26 = vmul.f32 %v4835_v55, %v474_v25 }
 0x95f   :  { %478 = vrot.lane.b32.xlu1 %v476_v26, %s5099_s29 }
 0x963   :  { %791 = vrot.lane.b32.xlu1 %v476_v26, %s5098_s28 }
 0x9b8   :  { %v773_v33 = vpop.permute.xlu0 %772 }
 0x9b9   :  { %v775_v35 = vmul.f32 %v4843_v31, %v773_v33 }
 0x9bb   :  { %777 = vrot.lane.b32.xlu0 %v775_v35, %s5099_s29 }
 0x9d1   :  { %v479_v36 = vpop.permute.xlu1 %478 }
 0x9d2   :  { %v481_v38 = vsel %vm161_vm1, %v479_v36, 0.0 }
 0x9d3   :  { %3964 = vmatmul.mubr.msk.f32.vlgmr.msra.gmra.mrb[2].mxu1 %vm271_vm2, %v481_v38 }
 0x9d4   :  { %4515 = vmatpush3.bf16.msra.mxu1 %v5237_v63  ;;  %4012 = vmatprep.mubr.msk.f32.mxu1 %vm5095_vm0, %v5096_v2 }
 0x9d5   :  { %4516 = vmatprep.subr.bf16.mxu1 %v5094_v1  ;;  %v792_v59 = vpop.permute.xlu1 %791 }
 0x9d8   :  { %4518 = vmatpush3.bf16.msra.mxu1 %v5240_v3 }
 0x9d9   :  { %4519 = vmatprep.subr.bf16.mxu1 %v5094_v1 }
 0x9dc   :  { %4521 = vmatpush3.bf16.msra.mxu1 %v5244_v6 }
 0x9dd   :  { %4522 = vmatprep.subr.bf16.mxu1 %v5094_v1 }
 0x9e0   :  { %4524 = vmatpush3.bf16.msra.mxu1 %v5249_v13 }
 0x9e1   :  { %4537 = vmatprep.subr.bf16.mxu1 %v5094_v1 }
 0xa2d   :  { %v778_v40 = vpop.permute.xlu0 %777 }
 0xa2e   :  { %v5349_v43 = vadd.f32 %v778_v40, %v770_v39 }
 0xa30   :  { %4844 = vtanh.f32 %v5349_v43 }
 0xa3a   :  { %v4845_v45 = vpop.eup %4844 }
 0xa3b   :  { %783 = vrot.lane.b32.xlu0 %v4845_v45, %s5098_s28 }
 0xaa6   :  { %v557_v47 = vpop.f32.mrb[2].mxu1 }
 0xaa7   :  { %v3965_v28 = vpop.f32.mrb[3].mxu1 }
 0xaad   :  { %v784_v48 = vpop.permute.xlu0 %783 }
 0xaae   :  { %v786_v49 = vmul.f32 %v4843_v31, %v784_v48 }
 0xab0   :  { %788 = vrot.lane.b32.xlu0 %v786_v49, %s5099_s29 }
 0xab4   :  { %63 = vperm.xlu0 %4804, %v44_v50  }
 0xb22   :  { %v789_v51 = vpop.permute.xlu0 %788 }
 0xb23   :  { %v794_v52 = vsel %vm161_vm1, %v789_v51, %v792_v59 }
 0xb24   :  { %4013 = vmatmul.mubr.msk.f32.vlgmr.msra.gmra.mrb[4].mxu1 %vm271_vm2, %v794_v52 }
 0xb25   :  { %4539 = vmatpush3.bf16.msra.mxu1 %v5170_v7  ;;  %4042 = vmatprep.mubr.msk.f32.mxu1 %vm5095_vm0, %v5096_v2 }
 0xb26   :  { %4540 = vmatprep.subr.bf16.mxu1 %v5094_v1 }
 0xb29   :  { %4542 = vmatpush3.bf16.msra.mxu1 %v5179_v10 }
 0xb2a   :  { %4543 = vmatprep.subr.bf16.mxu1 %v5094_v1 }
 0xb2c   :  { %4043 = vmatmul.mubr.msk.f32.vlgmr.msra.gmra.mrb[6].mxu1 %vm161_vm1, %v5295_v53 }
 0xb2d   :  { %4545 = vmatpush3.bf16.msra.mxu1 %v5204_v32  ;;  %4061 = vmatprep.mubr.msk.f32.mxu1 %vm5095_vm0, %v5096_v2 }
 0xb2e   :  { %4546 = vmatprep.subr.bf16.mxu1 %v5094_v1 }
 0xb31   :  { %4548 = vmatpush3.bf16.msra.mxu1 %v5207_v34 }
 0xb32   :  { %4549 = vmatprep.subr.bf16.mxu1 %v5094_v1 }
 0xb33   :  { %v64_v53 = vpop.permute.xlu0 %63 }
 0xb34   :  { %v99_v56 = vmul.f32 %v5190_v11, %v64_v53 }
 0xb35   :  { %4551 = vmatpush3.bf16.msra.mxu1 %v5211_v37 }
 0xb36   :  { %4552 = vmatprep.subr.bf16.mxu1 %v5094_v1  ;;  %v114_v57 = vadd.f32 %v5196_v14, %v99_v56 }
 0xb39   :  { %4554 = vmatpush3.bf16.msra.mxu1 %v5216_v41 }
 0xb3a   :  { %4567 = vmatprep.subr.bf16.mxu1 %v5094_v1 }
 0xbf7   :  { %v864_v54 = vpop.f32.mrb[4].mxu1 }
 0xbf8   :  { %v4014_v55 = vpop.f32.mrb[5].mxu1  ;;  %v865_v22 = vadd.f32 %v5290_v44, %v864_v54 }
 0xbfa   :  { %v3584_v28 = vmul.f32 -1.442695, %v865_v22 }
 0xbff   :  { %v1066_v58 = vpop.f32.mrb[6].mxu1 }
 0xc00   :  { %v1070_v60 = vadd.f32 %v1066_v58, %v114_v57  ;;  %v4044_v62 = vpop.f32.mrb[7].mxu1 }
 0xc02   :  { %4846 = vtanh.f32 %v1070_v60  ;;  %v3588_v4 = vmul.f32 -1.442695, %v1070_v60 }
 0xc04   :  { %4848 = vpow2.f32 %v3588_v4 }
 0xc0c   :  { %v4847_v0 = vpop.eup %4846 }
 0xc0d   :  { %1080 = vrot.lane.b32.xlu1 %v4847_v0, %s5098_s28 }
 0xc0e   :  { %v4849_v5 = vpop.eup %4848 }
 0xc0f   :  { %v1074_v8 = vadd.f32 1.0, %v4849_v5 }
 0xc11   :  { %4850 = vrcp.f32 %v1074_v8 }
 0xc1b   :  { %v4851_v9 = vpop.eup %4850 }
 0xc1c   :  { %v1078_v18 = vmul.f32 %v4851_v9, %v5282_v42  ;;  %v5392_v42 = vld [vmem:[%s5971_s4 + $0x3] ss:$0 sm:$0xff] }
 0xc1d   :  { %v558_v26 = vadd.f32 %v5392_v42, %v557_v47 }
 0xc1f   :  { %v3578_v31 = vmul.f32 -1.442695, %v558_v26 }
 0xc7f   :  { %v1081_v12 = vpop.permute.xlu1 %1080 }
 0xc80   :  { %v1083_v16 = vmul.f32 %v4851_v9, %v1081_v12 }
 0xc82   :  { %1085 = vrot.lane.b32.xlu0 %v1083_v16, %s5099_s29 }
 0xcf4   :  { %v1086_v19 = vpop.permute.xlu0 %1085 }
 0xcf5   :  { %v5382_v21 = vadd.f32 %v1086_v19, %v1078_v18 }
 0xcf7   :  { %4852 = vtanh.f32 %v5382_v21 }
 0xcf8   :  { %4854 = vtanh.f32 %v865_v22 }
 0xcf9   :  { %4856 = vtanh.f32 %v558_v26 }
 0xcfa   :  { %4858 = vpow2.f32 %v3578_v31 }
 0xd01   :  { %v4853_v23 = vpop.eup %4852 }
 0xd02   :  { %1091 = vrot.lane.b32.xlu1 %v4853_v23, %s5098_s28  ;;  %v4855_v25 = vpop.eup %4854 }
 0xd03   :  { %v4857_v30 = vpop.eup %4856 }
 0xd04   :  { %v4859_v33 = vpop.eup %4858 }
 0xd05   :  { %v564_v35 = vadd.f32 1.0, %v4859_v33 }
 0xd06   :  { %1099 = vrot.lane.b32.xlu1 %v786_v49, %s5098_s28 }
 0xd07   :  { %4860 = vrcp.f32 %v564_v35 }
 0xd08   :  { %4862 = vpow2.f32 %v3584_v28 }
 0xd0a   :  { %877 = vrot.lane.b32.xlu1 %v4855_v25, %s5098_s28 }
 0xd11   :  { %v4861_v40 = vpop.eup %4860 }
 0xd12   :  { %v4863_v48 = vpop.eup %4862  ;;  %v568_v54 = vmul.f32 0.0, %v4861_v40 }
 0xd13   :  { %v871_v59 = vadd.f32 1.0, %v4863_v48 }
 0xd74   :  { %v1092_v27 = vpop.permute.xlu1 %1091 }
 0xd75   :  { %v1094_v29 = vmul.f32 %v4851_v9, %v1092_v27 }
 0xd77   :  { %1096 = vrot.lane.b32.xlu0 %v1094_v29, %s5099_s29 }
 0xd78   :  { %v1100_v36 = vpop.permute.xlu1 %1099 }
 0xd7b   :  { %570 = vrot.lane.b32.xlu0 %v4857_v30, %s5098_s28 }
 0xd7c   :  { %v878_v49 = vpop.permute.xlu1 %877 }
 0xde9   :  { %v5397_v38 = vpop.permute.xlu0 %1096 }
 0xdea   :  { %v1102_v39 = vsel %vm161_vm1, %v5397_v38, %v1100_v36  ;;  %v45_v36 = vld [vmem:[%s5967_s0 + $0x18] sm:$0xff] }
 0xdeb   :  { %4062 = vmatmul.mubr.msk.f32.vlgmr.msra.gmra.mrb[8].mxu1 %vm271_vm2, %v1102_v39 }
 0xdec   :  { %4569 = vmatpush3.bf16.msra.mxu1 %v5308_v15  ;;  %4099 = vmatprep.mubr.msk.f32.mxu1 %vm5095_vm0, %v5096_v2 }
 0xded   :  { %v571_v45 = vpop.permute.xlu0 %570  ;;  %4570 = vmatprep.subr.bf16.mxu1 %v5094_v1 }
 0xdee   :  { %v573_v47 = vmul.f32 %v4861_v40, %v571_v45 }
 0xdf0   :  { %575 = vrot.lane.b32.xlu1 %v573_v47, %s5099_s29  ;;  %4572 = vmatpush3.bf16.msra.mxu1 %v5311_v17 }
 0xdf1   :  { %4573 = vmatprep.subr.bf16.mxu1 %v5094_v1 }
 0xdf4   :  { %4575 = vmatpush3.bf16.msra.mxu1 %v5317_v20 }
 0xdf5   :  { %4576 = vmatprep.subr.bf16.mxu1 %v5094_v1 }
 0xdf8   :  { %4578 = vmatpush3.bf16.msra.mxu1 %v5324_v24 }
 0xdf9   :  { %4597 = vmatprep.subr.bf16.mxu1 %v5094_v1 }
 0xe62   :  { %v576_v53 = vpop.permute.xlu1 %575 }
 0xe63   :  { %v5414_v55 = vadd.f32 %v576_v53, %v568_v54 }
 0xebe   :  { %v1172_v50 = vpop.f32.mrb[8].mxu1 }
 0xebf   :  { %v1173_v51 = vadd.f32 %v5229_v46, %v1172_v50  ;;  %v4063_v52 = vpop.f32.mrb[9].mxu1 }
 0xec1   :  { %4864 = vtanh.f32 %v1173_v51  ;;  %v3590_v62 = vmul.f32 -1.442695, %v1173_v51 }
 0xec2   :  { %4866 = vrcp.f32 %v871_v59 }
 0xec3   :  { %4868 = vtanh.f32 %v5414_v55 }
 0xec4   :  { %4870 = vpow2.f32 %v3590_v62 }
 0xecb   :  { %v4865_v56 = vpop.eup %4864 }
 0xecc   :  { %1185 = vrot.lane.b32.xlu0 %v4865_v56, %s5098_s28  ;;  %v4867_v57 = vpop.eup %4866 }
 0xecd   :  { %v880_v58 = vmul.f32 %v4867_v57, %v878_v49  ;;  %v4869_v60 = vpop.eup %4868  ;;  %v875_v12 = vmul.f32 %v4867_v57, %v5303_v61 }
 0xece   :  { %v4871_v0 = vpop.eup %4870 }
 0xecf   :  { %v1179_v4 = vadd.f32 1.0, %v4871_v0 }
 0xed0   :  { %882 = vrot.lane.b32.xlu0 %v880_v58, %s5099_s29 }
 0xed1   :  { %4872 = vrcp.f32 %v1179_v4 }
 0xed4   :  { %581 = vrot.lane.b32.xlu0 %v4869_v60, %s5098_s28 }
 0xedb   :  { %v4873_v5 = vpop.eup %4872 }
 0xedc   :  { %v1183_v22 = vmul.f32 %v4873_v5, %v5349_v43 }
 0xf3e   :  { %v1186_v8 = vpop.permute.xlu0 %1185 }
 0xf3f   :  { %v1188_v9 = vmul.f32 %v4873_v5, %v1186_v8 }
 0xf41   :  { %1190 = vrot.lane.b32.xlu1 %v1188_v9, %s5099_s29 }
 0xf42   :  { %v883_v16 = vpop.permute.xlu0 %882 }
 0xf43   :  { %v5422_v18 = vadd.f32 %v883_v16, %v875_v12 }
 0xf45   :  { %4874 = vtanh.f32 %v5422_v18 }
 0xf46   :  { %v582_v27 = vpop.permute.xlu0 %581 }
 0xf47   :  { %v584_v29 = vmul.f32 %v4861_v40, %v582_v27 }
 0xf4f   :  { %v4875_v19 = vpop.eup %4874 }
 0xf50   :  { %888 = vrot.lane.b32.xlu1 %v4875_v19, %s5098_s28 }
 0xfb3   :  { %v1191_v23 = vpop.permute.xlu1 %1190 }
 0xfb4   :  { %v5427_v25 = vadd.f32 %v1191_v23, %v1183_v22 }
 0xfb6   :  { %4876 = vtanh.f32 %v5427_v25 }
 0xfc0   :  { %v4877_v26 = vpop.eup %4876 }
 0xfc1   :  { %1196 = vrot.lane.b32.xlu0 %v4877_v26, %s5098_s28 }
 0xfc2   :  { %v889_v61 = vpop.permute.xlu1 %888 }
 0xfc3   :  { %v891_v30 = vmul.f32 %v4867_v57, %v889_v61 }
 0xfc5   :  { %893 = vrot.lane.b32.xlu1 %v891_v30, %s5099_s29  ;;  %897 = vrot.lane.b32.xlu0 %v584_v29, %s5098_s28 }
 0xfc9   :  { %1204 = vrot.lane.b32.xlu0 %v891_v30, %s5098_s28 }
0x1033   :  { %v1197_v31 = vpop.permute.xlu0 %1196 }
0x1034   :  { %v5434_v43 = vmul.f32 %v4873_v5, %v1197_v31 }
0x1036   :  { %1201 = vrot.lane.b32.xlu1 %v5434_v43, %s5099_s29 }
0x1037   :  { %v894_v33 = vpop.permute.xlu1 %893  ;;  %v898_v35 = vpop.permute.xlu0 %897 }
0x1038   :  { %v900_v39 = vsel %vm161_vm1, %v894_v33, %v898_v35 }
0x1039   :  { %4032 = vmatmul.mubr.msk.f32.vlgmr.msra.gmra.mrb[8].mxu0 %vm271_vm2, %v900_v39 }
0x103a   :  { %68 = vperm.xlu1 %4805, %v45_v36   ;;  %4557 = vmatpush3.bf16.msra.mxu0 %v5237_v63 }
0x103b   :  { %4558 = vmatprep.subr.bf16.mxu0 %v5094_v1  ;;  %4080 = vmatprep.mubr.msk.f32.mxu0 %vm5095_vm0, %v5096_v2  ;;  %v1205_v40 = vpop.permute.xlu0 %1204 }
0x103e   :  { %4560 = vmatpush3.bf16.msra.mxu0 %v5240_v3 }
0x103f   :  { %4561 = vmatprep.subr.bf16.mxu0 %v5094_v1 }
0x1042   :  { %4563 = vmatpush3.bf16.msra.mxu0 %v5244_v6 }
0x1043   :  { %4564 = vmatprep.subr.bf16.mxu0 %v5094_v1 }
0x1046   :  { %4566 = vmatpush3.bf16.msra.mxu0 %v5249_v13 }
0x1047   :  { %4579 = vmatprep.subr.bf16.mxu0 %v5094_v1 }
0x10a8   :  { %v1202_v45 = vpop.permute.xlu1 %1201 }
0x10a9   :  { %v1207_v47 = vsel %vm161_vm1, %v1202_v45, %v1205_v40 }
0x10aa   :  { %4081 = vmatmul.mubr.msk.f32.vlgmr.msra.gmra.mrb[10].mxu0 %vm271_vm2, %v1207_v47 }
0x10ab   :  { %4581 = vmatpush3.bf16.msra.mxu0 %v5170_v7  ;;  %4110 = vmatprep.mubr.msk.f32.mxu0 %vm5095_vm0, %v5096_v2 }
0x10ac   :  { %4582 = vmatprep.subr.bf16.mxu0 %v5094_v1 }
0x10af   :  { %4584 = vmatpush3.bf16.msra.mxu0 %v5179_v10 }
0x10b0   :  { %4585 = vmatprep.subr.bf16.mxu0 %v5094_v1 }
0x10b2   :  { %4111 = vmatmul.mubr.msk.f32.vlgmr.msra.gmra.mrb[12].mxu0 %vm161_vm1, %v5397_v38 }
0x10b3   :  { %4587 = vmatpush3.bf16.msra.mxu0 %v5204_v32  ;;  %4129 = vmatprep.mubr.msk.f32.mxu0 %vm5095_vm0, %v5096_v2 }
0x10b4   :  { %4588 = vmatprep.subr.bf16.mxu0 %v5094_v1 }
0x10b7   :  { %4590 = vmatpush3.bf16.msra.mxu0 %v5207_v34 }
0x10b8   :  { %4591 = vmatprep.subr.bf16.mxu0 %v5094_v1 }
0x10b9   :  { %v69_v48 = vpop.permute.xlu1 %68 }
0x10ba   :  { %v100_v59 = vmul.f32 %v5190_v11, %v69_v48 }
0x10bb   :  { %4593 = vmatpush3.bf16.msra.mxu0 %v5211_v37 }
0x10bc   :  { %4594 = vmatprep.subr.bf16.mxu0 %v5094_v1  ;;  %v115_v51 = vadd.f32 %v5196_v14, %v100_v59 }
0x10bf   :  { %4596 = vmatpush3.bf16.msra.mxu0 %v5216_v41 }
0x10c0   :  { %4609 = vmatprep.subr.bf16.mxu0 %v5094_v1 }
0x110c   :  { %v970_v38 = vpop.f32.mrb[8].mxu0 }
0x110d   :  { %v4033_v28 = vpop.f32.mrb[9].mxu0  ;;  %v971_v16 = vadd.f32 %v5392_v42, %v970_v38 }
0x110f   :  { %v3586_v23 = vmul.f32 -1.442695, %v971_v16 }
0x117d   :  { %v1277_v49 = vpop.f32.mrb[10].mxu0 }
0x117e   :  { %v4082_v50 = vpop.f32.mrb[11].mxu0  ;;  %v1278_v8 = vadd.f32 %v5290_v44, %v1277_v49 }
0x1180   :  { %v3592_v35 = vmul.f32 -1.442695, %v1278_v8 }
0x1185   :  { %v1479_v52 = vpop.f32.mrb[12].mxu0 }
0x1186   :  { %v1483_v53 = vadd.f32 %v1479_v52, %v115_v51  ;;  %v4112_v54 = vpop.f32.mrb[13].mxu0 }
0x1188   :  { %4878 = vtanh.f32 %v1483_v53  ;;  %v3596_v57 = vmul.f32 -1.442695, %v1483_v53 }
0x118a   :  { %4880 = vpow2.f32 %v3596_v57 }
0x1192   :  { %v4879_v56 = vpop.eup %4878 }
0x1193   :  { %1493 = vrot.lane.b32.xlu0 %v4879_v56, %s5098_s28 }
0x1194   :  { %v4881_v58 = vpop.eup %4880 }
0x1195   :  { %v1487_v60 = vadd.f32 1.0, %v4881_v58 }
0x1197   :  { %4882 = vrcp.f32 %v1487_v60 }
0x11a1   :  { %v4883_v62 = vpop.eup %4882 }
0x11a2   :  { %v1491_v11 = vmul.f32 %v4883_v62, %v5382_v21 }
0x1205   :  { %v1494_v0 = vpop.permute.xlu0 %1493 }
0x1206   :  { %v1496_v4 = vmul.f32 %v4883_v62, %v1494_v0 }
0x1208   :  { %1498 = vrot.lane.b32.xlu1 %v1496_v4, %s5099_s29 }
0x127a   :  { %v1499_v14 = vpop.permute.xlu1 %1498 }
0x127b   :  { %v5478_v5 = vadd.f32 %v1499_v14, %v1491_v11 }
0x127d   :  { %4884 = vtanh.f32 %v5478_v5 }
0x127e   :  { %4886 = vtanh.f32 %v1278_v8 }
0x127f   :  { %4888 = vtanh.f32 %v971_v16 }
0x1280   :  { %4890 = vpow2.f32 %v3586_v23  ;;  %v46_v23 = vld [vmem:[%s5967_s0 + $0x20] sm:$0xff] }
0x1287   :  { %v4885_v9 = vpop.eup %4884 }
0x1288   :  { %1504 = vrot.lane.b32.xlu0 %v4885_v9, %s5098_s28  ;;  %v4887_v12 = vpop.eup %4886 }
0x1289   :  { %v4889_v22 = vpop.eup %4888 }
0x128a   :  { %v4891_v26 = vpop.eup %4890 }
0x128b   :  { %v977_v27 = vadd.f32 1.0, %v4891_v26 }
0x128c   :  { %1512 = vrot.lane.b32.xlu0 %v5434_v43, %s5098_s28 }
0x128d   :  { %4892 = vrcp.f32 %v977_v27 }
0x128e   :  { %4894 = vpow2.f32 %v3592_v35 }
0x1290   :  { %1290 = vrot.lane.b32.xlu0 %v4887_v12, %s5098_s28 }
0x1297   :  { %v4893_v31 = vpop.eup %4892 }
0x1298   :  { %v4895_v36 = vpop.eup %4894  ;;  %v981_v48 = vmul.f32 %v4893_v31, %v5414_v55 }
0x1299   :  { %v1284_v45 = vadd.f32 1.0, %v4895_v36  ;;  %v5569_v36 = vld [vmem:[%s5968_s1] ss:$0 sm:$0xff] }
0x12fa   :  { %v1505_v21 = vpop.permute.xlu0 %1504 }
0x12fb   :  { %v1507_v19 = vmul.f32 %v4883_v62, %v1505_v21 }
0x12fd   :  { %1509 = vrot.lane.b32.xlu1 %v1507_v19, %s5099_s29 }
0x12fe   :  { %v1513_v61 = vpop.permute.xlu0 %1512 }
0x1301   :  { %983 = vrot.lane.b32.xlu1 %v4889_v22, %s5098_s28 }
0x1302   :  { %v1291_v39 = vpop.permute.xlu0 %1290 }
0x136f   :  { %v5489_v29 = vpop.permute.xlu1 %1509 }
0x1370   :  { %v1515_v30 = vsel %vm161_vm1, %v5489_v29, %v1513_v61 }
0x1371   :  { %4130 = vmatmul.mubr.msk.f32.vlgmr.msra.gmra.mrb[14].mxu0 %vm271_vm2, %v1515_v30 }
0x1372   :  { %4611 = vmatpush3.bf16.msra.mxu0 %v5308_v15  ;;  %4167 = vmatprep.mubr.msk.f32.mxu0 %vm5095_vm0, %v5096_v2 }
0x1373   :  { %v984_v43 = vpop.permute.xlu1 %983  ;;  %4612 = vmatprep.subr.bf16.mxu0 %v5094_v1 }
0x1374   :  { %v986_v33 = vmul.f32 %v4893_v31, %v984_v43 }
0x1376   :  { %988 = vrot.lane.b32.xlu0 %v986_v33, %s5099_s29  ;;  %4614 = vmatpush3.bf16.msra.mxu0 %v5311_v17 }
0x1377   :  { %4615 = vmatprep.subr.bf16.mxu0 %v5094_v1 }
0x137a   :  { %4617 = vmatpush3.bf16.msra.mxu0 %v5317_v20 }
0x137b   :  { %4618 = vmatprep.subr.bf16.mxu0 %v5094_v1 }
0x137e   :  { %4620 = vmatpush3.bf16.msra.mxu0 %v5324_v24 }
0x137f   :  { %4639 = vmatprep.subr.bf16.mxu0 %v5094_v1 }
0x13e8   :  { %v989_v28 = vpop.permute.xlu0 %988 }
0x13e9   :  { %v5507_v49 = vadd.f32 %v989_v28, %v981_v48 }
0x1444   :  { %v1585_v40 = vpop.f32.mrb[14].mxu0 }
0x1445   :  { %v1586_v47 = vadd.f32 %v5229_v46, %v1585_v40  ;;  %v4131_v38 = vpop.f32.mrb[15].mxu0  ;;  %v5575_v40 = vld [vmem:[%s5971_s4] ss:$0 sm:$0xff] }
0x1447   :  { %4896 = vtanh.f32 %v1586_v47  ;;  %v3598_v46 = vmul.f32 -1.442695, %v1586_v47 }
0x1448   :  { %4898 = vrcp.f32 %v1284_v45 }
0x1449   :  { %4900 = vtanh.f32 %v5507_v49 }
0x144a   :  { %4902 = vpow2.f32 %v3598_v46 }
0x1451   :  { %v4897_v50 = vpop.eup %4896 }
0x1452   :  { %1598 = vrot.lane.b32.xlu1 %v4897_v50, %s5098_s28  ;;  %v4899_v59 = vpop.eup %4898 }
0x1453   :  { %v1293_v51 = vmul.f32 %v4899_v59, %v1291_v39  ;;  %v4901_v52 = vpop.eup %4900  ;;  %v1288_v58 = vmul.f32 %v4899_v59, %v5422_v18 }
0x1454   :  { %v4903_v53 = vpop.eup %4902 }
0x1455   :  { %v1592_v54 = vadd.f32 1.0, %v4903_v53 }
0x1456   :  { %1295 = vrot.lane.b32.xlu1 %v1293_v51, %s5099_s29 }
0x1457   :  { %4904 = vrcp.f32 %v1592_v54 }
0x145a   :  { %994 = vrot.lane.b32.xlu1 %v4901_v52, %s5098_s28 }
0x1461   :  { %v4905_v55 = vpop.eup %4904 }
0x1462   :  { %v1596_v4 = vmul.f32 %v4905_v55, %v5427_v25 }
0x14c4   :  { %v1599_v56 = vpop.permute.xlu1 %1598 }
0x14c5   :  { %v1601_v57 = vmul.f32 %v4905_v55, %v1599_v56 }
0x14c7   :  { %1603 = vrot.lane.b32.xlu0 %v1601_v57, %s5099_s29 }
0x14c8   :  { %v1296_v60 = vpop.permute.xlu1 %1295 }
0x14c9   :  { %v5515_v62 = vadd.f32 %v1296_v60, %v1288_v58 }
0x14cb   :  { %4906 = vtanh.f32 %v5515_v62 }
0x14cc   :  { %v995_v9 = vpop.permute.xlu1 %994 }
0x14cd   :  { %v997_v12 = vmul.f32 %v4893_v31, %v995_v9 }
0x14d5   :  { %v4907_v0 = vpop.eup %4906 }
0x14d6   :  { %1301 = vrot.lane.b32.xlu0 %v4907_v0, %s5098_s28 }
0x1539   :  { %v1604_v11 = vpop.permute.xlu0 %1603 }
0x153a   :  { %v5520_v14 = vadd.f32 %v1604_v11, %v1596_v4 }
0x153c   :  { %4908 = vtanh.f32 %v5520_v14 }
0x1546   :  { %v4909_v8 = vpop.eup %4908 }
0x1547   :  { %1609 = vrot.lane.b32.xlu1 %v4909_v8, %s5098_s28 }
0x1548   :  { %v1302_v18 = vpop.permute.xlu0 %1301 }
0x1549   :  { %v1304_v16 = vmul.f32 %v4899_v59, %v1302_v18 }
0x154b   :  { %1306 = vrot.lane.b32.xlu0 %v1304_v16, %s5099_s29  ;;  %1310 = vrot.lane.b32.xlu1 %v997_v12, %s5098_s28 }
0x154f   :  { %1617 = vrot.lane.b32.xlu1 %v1304_v16, %s5098_s28 }
0x15b9   :  { %v1610_v21 = vpop.permute.xlu1 %1609 }
0x15ba   :  { %v5527_v25 = vmul.f32 %v4905_v55, %v1610_v21 }
0x15bc   :  { %1614 = vrot.lane.b32.xlu0 %v5527_v25, %s5099_s29 }
0x15bd   :  { %v1307_v19 = vpop.permute.xlu0 %1306  ;;  %v1311_v22 = vpop.permute.xlu1 %1310 }
0x15be   :  { %v1313_v26 = vsel %vm161_vm1, %v1307_v19, %v1311_v22 }
0x15bf   :  { %4100 = vmatmul.mubr.msk.f32.vlgmr.msra.gmra.mrb[10].mxu1 %vm271_vm2, %v1313_v26 }
0x15c0   :  { %73 = vperm.xlu0 %4804, %v46_v23   ;;  %4599 = vmatpush3.bf16.msra.mxu1 %v5237_v63 }
0x15c1   :  { %4600 = vmatprep.subr.bf16.mxu1 %v5094_v1  ;;  %4148 = vmatprep.mubr.msk.f32.mxu1 %vm5095_vm0, %v5096_v2  ;;  %v1618_v27 = vpop.permute.xlu1 %1617 }
0x15c4   :  { %4602 = vmatpush3.bf16.msra.mxu1 %v5240_v3 }
0x15c5   :  { %4603 = vmatprep.subr.bf16.mxu1 %v5094_v1 }
0x15c8   :  { %4605 = vmatpush3.bf16.msra.mxu1 %v5244_v6 }
0x15c9   :  { %4606 = vmatprep.subr.bf16.mxu1 %v5094_v1 }
0x15cc   :  { %4608 = vmatpush3.bf16.msra.mxu1 %v5249_v13 }
0x15cd   :  { %4621 = vmatprep.subr.bf16.mxu1 %v5094_v1 }
0x162e   :  { %v1615_v61 = vpop.permute.xlu0 %1614 }
0x162f   :  { %v1620_v30 = vsel %vm161_vm1, %v1615_v61, %v1618_v27 }
0x1630   :  { %4149 = vmatmul.mubr.msk.f32.vlgmr.msra.gmra.mrb[12].mxu1 %vm271_vm2, %v1620_v30  ;;  %v5611_v30 = vld [vmem:[%s5971_s4 + $0x1] ss:$0 sm:$0xff] }
0x1631   :  { %4623 = vmatpush3.bf16.msra.mxu1 %v5170_v7  ;;  %4178 = vmatprep.mubr.msk.f32.mxu1 %vm5095_vm0, %v5096_v2 }
0x1632   :  { %4624 = vmatprep.subr.bf16.mxu1 %v5094_v1 }
0x1635   :  { %4626 = vmatpush3.bf16.msra.mxu1 %v5179_v10 }
0x1636   :  { %4627 = vmatprep.subr.bf16.mxu1 %v5094_v1 }
0x1638   :  { %4179 = vmatmul.mubr.msk.f32.vlgmr.msra.gmra.mrb[14].mxu1 %vm161_vm1, %v5489_v29 }
0x1639   :  { %4629 = vmatpush3.bf16.msra.mxu1 %v5204_v32  ;;  %4197 = vmatprep.mubr.msk.f32.mxu1 %vm5095_vm0, %v5096_v2 }
0x163a   :  { %4630 = vmatprep.subr.bf16.mxu1 %v5094_v1 }
0x163d   :  { %4632 = vmatpush3.bf16.msra.mxu1 %v5207_v34 }
0x163e   :  { %4633 = vmatprep.subr.bf16.mxu1 %v5094_v1 }
0x163f   :  { %v74_v43 = vpop.permute.xlu0 %73 }
0x1640   :  { %v101_v39 = vmul.f32 %v5569_v36, %v74_v43 }
0x1641   :  { %4635 = vmatpush3.bf16.msra.mxu1 %v5211_v37 }
0x1642   :  { %4636 = vmatprep.subr.bf16.mxu1 %v5094_v1  ;;  %v116_v45 = vadd.f32 %v5575_v40, %v101_v39 }
0x1645   :  { %4638 = vmatpush3.bf16.msra.mxu1 %v5216_v41 }
0x1646   :  { %4651 = vmatprep.subr.bf16.mxu1 %v5094_v1 }
0x1692   :  { %v1383_v29 = vpop.f32.mrb[10].mxu1 }
0x1693   :  { %v4101_v31 = vpop.f32.mrb[11].mxu1  ;;  %v1384_v0 = vadd.f32 %v5392_v42, %v1383_v29 }
0x1703   :  { %v1690_v33 = vpop.f32.mrb[12].mxu1 }
0x1704   :  { %v4150_v35 = vpop.f32.mrb[13].mxu1  ;;  %v1691_v57 = vadd.f32 %v5290_v44, %v1690_v33  ;;  %v3594_v44 = vmul.f32 -1.442695, %v1384_v0 }
0x1706   :  { %v3600_v22 = vmul.f32 -1.442695, %v1691_v57 }
0x170b   :  { %v1892_v47 = vpop.f32.mrb[14].mxu1 }
0x170c   :  { %v1896_v38 = vadd.f32 %v1892_v47, %v116_v45  ;;  %v4180_v28 = vpop.f32.mrb[15].mxu1 }
0x170e   :  { %4910 = vtanh.f32 %v1896_v38  ;;  %v3604_v50 = vmul.f32 -1.442695, %v1896_v38 }
0x1710   :  { %4912 = vpow2.f32 %v3604_v50 }
0x1718   :  { %v4911_v48 = vpop.eup %4910 }
0x1719   :  { %1906 = vrot.lane.b32.xlu1 %v4911_v48, %s5098_s28 }
0x171a   :  { %v4913_v59 = vpop.eup %4912 }
0x171b   :  { %v1900_v51 = vadd.f32 1.0, %v4913_v59 }
0x171d   :  { %4914 = vrcp.f32 %v1900_v51 }
0x1727   :  { %v4915_v52 = vpop.eup %4914 }
0x1728   :  { %v1904_v54 = vmul.f32 %v4915_v52, %v5478_v5 }
0x178b   :  { %v1907_v46 = vpop.permute.xlu1 %1906 }
0x178c   :  { %v1909_v53 = vmul.f32 %v4915_v52, %v1907_v46 }
0x178e   :  { %1911 = vrot.lane.b32.xlu0 %v1909_v53, %s5099_s29 }
0x1800   :  { %v1912_v55 = vpop.permute.xlu0 %1911 }
0x1801   :  { %v5581_v56 = vadd.f32 %v1912_v55, %v1904_v54 }
0x1803   :  { %4916 = vtanh.f32 %v5581_v56 }
0x1804   :  { %4918 = vtanh.f32 %v1691_v57 }
0x1805   :  { %4920 = vtanh.f32 %v1384_v0 }
0x1806   :  { %4922 = vpow2.f32 %v3594_v44 }
0x180d   :  { %v4917_v58 = vpop.eup %4916 }
0x180e   :  { %1917 = vrot.lane.b32.xlu1 %v4917_v58, %s5098_s28  ;;  %v4919_v60 = vpop.eup %4918 }
0x180f   :  { %v4921_v11 = vpop.eup %4920 }
0x1810   :  { %v4923_v8 = vpop.eup %4922 }
0x1811   :  { %v1390_v9 = vadd.f32 1.0, %v4923_v8 }
0x1812   :  { %1925 = vrot.lane.b32.xlu1 %v5527_v25, %s5098_s28 }
0x1813   :  { %4924 = vrcp.f32 %v1390_v9  ;;  %v47_v9 = vld [vmem:[%s5967_s0 + $0x28] sm:$0xff] }
0x1814   :  { %4926 = vpow2.f32 %v3600_v22 }
0x1816   :  { %1703 = vrot.lane.b32.xlu1 %v4919_v60, %s5098_s28 }
0x181d   :  { %v4925_v21 = vpop.eup %4924 }
0x181e   :  { %v4927_v23 = vpop.eup %4926  ;;  %v1394_v33 = vmul.f32 %v4925_v21, %v5507_v49 }
0x181f   :  { %v1697_v61 = vadd.f32 1.0, %v4927_v23 }
0x1880   :  { %v1918_v5 = vpop.permute.xlu1 %1917 }
0x1881   :  { %v1920_v4 = vmul.f32 %v4915_v52, %v1918_v5 }
0x1883   :  { %1922 = vrot.lane.b32.xlu0 %v1920_v4, %s5099_s29 }
0x1884   :  { %v1926_v18 = vpop.permute.xlu1 %1925 }
0x1887   :  { %1396 = vrot.lane.b32.xlu0 %v4921_v11, %s5098_s28 }
0x1888   :  { %v1704_v26 = vpop.permute.xlu1 %1703 }
0x18f5   :  { %v5592_v12 = vpop.permute.xlu0 %1922 }
0x18f6   :  { %v1928_v16 = vsel %vm161_vm1, %v5592_v12, %v1926_v18 }
0x18f7   :  { %4198 = vmatmul.mubr.msk.f32.vlgmr.msra.gmra.mrb[16].mxu1 %vm271_vm2, %v1928_v16 }
0x18f8   :  { %4653 = vmatpush3.bf16.msra.mxu1 %v5308_v15  ;;  %4235 = vmatprep.mubr.msk.f32.mxu1 %vm5095_vm0, %v5096_v2 }
0x18f9   :  { %v1397_v25 = vpop.permute.xlu0 %1396  ;;  %4654 = vmatprep.subr.bf16.mxu1 %v5094_v1 }
0x18fa   :  { %v1399_v19 = vmul.f32 %v4925_v21, %v1397_v25 }
0x18fc   :  { %1401 = vrot.lane.b32.xlu1 %v1399_v19, %s5099_s29  ;;  %4656 = vmatpush3.bf16.msra.mxu1 %v5311_v17 }
0x18fd   :  { %4657 = vmatprep.subr.bf16.mxu1 %v5094_v1 }
0x1900   :  { %4659 = vmatpush3.bf16.msra.mxu1 %v5317_v20 }
0x1901   :  { %4660 = vmatprep.subr.bf16.mxu1 %v5094_v1 }
0x1904   :  { %4662 = vmatpush3.bf16.msra.mxu1 %v5324_v24 }
0x1905   :  { %4681 = vmatprep.subr.bf16.mxu1 %v5094_v1 }
0x196e   :  { %v1402_v43 = vpop.permute.xlu1 %1401 }
0x196f   :  { %v5615_v35 = vadd.f32 %v1402_v43, %v1394_v33 }
0x19ca   :  { %v1998_v27 = vpop.f32.mrb[16].mxu1 }
0x19cb   :  { %v1999_v29 = vadd.f32 %v5611_v30, %v1998_v27  ;;  %v4199_v31 = vpop.f32.mrb[17].mxu1 }
0x19cd   :  { %4928 = vtanh.f32 %v1999_v29  ;;  %v3606_v28 = vmul.f32 -1.442695, %v1999_v29 }
0x19ce   :  { %4930 = vrcp.f32 %v1697_v61 }
0x19cf   :  { %4932 = vtanh.f32 %v5615_v35 }
0x19d0   :  { %4934 = vpow2.f32 %v3606_v28 }
0x19d7   :  { %v4929_v39 = vpop.eup %4928 }
0x19d8   :  { %2011 = vrot.lane.b32.xlu0 %v4929_v39, %s5098_s28  ;;  %v4931_v45 = vpop.eup %4930 }
0x19d9   :  { %v1706_v47 = vmul.f32 %v4931_v45, %v1704_v26  ;;  %v4933_v38 = vpop.eup %4932  ;;  %v1701_v52 = vmul.f32 %v4931_v45, %v5515_v62 }
0x19da   :  { %v4935_v48 = vpop.eup %4934 }
0x19db   :  { %v2005_v50 = vadd.f32 1.0, %v4935_v48 }
0x19dc   :  { %1708 = vrot.lane.b32.xlu0 %v1706_v47, %s5099_s29 }
0x19dd   :  { %4936 = vrcp.f32 %v2005_v50 }
0x19e0   :  { %1407 = vrot.lane.b32.xlu0 %v4933_v38, %s5098_s28 }
0x19e7   :  { %v4937_v49 = vpop.eup %4936 }
0x19e8   :  { %v2009_v55 = vmul.f32 %v4937_v49, %v5520_v14 }
0x1a4a   :  { %v2012_v59 = vpop.permute.xlu0 %2011 }
0x1a4b   :  { %v2014_v51 = vmul.f32 %v4937_v49, %v2012_v59 }
0x1a4d   :  { %2016 = vrot.lane.b32.xlu1 %v2014_v51, %s5099_s29  ;;  %v5685_v51 = vld [vmem:[%s5971_s4 + $0x2] ss:$0 sm:$0xff] }
0x1a4e   :  { %v1709_v46 = vpop.permute.xlu0 %1708 }
0x1a4f   :  { %v5623_v53 = vadd.f32 %v1709_v46, %v1701_v52 }
0x1a51   :  { %4938 = vtanh.f32 %v5623_v53 }
0x1a52   :  { %v1408_v0 = vpop.permute.xlu0 %1407 }
0x1a53   :  { %v1410_v5 = vmul.f32 %v4925_v21, %v1408_v0 }
0x1a5b   :  { %v4939_v54 = vpop.eup %4938 }
0x1a5c   :  { %1714 = vrot.lane.b32.xlu1 %v4939_v54, %s5098_s28 }
0x1abf   :  { %v2017_v57 = vpop.permute.xlu1 %2016 }
0x1ac0   :  { %v5628_v58 = vadd.f32 %v2017_v57, %v2009_v55 }
0x1ac2   :  { %4940 = vtanh.f32 %v5628_v58 }
0x1acc   :  { %v4941_v60 = vpop.eup %4940 }
0x1acd   :  { %2022 = vrot.lane.b32.xlu0 %v4941_v60, %s5098_s28 }
0x1ace   :  { %v1715_v62 = vpop.permute.xlu1 %1714 }
0x1acf   :  { %v1717_v4 = vmul.f32 %v4931_v45, %v1715_v62 }
0x1ad1   :  { %1719 = vrot.lane.b32.xlu1 %v1717_v4, %s5099_s29  ;;  %1723 = vrot.lane.b32.xlu0 %v1410_v5, %s5098_s28 }
0x1ad5   :  { %2030 = vrot.lane.b32.xlu0 %v1717_v4, %s5098_s28 }
0x1b3f   :  { %v2023_v11 = vpop.permute.xlu0 %2022 }
0x1b40   :  { %v5635_v14 = vmul.f32 %v4937_v49, %v2023_v11 }
0x1b42   :  { %2027 = vrot.lane.b32.xlu1 %v5635_v14, %s5099_s29 }
0x1b43   :  { %v1720_v44 = vpop.permute.xlu1 %1719  ;;  %v1724_v8 = vpop.permute.xlu0 %1723 }
0x1b44   :  { %v1726_v18 = vsel %vm161_vm1, %v1720_v44, %v1724_v8 }
0x1b45   :  { %4168 = vmatmul.mubr.msk.f32.vlgmr.msra.gmra.mrb[16].mxu0 %vm271_vm2, %v1726_v18 }
0x1b46   :  { %78 = vperm.xlu1 %4805, %v47_v9   ;;  %4641 = vmatpush3.bf16.msra.mxu0 %v5237_v63 }
0x1b47   :  { %4642 = vmatprep.subr.bf16.mxu0 %v5094_v1  ;;  %4216 = vmatprep.mubr.msk.f32.mxu0 %vm5095_vm0, %v5096_v2  ;;  %v2031_v16 = vpop.permute.xlu0 %2030 }
0x1b4a   :  { %4644 = vmatpush3.bf16.msra.mxu0 %v5240_v3 }
0x1b4b   :  { %4645 = vmatprep.subr.bf16.mxu0 %v5094_v1 }
0x1b4e   :  { %4647 = vmatpush3.bf16.msra.mxu0 %v5244_v6 }
0x1b4f   :  { %4648 = vmatprep.subr.bf16.mxu0 %v5094_v1 }
0x1b52   :  { %4650 = vmatpush3.bf16.msra.mxu0 %v5249_v13 }
0x1b53   :  { %4663 = vmatprep.subr.bf16.mxu0 %v5094_v1 }
0x1bb4   :  { %v2028_v21 = vpop.permute.xlu1 %2027 }
0x1bb5   :  { %v2033_v25 = vsel %vm161_vm1, %v2028_v21, %v2031_v16 }
0x1bb6   :  { %4217 = vmatmul.mubr.msk.f32.vlgmr.msra.gmra.mrb[18].mxu0 %vm271_vm2, %v2033_v25 }
0x1bb7   :  { %4665 = vmatpush3.bf16.msra.mxu0 %v5170_v7  ;;  %4246 = vmatprep.mubr.msk.f32.mxu0 %vm5095_vm0, %v5096_v2 }
0x1bb8   :  { %4666 = vmatprep.subr.bf16.mxu0 %v5094_v1 }
0x1bbb   :  { %4668 = vmatpush3.bf16.msra.mxu0 %v5179_v10 }
0x1bbc   :  { %4669 = vmatprep.subr.bf16.mxu0 %v5094_v1 }
0x1bbe   :  { %4247 = vmatmul.mubr.msk.f32.vlgmr.msra.gmra.mrb[20].mxu0 %vm161_vm1, %v5592_v12 }
0x1bbf   :  { %4671 = vmatpush3.bf16.msra.mxu0 %v5204_v32  ;;  %4265 = vmatprep.mubr.msk.f32.mxu0 %vm5095_vm0, %v5096_v2 }
0x1bc0   :  { %4672 = vmatprep.subr.bf16.mxu0 %v5094_v1 }
0x1bc3   :  { %4674 = vmatpush3.bf16.msra.mxu0 %v5207_v34 }
0x1bc4   :  { %4675 = vmatprep.subr.bf16.mxu0 %v5094_v1 }
0x1bc5   :  { %v79_v22 = vpop.permute.xlu1 %78 }
0x1bc6   :  { %v102_v27 = vmul.f32 %v5569_v36, %v79_v22 }
0x1bc7   :  { %4677 = vmatpush3.bf16.msra.mxu0 %v5211_v37 }
0x1bc8   :  { %4678 = vmatprep.subr.bf16.mxu0 %v5094_v1  ;;  %v117_v61 = vadd.f32 %v5575_v40, %v102_v27 }
0x1bcb   :  { %4680 = vmatpush3.bf16.msra.mxu0 %v5216_v41 }
0x1bcc   :  { %4693 = vmatprep.subr.bf16.mxu0 %v5094_v1 }
0x1c18   :  { %v1796_v12 = vpop.f32.mrb[16].mxu0 }
0x1c19   :  { %v4169_v19 = vpop.f32.mrb[17].mxu0  ;;  %v1797_v54 = vadd.f32 %v5392_v42, %v1796_v12 }
0x1c1b   :  { %v3602_v0 = vmul.f32 -1.442695, %v1797_v54 }
0x1c89   :  { %v2103_v23 = vpop.f32.mrb[18].mxu0 }
0x1c8a   :  { %v4218_v26 = vpop.f32.mrb[19].mxu0  ;;  %v2104_v52 = vadd.f32 %v5685_v51, %v2103_v23 }
0x1c8c   :  { %v3608_v9 = vmul.f32 -1.442695, %v2104_v52 }
0x1c91   :  { %v2305_v29 = vpop.f32.mrb[20].mxu0 }
0x1c92   :  { %v2309_v31 = vadd.f32 %v2305_v29, %v117_v61  ;;  %v4248_v43 = vpop.f32.mrb[21].mxu0 }
0x1c94   :  { %4942 = vtanh.f32 %v2309_v31  ;;  %v3612_v39 = vmul.f32 -1.442695, %v2309_v31 }
0x1c96   :  { %4944 = vpow2.f32 %v3612_v39 }
0x1c9e   :  { %v4943_v33 = vpop.eup %4942 }
0x1c9f   :  { %2319 = vrot.lane.b32.xlu0 %v4943_v33, %s5098_s28 }
0x1ca0   :  { %v4945_v45 = vpop.eup %4944 }
0x1ca1   :  { %v2313_v47 = vadd.f32 1.0, %v4945_v45 }
0x1ca3   :  { %4946 = vrcp.f32 %v2313_v47 }
0x1cad   :  { %v4947_v38 = vpop.eup %4946 }
0x1cae   :  { %v2317_v50 = vmul.f32 %v4947_v38, %v5581_v56 }
0x1d11   :  { %v2320_v28 = vpop.permute.xlu0 %2319 }
0x1d12   :  { %v2322_v48 = vmul.f32 %v4947_v38, %v2320_v28 }
0x1d14   :  { %2324 = vrot.lane.b32.xlu1 %v2322_v48, %s5099_s29 }
0x1d86   :  { %v2325_v49 = vpop.permute.xlu1 %2324 }
0x1d87   :  { %v5679_v59 = vadd.f32 %v2325_v49, %v2317_v50 }
0x1d89   :  { %4948 = vtanh.f32 %v5679_v59 }
0x1d8a   :  { %4950 = vtanh.f32 %v2104_v52 }
0x1d8b   :  { %4952 = vtanh.f32 %v1797_v54 }
0x1d8c   :  { %4954 = vpow2.f32 %v3602_v0 }
0x1d93   :  { %v4949_v46 = vpop.eup %4948 }
0x1d94   :  { %2330 = vrot.lane.b32.xlu0 %v4949_v46, %s5098_s28  ;;  %v4951_v56 = vpop.eup %4950 }
0x1d95   :  { %v4953_v60 = vpop.eup %4952 }
0x1d96   :  { %v4955_v62 = vpop.eup %4954 }
0x1d97   :  { %v1803_v5 = vadd.f32 1.0, %v4955_v62 }
0x1d98   :  { %2338 = vrot.lane.b32.xlu0 %v5635_v14, %s5098_s28 }
0x1d99   :  { %4956 = vrcp.f32 %v1803_v5  ;;  %v48_v5 = vld [vmem:[%s5967_s0 + $0x30] sm:$0xff] }
0x1d9a   :  { %4958 = vpow2.f32 %v3608_v9 }
0x1d9c   :  { %2116 = vrot.lane.b32.xlu0 %v4951_v56, %s5098_s28 }
0x1da3   :  { %v4957_v42 = vpop.eup %4956 }
0x1da4   :  { %v4959_v18 = vpop.eup %4958  ;;  %v1807_v23 = vmul.f32 %v4957_v42, %v5615_v35 }
0x1da5   :  { %v2110_v25 = vadd.f32 1.0, %v4959_v18 }
0x1e06   :  { %v2331_v55 = vpop.permute.xlu0 %2330 }
0x1e07   :  { %v2333_v57 = vmul.f32 %v4947_v38, %v2331_v55 }
0x1e09   :  { %2335 = vrot.lane.b32.xlu1 %v2333_v57, %s5099_s29 }
0x1e0a   :  { %v2339_v4 = vpop.permute.xlu0 %2338 }
0x1e0d   :  { %1809 = vrot.lane.b32.xlu1 %v4953_v60, %s5098_s28 }
0x1e0e   :  { %v2117_v16 = vpop.permute.xlu0 %2116 }
0x1e7b   :  { %v5695_v11 = vpop.permute.xlu1 %2335 }
0x1e7c   :  { %v2341_v14 = vsel %vm161_vm1, %v5695_v11, %v2339_v4 }
0x1e7d   :  { %4266 = vmatmul.mubr.msk.f32.vlgmr.msra.gmra.mrb[22].mxu0 %vm271_vm2, %v2341_v14 }
0x1e7e   :  { %4695 = vmatpush3.bf16.msra.mxu0 %v5308_v15  ;;  %4303 = vmatprep.mubr.msk.f32.mxu0 %vm5095_vm0, %v5096_v2 }
0x1e7f   :  { %v1810_v44 = vpop.permute.xlu1 %1809  ;;  %4696 = vmatprep.subr.bf16.mxu0 %v5094_v1 }
0x1e80   :  { %v1812_v8 = vmul.f32 %v4957_v42, %v1810_v44 }
0x1e82   :  { %1814 = vrot.lane.b32.xlu0 %v1812_v8, %s5099_s29  ;;  %4698 = vmatpush3.bf16.msra.mxu0 %v5311_v17 }
0x1e83   :  { %4699 = vmatprep.subr.bf16.mxu0 %v5094_v1 }
0x1e86   :  { %4701 = vmatpush3.bf16.msra.mxu0 %v5317_v20 }
0x1e87   :  { %4702 = vmatprep.subr.bf16.mxu0 %v5094_v1 }
0x1e8a   :  { %4704 = vmatpush3.bf16.msra.mxu0 %v5324_v24 }
0x1e8b   :  { %4723 = vmatprep.subr.bf16.mxu0 %v5094_v1 }
0x1ef4   :  { %v1815_v22 = vpop.permute.xlu0 %1814 }
0x1ef5   :  { %v5713_v26 = vadd.f32 %v1815_v22, %v1807_v23 }
0x1f50   :  { %v2411_v21 = vpop.f32.mrb[22].mxu0 }
0x1f51   :  { %v2412_v12 = vadd.f32 %v5611_v30, %v2411_v21  ;;  %v4267_v19 = vpop.f32.mrb[23].mxu0 }
0x1f53   :  { %4960 = vtanh.f32 %v2412_v12  ;;  %v3614_v43 = vmul.f32 -1.442695, %v2412_v12 }
0x1f54   :  { %4962 = vrcp.f32 %v2110_v25 }
0x1f55   :  { %4964 = vtanh.f32 %v5713_v26 }
0x1f56   :  { %4966 = vpow2.f32 %v3614_v43 }
0x1f5d   :  { %v4961_v27 = vpop.eup %4960 }
0x1f5e   :  { %2424 = vrot.lane.b32.xlu1 %v4961_v27, %s5098_s28  ;;  %v4963_v61 = vpop.eup %4962 }
0x1f5f   :  { %v2119_v29 = vmul.f32 %v4963_v61, %v2117_v16  ;;  %v4965_v31 = vpop.eup %4964  ;;  %v2114_v38 = vmul.f32 %v4963_v61, %v5623_v53 }
0x1f60   :  { %v4967_v33 = vpop.eup %4966 }
0x1f61   :  { %v2418_v39 = vadd.f32 1.0, %v4967_v33 }
0x1f62   :  { %2121 = vrot.lane.b32.xlu1 %v2119_v29, %s5099_s29 }
0x1f63   :  { %4968 = vrcp.f32 %v2418_v39 }
0x1f66   :  { %1820 = vrot.lane.b32.xlu1 %v4965_v31, %s5098_s28 }
0x1f6d   :  { %v4969_v35 = vpop.eup %4968 }
0x1f6e   :  { %v2422_v49 = vmul.f32 %v4969_v35, %v5628_v58 }
0x1fd0   :  { %v2425_v45 = vpop.permute.xlu1 %2424 }
0x1fd1   :  { %v2427_v47 = vmul.f32 %v4969_v35, %v2425_v45 }
0x1fd3   :  { %2429 = vrot.lane.b32.xlu0 %v2427_v47, %s5099_s29 }
0x1fd4   :  { %v2122_v28 = vpop.permute.xlu1 %2121 }
0x1fd5   :  { %v5721_v48 = vadd.f32 %v2122_v28, %v2114_v38 }
0x1fd7   :  { %4970 = vtanh.f32 %v5721_v48 }
0x1fd8   :  { %v1821_v54 = vpop.permute.xlu1 %1820 }
0x1fd9   :  { %v1823_v55 = vmul.f32 %v4957_v42, %v1821_v54 }
0x1fe1   :  { %v4971_v50 = vpop.eup %4970 }
0x1fe2   :  { %2127 = vrot.lane.b32.xlu0 %v4971_v50, %s5098_s28 }
0x2045   :  { %v2430_v52 = vpop.permute.xlu0 %2429 }
0x2046   :  { %v5726_v46 = vadd.f32 %v2430_v52, %v2422_v49 }
0x2048   :  { %4972 = vtanh.f32 %v5726_v46 }
0x2052   :  { %v4973_v56 = vpop.eup %4972 }
0x2053   :  { %2435 = vrot.lane.b32.xlu1 %v4973_v56, %s5098_s28 }
0x2054   :  { %v2128_v53 = vpop.permute.xlu0 %2127 }
0x2055   :  { %v2130_v57 = vmul.f32 %v4963_v61, %v2128_v53 }
0x2057   :  { %2132 = vrot.lane.b32.xlu0 %v2130_v57, %s5099_s29  ;;  %2136 = vrot.lane.b32.xlu1 %v1823_v55, %s5098_s28 }
0x205b   :  { %2443 = vrot.lane.b32.xlu1 %v2130_v57, %s5098_s28 }
0x20c5   :  { %v2436_v60 = vpop.permute.xlu1 %2435 }
0x20c6   :  { %v5733_v58 = vmul.f32 %v4969_v35, %v2436_v60 }
0x20c8   :  { %2440 = vrot.lane.b32.xlu0 %v5733_v58, %s5099_s29 }
0x20c9   :  { %v2133_v0 = vpop.permute.xlu0 %2132  ;;  %v2137_v62 = vpop.permute.xlu1 %2136 }
0x20ca   :  { %v2139_v4 = vsel %vm161_vm1, %v2133_v0, %v2137_v62 }
0x20cb   :  { %4236 = vmatmul.mubr.msk.f32.vlgmr.msra.gmra.mrb[18].mxu1 %vm271_vm2, %v2139_v4 }
0x20cc   :  { %83 = vperm.xlu0 %4804, %v48_v5   ;;  %4683 = vmatpush3.bf16.msra.mxu1 %v5237_v63 }
0x20cd   :  { %4684 = vmatprep.subr.bf16.mxu1 %v5094_v1  ;;  %4284 = vmatprep.mubr.msk.f32.mxu1 %vm5095_vm0, %v5096_v2  ;;  %v2444_v14 = vpop.permute.xlu1 %2443 }
0x20d0   :  { %4686 = vmatpush3.bf16.msra.mxu1 %v5240_v3 }
0x20d1   :  { %4687 = vmatprep.subr.bf16.mxu1 %v5094_v1 }
0x20d4   :  { %4689 = vmatpush3.bf16.msra.mxu1 %v5244_v6 }
0x20d5   :  { %4690 = vmatprep.subr.bf16.mxu1 %v5094_v1 }
0x20d8   :  { %4692 = vmatpush3.bf16.msra.mxu1 %v5249_v13 }
0x20d9   :  { %4705 = vmatprep.subr.bf16.mxu1 %v5094_v1 }
0x213a   :  { %v2441_v42 = vpop.permute.xlu0 %2440 }
0x213b   :  { %v2446_v44 = vsel %vm161_vm1, %v2441_v42, %v2444_v14 }
0x213c   :  { %4285 = vmatmul.mubr.msk.f32.vlgmr.msra.gmra.mrb[20].mxu1 %vm271_vm2, %v2446_v44 }
0x213d   :  { %4707 = vmatpush3.bf16.msra.mxu1 %v5170_v7  ;;  %4314 = vmatprep.mubr.msk.f32.mxu1 %vm5095_vm0, %v5096_v2 }
0x213e   :  { %4708 = vmatprep.subr.bf16.mxu1 %v5094_v1 }
0x2141   :  { %4710 = vmatpush3.bf16.msra.mxu1 %v5179_v10 }
0x2142   :  { %4711 = vmatprep.subr.bf16.mxu1 %v5094_v1 }
0x2144   :  { %4315 = vmatmul.mubr.msk.f32.vlgmr.msra.gmra.mrb[22].mxu1 %vm161_vm1, %v5695_v11 }
0x2145   :  { %4713 = vmatpush3.bf16.msra.mxu1 %v5204_v32  ;;  %4333 = vmatprep.mubr.msk.f32.mxu1 %vm5095_vm0, %v5096_v2 }
0x2146   :  { %4714 = vmatprep.subr.bf16.mxu1 %v5094_v1 }
0x2149   :  { %4716 = vmatpush3.bf16.msra.mxu1 %v5207_v34 }
0x214a   :  { %4717 = vmatprep.subr.bf16.mxu1 %v5094_v1 }
0x214b   :  { %v84_v9 = vpop.permute.xlu0 %83 }
0x214c   :  { %v103_v21 = vmul.f32 %v5569_v36, %v84_v9 }
0x214d   :  { %4719 = vmatpush3.bf16.msra.mxu1 %v5211_v37 }
0x214e   :  { %4720 = vmatprep.subr.bf16.mxu1 %v5094_v1  ;;  %v118_v25 = vadd.f32 %v5575_v40, %v103_v21 }
0x2151   :  { %4722 = vmatpush3.bf16.msra.mxu1 %v5216_v41 }
0x2152   :  { %4735 = vmatprep.subr.bf16.mxu1 %v5094_v1 }
0x219e   :  { %v2209_v11 = vpop.f32.mrb[18].mxu1 }
0x219f   :  { %v4237_v8 = vpop.f32.mrb[19].mxu1 }
0x220f   :  { %v2516_v18 = vpop.f32.mrb[20].mxu1 }
0x2210   :  { %v4286_v16 = vpop.f32.mrb[21].mxu1  ;;  %v2517_v47 = vadd.f32 %v5685_v51, %v2516_v18 }
0x2212   :  { %v3616_v4 = vmul.f32 -1.442695, %v2517_v47 }
0x2217   :  { %v2718_v12 = vpop.f32.mrb[22].mxu1 }
0x2218   :  { %v2722_v19 = vadd.f32 %v2718_v12, %v118_v25  ;;  %v4316_v22 = vpop.f32.mrb[23].mxu1 }
0x221a   :  { %4974 = vtanh.f32 %v2722_v19  ;;  %v3620_v27 = vmul.f32 -1.442695, %v2722_v19 }
0x221c   :  { %4976 = vpow2.f32 %v3620_v27 }
0x2224   :  { %v4975_v23 = vpop.eup %4974 }
0x2225   :  { %2732 = vrot.lane.b32.xlu1 %v4975_v23, %s5098_s28 }
0x2226   :  { %v4977_v61 = vpop.eup %4976 }
0x2227   :  { %v2726_v29 = vadd.f32 1.0, %v4977_v61 }
0x2229   :  { %4978 = vrcp.f32 %v2726_v29 }
0x2233   :  { %v4979_v31 = vpop.eup %4978 }
0x2234   :  { %v2730_v39 = vmul.f32 %v4979_v31, %v5679_v59  ;;  %v5788_v59 = vld [vmem:[%s5971_s4 + $0x3] ss:$0 sm:$0xff] }
0x2235   :  { %v2210_v50 = vadd.f32 %v5788_v59, %v2209_v11 }
0x2237   :  { %v3610_v54 = vmul.f32 -1.442695, %v2210_v50 }
0x2297   :  { %v2733_v43 = vpop.permute.xlu1 %2732 }
0x2298   :  { %v2735_v33 = vmul.f32 %v4979_v31, %v2733_v43 }
0x229a   :  { %2737 = vrot.lane.b32.xlu0 %v2735_v33, %s5099_s29 }
0x230c   :  { %v2738_v35 = vpop.permute.xlu0 %2737 }
0x230d   :  { %v5777_v45 = vadd.f32 %v2738_v35, %v2730_v39 }
0x230f   :  { %4980 = vtanh.f32 %v5777_v45 }
0x2310   :  { %4982 = vtanh.f32 %v2517_v47 }
0x2311   :  { %4984 = vtanh.f32 %v2210_v50 }
0x2312   :  { %4986 = vpow2.f32 %v3610_v54 }
0x2319   :  { %v4981_v38 = vpop.eup %4980 }
0x231a   :  { %2743 = vrot.lane.b32.xlu1 %v4981_v38, %s5098_s28  ;;  %v4983_v28 = vpop.eup %4982 }
0x231b   :  { %v4985_v56 = vpop.eup %4984 }
0x231c   :  { %v4987_v53 = vpop.eup %4986 }
0x231d   :  { %v2216_v55 = vadd.f32 1.0, %v4987_v53 }
0x231e   :  { %2751 = vrot.lane.b32.xlu1 %v5733_v58, %s5098_s28 }
0x231f   :  { %4988 = vrcp.f32 %v2216_v55 }
0x2320   :  { %4990 = vpow2.f32 %v3616_v4 }
0x2322   :  { %2529 = vrot.lane.b32.xlu1 %v4983_v28, %s5098_s28 }
0x2329   :  { %v4989_v0 = vpop.eup %4988 }
0x232a   :  { %v4991_v14 = vpop.eup %4990  ;;  %v2220_v16 = vmul.f32 %v4989_v0, %v5713_v26 }
0x232b   :  { %v2523_v11 = vadd.f32 1.0, %v4991_v14 }
0x238c   :  { %v2744_v49 = vpop.permute.xlu1 %2743 }
0x238d   :  { %v2746_v52 = vmul.f32 %v4979_v31, %v2744_v49 }
0x238f   :  { %2748 = vrot.lane.b32.xlu0 %v2746_v52, %s5099_s29 }
0x2390   :  { %v2752_v57 = vpop.permute.xlu1 %2751 }
0x2393   :  { %2222 = vrot.lane.b32.xlu0 %v4985_v56, %s5098_s28 }
0x2394   :  { %v2530_v42 = vpop.permute.xlu1 %2529 }
0x2401   :  { %v5793_v60 = vpop.permute.xlu0 %2748 }
0x2402   :  { %v2754_v58 = vsel %vm161_vm1, %v5793_v60, %v2752_v57  ;;  %v49_v57 = vld [vmem:[%s5967_s0 + $0x38] sm:$0xff] }
0x2403   :  { %4334 = vmatmul.mubr.msk.f32.vlgmr.msra.gmra.mrb[24].mxu1 %vm271_vm2, %v2754_v58 }
0x2404   :  { %4737 = vmatpush3.bf16.msra.mxu1 %v5308_v15  ;;  %4371 = vmatprep.mubr.msk.f32.mxu1 %vm5095_vm0, %v5096_v2 }
0x2405   :  { %v2223_v62 = vpop.permute.xlu0 %2222  ;;  %4738 = vmatprep.subr.bf16.mxu1 %v5094_v1 }
0x2406   :  { %v2225_v5 = vmul.f32 %v4989_v0, %v2223_v62 }
0x2408   :  { %2227 = vrot.lane.b32.xlu1 %v2225_v5, %s5099_s29  ;;  %4740 = vmatpush3.bf16.msra.mxu1 %v5311_v17 }
0x2409   :  { %4741 = vmatprep.subr.bf16.mxu1 %v5094_v1 }
0x240c   :  { %4743 = vmatpush3.bf16.msra.mxu1 %v5317_v20 }
0x240d   :  { %4744 = vmatprep.subr.bf16.mxu1 %v5094_v1 }
0x2410   :  { %4746 = vmatpush3.bf16.msra.mxu1 %v5324_v24 }
0x2411   :  { %4765 = vmatprep.subr.bf16.mxu1 %v5094_v1 }
0x247a   :  { %v2228_v18 = vpop.permute.xlu1 %2227 }
0x247b   :  { %v5811_v21 = vadd.f32 %v2228_v18, %v2220_v16 }
0x24d6   :  { %v2824_v44 = vpop.f32.mrb[24].mxu1 }
0x24d7   :  { %v2825_v8 = vadd.f32 %v5611_v30, %v2824_v44  ;;  %v4335_v9 = vpop.f32.mrb[25].mxu1 }
0x24d9   :  { %4992 = vtanh.f32 %v2825_v8  ;;  %v3622_v23 = vmul.f32 -1.442695, %v2825_v8 }
0x24da   :  { %4994 = vrcp.f32 %v2523_v11 }
0x24db   :  { %4996 = vtanh.f32 %v5811_v21 }
0x24dc   :  { %4998 = vpow2.f32 %v3622_v23 }
0x24e3   :  { %v4993_v25 = vpop.eup %4992 }
0x24e4   :  { %2837 = vrot.lane.b32.xlu0 %v4993_v25, %s5098_s28  ;;  %v4995_v12 = vpop.eup %4994 }
0x24e5   :  { %v2532_v19 = vmul.f32 %v4995_v12, %v2530_v42  ;;  %v4997_v22 = vpop.eup %4996  ;;  %v2527_v43 = vmul.f32 %v4995_v12, %v5721_v48 }
0x24e6   :  { %v4999_v27 = vpop.eup %4998 }
0x24e7   :  { %v2831_v61 = vadd.f32 1.0, %v4999_v27 }
0x24e8   :  { %2534 = vrot.lane.b32.xlu0 %v2532_v19, %s5099_s29 }
0x24e9   :  { %5000 = vrcp.f32 %v2831_v61 }
0x24ec   :  { %2233 = vrot.lane.b32.xlu0 %v4997_v22, %s5098_s28 }
0x24f3   :  { %v5001_v26 = vpop.eup %5000 }
0x24f4   :  { %v2835_v47 = vmul.f32 %v5001_v26, %v5726_v46 }
0x2556   :  { %v2838_v29 = vpop.permute.xlu0 %2837 }
0x2557   :  { %v2840_v31 = vmul.f32 %v5001_v26, %v2838_v29 }
0x2559   :  { %2842 = vrot.lane.b32.xlu1 %v2840_v31, %s5099_s29 }
0x255a   :  { %v2535_v33 = vpop.permute.xlu0 %2534 }
0x255b   :  { %v5819_v39 = vadd.f32 %v2535_v33, %v2527_v43 }
0x255d   :  { %5002 = vtanh.f32 %v5819_v39 }
0x255e   :  { %v2234_v49 = vpop.permute.xlu0 %2233 }
0x255f   :  { %v2236_v52 = vmul.f32 %v4989_v0, %v2234_v49 }
0x2567   :  { %v5003_v35 = vpop.eup %5002 }
0x2568   :  { %2540 = vrot.lane.b32.xlu1 %v5003_v35, %s5098_s28 }
0x25cb   :  { %v2843_v38 = vpop.permute.xlu1 %2842 }
0x25cc   :  { %v5824_v28 = vadd.f32 %v2843_v38, %v2835_v47 }
0x25ce   :  { %5004 = vtanh.f32 %v5824_v28 }
0x25d8   :  { %v5005_v50 = vpop.eup %5004 }
0x25d9   :  { %2848 = vrot.lane.b32.xlu0 %v5005_v50, %s5098_s28 }
0x25da   :  { %v2541_v48 = vpop.permute.xlu1 %2540 }
0x25db   :  { %v2543_v56 = vmul.f32 %v4995_v12, %v2541_v48 }
0x25dd   :  { %2545 = vrot.lane.b32.xlu1 %v2543_v56, %s5099_s29  ;;  %2549 = vrot.lane.b32.xlu0 %v2236_v52, %s5098_s28 }
0x25e1   :  { %2856 = vrot.lane.b32.xlu0 %v2543_v56, %s5098_s28 }
0x264b   :  { %v2849_v54 = vpop.permute.xlu0 %2848 }
0x264c   :  { %v5831_v46 = vmul.f32 %v5001_v26, %v2849_v54 }
0x264e   :  { %2853 = vrot.lane.b32.xlu1 %v5831_v46, %s5099_s29 }
0x264f   :  { %v2546_v53 = vpop.permute.xlu1 %2545  ;;  %v2550_v55 = vpop.permute.xlu0 %2549 }
0x2650   :  { %v2552_v58 = vsel %vm161_vm1, %v2546_v53, %v2550_v55 }
0x2651   :  { %4304 = vmatmul.mubr.msk.f32.vlgmr.msra.gmra.mrb[24].mxu0 %vm271_vm2, %v2552_v58 }
0x2652   :  { %88 = vperm.xlu1 %4805, %v49_v57   ;;  %4725 = vmatpush3.bf16.msra.mxu0 %v5237_v63 }
0x2653   :  { %4726 = vmatprep.subr.bf16.mxu0 %v5094_v1  ;;  %4352 = vmatprep.mubr.msk.f32.mxu0 %vm5095_vm0, %v5096_v2  ;;  %v2857_v0 = vpop.permute.xlu0 %2856 }
0x2656   :  { %4728 = vmatpush3.bf16.msra.mxu0 %v5240_v3 }
0x2657   :  { %4729 = vmatprep.subr.bf16.mxu0 %v5094_v1 }
0x265a   :  { %4731 = vmatpush3.bf16.msra.mxu0 %v5244_v6 }
0x265b   :  { %4732 = vmatprep.subr.bf16.mxu0 %v5094_v1 }
0x265e   :  { %4734 = vmatpush3.bf16.msra.mxu0 %v5249_v13 }
0x265f   :  { %4747 = vmatprep.subr.bf16.mxu0 %v5094_v1 }
0x26c0   :  { %v2854_v62 = vpop.permute.xlu1 %2853 }
0x26c1   :  { %v2859_v5 = vsel %vm161_vm1, %v2854_v62, %v2857_v0 }
0x26c2   :  { %4353 = vmatmul.mubr.msk.f32.vlgmr.msra.gmra.mrb[26].mxu0 %vm271_vm2, %v2859_v5 }
0x26c3   :  { %4749 = vmatpush3.bf16.msra.mxu0 %v5170_v7  ;;  %4382 = vmatprep.mubr.msk.f32.mxu0 %vm5095_vm0, %v5096_v2 }
0x26c4   :  { %4750 = vmatprep.subr.bf16.mxu0 %v5094_v1 }
0x26c7   :  { %4752 = vmatpush3.bf16.msra.mxu0 %v5179_v10 }
0x26c8   :  { %4753 = vmatprep.subr.bf16.mxu0 %v5094_v1 }
0x26ca   :  { %4383 = vmatmul.mubr.msk.f32.vlgmr.msra.gmra.mrb[28].mxu0 %vm161_vm1, %v5793_v60 }
0x26cb   :  { %4755 = vmatpush3.bf16.msra.mxu0 %v5204_v32  ;;  %4401 = vmatprep.mubr.msk.f32.mxu0 %vm5095_vm0, %v5096_v2 }
0x26cc   :  { %4756 = vmatprep.subr.bf16.mxu0 %v5094_v1 }
0x26cf   :  { %4758 = vmatpush3.bf16.msra.mxu0 %v5207_v34 }
0x26d0   :  { %4759 = vmatprep.subr.bf16.mxu0 %v5094_v1 }
0x26d1   :  { %v89_v32 = vpop.permute.xlu1 %88 }
0x26d2   :  { %v104_v14 = vmul.f32 %v5569_v36, %v89_v32 }
0x26d3   :  { %4761 = vmatpush3.bf16.msra.mxu0 %v5211_v37 }
0x26d4   :  { %4762 = vmatprep.subr.bf16.mxu0 %v5094_v1  ;;  %v119_v42 = vadd.f32 %v5575_v40, %v104_v14 }
0x26d7   :  { %4764 = vmatpush3.bf16.msra.mxu0 %v5216_v41 }
0x26d8   :  { %4777 = vmatprep.subr.bf16.mxu0 %v5094_v1 }
0x2724   :  { %v2622_v7 = vpop.f32.mrb[24].mxu0 }
0x2725   :  { %v4305_v10 = vpop.f32.mrb[25].mxu0  ;;  %v2623_v27 = vadd.f32 %v5788_v59, %v2622_v7 }
0x2727   :  { %v3618_v29 = vmul.f32 -1.442695, %v2623_v27 }
0x2795   :  { %v2929_v60 = vpop.f32.mrb[26].mxu0 }
0x2796   :  { %v4354_v4 = vpop.f32.mrb[27].mxu0  ;;  %v2930_v19 = vadd.f32 %v5685_v51, %v2929_v60 }
0x279d   :  { %v3131_v34 = vpop.f32.mrb[28].mxu0 }
0x279e   :  { %v3135_v44 = vadd.f32 %v3131_v34, %v119_v42  ;;  %v4384_v11 = vpop.f32.mrb[29].mxu0 }
0x27a0   :  { %5006 = vtanh.f32 %v3135_v44  ;;  %v3628_v8 = vmul.f32 -1.442695, %v3135_v44 }
0x27a2   :  { %5008 = vpow2.f32 %v3628_v8 }
0x27aa   :  { %v5007_v37 = vpop.eup %5006 }
0x27ab   :  { %3145 = vrot.lane.b32.xlu0 %v5007_v37, %s5098_s28 }
0x27ac   :  { %v5009_v41 = vpop.eup %5008 }
0x27ad   :  { %v3139_v9 = vadd.f32 1.0, %v5009_v41 }
0x27af   :  { %5010 = vrcp.f32 %v3139_v9 }
0x27b9   :  { %v5011_v18 = vpop.eup %5010 }
0x27ba   :  { %v3143_v36 = vmul.f32 %v5011_v18, %v5777_v45 }
0x281d   :  { %v3146_v16 = vpop.permute.xlu0 %3145 }
0x281e   :  { %v3148_v25 = vmul.f32 %v5011_v18, %v3146_v16 }
0x2820   :  { %3150 = vrot.lane.b32.xlu1 %v3148_v25, %s5099_s29 }
0x2892   :  { %v3151_v40 = vpop.permute.xlu1 %3150 }
0x2893   :  { %v3153_v12 = vadd.f32 %v3151_v40, %v3143_v36 }
0x2895   :  { %5012 = vtanh.f32 %v3153_v12 }
0x2896   :  { %5014 = vtanh.f32 %v2930_v19 }
0x2897   :  { %5016 = vtanh.f32 %v2623_v27 }
0x2898   :  { %5018 = vpow2.f32 %v3618_v29 }
0x289f   :  { %v5013_v22 = vpop.eup %5012 }
0x28a0   :  { %3156 = vrot.lane.b32.xlu0 %v5013_v22, %s5098_s28  ;;  %v5015_v23 = vpop.eup %5014 }
0x28a1   :  { %v5017_v26 = vpop.eup %5016 }
0x28a2   :  { %v5019_v31 = vpop.eup %5018 }
0x28a3   :  { %v2629_v43 = vadd.f32 1.0, %v5019_v31 }
0x28a4   :  { %3164 = vrot.lane.b32.xlu0 %v5831_v46, %s5098_s28 }
0x28a5   :  { %5020 = vrcp.f32 %v2629_v43 }
0x28a8   :  { %2942 = vrot.lane.b32.xlu0 %v5015_v23, %s5098_s28 }
0x28af   :  { %v5021_v38 = vpop.eup %5020 }
0x2912   :  { %v3157_v61 = vpop.permute.xlu0 %3156 }
0x2913   :  { %v3159_v45 = vmul.f32 %v5011_v18, %v3157_v61 }
0x2915   :  { %3161 = vrot.lane.b32.xlu1 %v3159_v45, %s5099_s29 }
0x2916   :  { %v3165_v33 = vpop.permute.xlu0 %3164 }
0x2919   :  { %2635 = vrot.lane.b32.xlu1 %v5017_v26, %s5098_s28 }
0x291a   :  { %v2943_v52 = vpop.permute.xlu0 %2942 }
0x2987   :  { %v3162_v35 = vpop.permute.xlu1 %3161 }
0x2988   :  { %v3167_v47 = vsel %vm161_vm1, %v3162_v35, %v3165_v33 }
0x2989   :  { %4402 = vmatmul.mubr.msk.f32.vlgmr.msra.gmra.mrb[30].mxu0 %vm271_vm2, %v3167_v47 }
0x298a   :  { %4779 = vmatpush3.bf16.msra.mxu0 %v5308_v15  ;;  %4439 = vmatprep.mubr.msk.f32.mxu0 %vm5095_vm0, %v5096_v2  ;;  %v3624_v15 = vmul.f32 -1.442695, %v2930_v19 }
0x298b   :  { %v2636_v50 = vpop.permute.xlu1 %2635  ;;  %4780 = vmatprep.subr.bf16.mxu0 %v5094_v1 }
0x298c   :  { %v2638_v49 = vmul.f32 %v5021_v38, %v2636_v50  ;;  %5022 = vpow2.f32 %v3624_v15 }
0x298e   :  { %2640 = vrot.lane.b32.xlu0 %v2638_v49, %s5099_s29  ;;  %4782 = vmatpush3.bf16.msra.mxu0 %v5311_v17  ;;  %v2633_v17 = vmul.f32 %v5021_v38, %v5811_v21 }
0x298f   :  { %4783 = vmatprep.subr.bf16.mxu0 %v5094_v1 }
0x2992   :  { %4785 = vmatpush3.bf16.msra.mxu0 %v5317_v20 }
0x2993   :  { %4786 = vmatprep.subr.bf16.mxu0 %v5094_v1 }
0x2996   :  { %4788 = vmatpush3.bf16.msra.mxu0 %v5324_v24  ;;  %v5023_v48 = vpop.eup %5022 }
0x2997   :  { %v2936_v54 = vadd.f32 1.0, %v5023_v48 }
0x2a00   :  { %v2641_v55 = vpop.permute.xlu0 %2640 }
0x2a01   :  { %v5897_v57 = vadd.f32 %v2641_v55, %v2633_v17 }
0x2a5c   :  { %v3237_v56 = vpop.f32.mrb[30].mxu0 }
0x2a5d   :  { %v3238_v46 = vadd.f32 %v5611_v30, %v3237_v56  ;;  %v4403_v53 = vpop.f32.mrb[31].mxu0 }
0x2a5f   :  { %5024 = vtanh.f32 %v3238_v46  ;;  %v3630_v30 = vmul.f32 -1.442695, %v3238_v46 }
0x2a60   :  { %5026 = vrcp.f32 %v2936_v54 }
0x2a61   :  { %5028 = vtanh.f32 %v5897_v57 }
0x2a62   :  { %5030 = vpow2.f32 %v3630_v30 }
0x2a69   :  { %v5025_v20 = vpop.eup %5024 }
0x2a6a   :  { %3250 = vrot.lane.b32.xlu1 %v5025_v20, %s5098_s28  ;;  %v5027_v24 = vpop.eup %5026 }
0x2a6b   :  { %v2945_v58 = vmul.f32 %v5027_v24, %v2943_v52  ;;  %v5029_v0 = vpop.eup %5028  ;;  %v2940_v32 = vmul.f32 %v5027_v24, %v5819_v39 }
0x2a6c   :  { %v5031_v62 = vpop.eup %5030 }
0x2a6d   :  { %v3244_v5 = vadd.f32 1.0, %v5031_v62 }
0x2a6e   :  { %2947 = vrot.lane.b32.xlu1 %v2945_v58, %s5099_s29 }
0x2a6f   :  { %5032 = vrcp.f32 %v3244_v5 }
0x2a72   :  { %2646 = vrot.lane.b32.xlu1 %v5029_v0, %s5098_s28 }
0x2a79   :  { %v5033_v21 = vpop.eup %5032 }
0x2a7a   :  { %v3248_v42 = vmul.f32 %v5033_v21, %v5824_v28 }
0x2adc   :  { %v3251_v7 = vpop.permute.xlu1 %3250 }
0x2add   :  { %v3253_v10 = vmul.f32 %v5033_v21, %v3251_v7 }
0x2adf   :  { %3255 = vrot.lane.b32.xlu0 %v3253_v10, %s5099_s29 }
0x2ae0   :  { %v2948_v60 = vpop.permute.xlu1 %2947 }
0x2ae1   :  { %v5905_v4 = vadd.f32 %v2948_v60, %v2940_v32 }
0x2ae3   :  { %5034 = vtanh.f32 %v5905_v4 }
0x2ae4   :  { %v2647_v37 = vpop.permute.xlu1 %2646 }
0x2ae5   :  { %v2649_v41 = vmul.f32 %v5021_v38, %v2647_v37 }
0x2aed   :  { %v5035_v14 = vpop.eup %5034 }
0x2aee   :  { %2953 = vrot.lane.b32.xlu0 %v5035_v14, %s5098_s28 }
0x2b51   :  { %v3256_v34 = vpop.permute.xlu0 %3255 }
0x2b52   :  { %v3258_v44 = vadd.f32 %v3256_v34, %v3248_v42 }
0x2b54   :  { %5036 = vtanh.f32 %v3258_v44  ;;  %v157_v44 = vld [vmem:[%s5972_s5 + $0x8] sm:$0xff] }
0x2b5e   :  { %v5037_v11 = vpop.eup %5036 }
0x2b5f   :  { %3261 = vrot.lane.b32.xlu1 %v5037_v11, %s5098_s28  ;;  %v158_v11 = vld [vmem:[%s5972_s5 + $0x10] sm:$0xff] }
0x2b60   :  { %v2954_v8 = vpop.permute.xlu0 %2953 }
0x2b61   :  { %v2956_v39 = vmul.f32 %v5027_v24, %v2954_v8  ;;  %v159_v8 = vld [vmem:[%s5972_s5 + $0x18] sm:$0xff] }
0x2b63   :  { %2958 = vrot.lane.b32.xlu0 %v2956_v39, %s5099_s29  ;;  %2962 = vrot.lane.b32.xlu1 %v2649_v41, %s5098_s28  ;;  %v4793_v41 = vpack.c.bf16 %v159_v8, %v158_v11 }
0x2b67   :  { %3269 = vrot.lane.b32.xlu1 %v2956_v39, %s5098_s28 }
0x2bd1   :  { %v3262_v9 = vpop.permute.xlu1 %3261 }
0x2bd2   :  { %v3264_v18 = vmul.f32 %v5033_v21, %v3262_v9 }
0x2bd4   :  { %3266 = vrot.lane.b32.xlu0 %v3264_v18, %s5099_s29 }
0x2bd5   :  { %v2959_v28 = vpop.permute.xlu0 %2958  ;;  %v2963_v16 = vpop.permute.xlu1 %2962 }
0x2bd6   :  { %v2965_v25 = vsel %vm161_vm1, %v2959_v28, %v2963_v16  ;;  %v3635_v16 = vld [vmem:[#allocation2] ss:$0 sm:$0xff] }
0x2bd7   :  { %4372 = vmatmul.mubr.msk.f32.vlgmr.msra.gmra.mrb[26].mxu1 %vm271_vm2, %v2965_v25 }
0x2bd8   :  { %4767 = vmatpush3.bf16.msra.mxu1 %v5237_v63  ;;  %4420 = vmatprep.mubr.msk.f32.mxu1 %vm5095_vm0, %v5096_v2 }
0x2bd9   :  { %4768 = vmatprep.subr.bf16.mxu1 %v5094_v1  ;;  %v3270_v36 = vpop.permute.xlu1 %3269 }
0x2bdc   :  { %4770 = vmatpush3.bf16.msra.mxu1 %v5240_v3 }
0x2bdd   :  { %4771 = vmatprep.subr.bf16.mxu1 %v5094_v1 }
0x2be0   :  { %4773 = vmatpush3.bf16.msra.mxu1 %v5244_v6 }
0x2be1   :  { %4774 = vmatprep.subr.bf16.mxu1 %v5094_v1 }
0x2be4   :  { %4776 = vmatpush3.bf16.msra.mxu1 %v5249_v13 }
0x2be5   :  { %4789 = vmatprep.subr.bf16.mxu1 %v5094_v1 }
0x2c46   :  { %v3267_v40 = vpop.permute.xlu0 %3266 }
0x2c47   :  { %v3272_v63 = vsel %vm161_vm1, %v3267_v40, %v3270_v36 }
0x2c48   :  { %4421 = vmatmul.mubr.msk.f32.vlgmr.msra.gmra.mrb[28].mxu1 %vm271_vm2, %v3272_v63 }
0x2c49   :  { %4450 = vmatprep.mubr.msk.f32.mxu1 %vm5095_vm0, %v5096_v2 }
0x2caa   :  { %v3035_v3 = vpop.f32.mrb[26].mxu1 }
0x2cab   :  { %v3036_v12 = vadd.f32 %v5788_v59, %v3035_v3  ;;  %v4373_v19 = vpop.f32.mrb[27].mxu1 }
0x2cad   :  { %5038 = vtanh.f32 %v3036_v12  ;;  %v3626_v13 = vmul.f32 -1.442695, %v3036_v12 }
0x2caf   :  { %5040 = vpow2.f32 %v3626_v13 }
0x2cb7   :  { %v5039_v6 = vpop.eup %5038 }
0x2cb8   :  { %3048 = vrot.lane.b32.xlu0 %v5039_v6, %s5098_s28 }
0x2cb9   :  { %v5041_v22 = vpop.eup %5040 }
0x2cba   :  { %v3042_v27 = vadd.f32 1.0, %v5041_v22 }
0x2d1b   :  { %v3342_v23 = vpop.f32.mrb[28].mxu1 }
0x2d1c   :  { %v3343_v61 = vadd.f32 %v5685_v51, %v3342_v23  ;;  %v4422_v45 = vpop.f32.mrb[29].mxu1 }
0x2d1e   :  { %5042 = vtanh.f32 %v3343_v61  ;;  %v3632_v43 = vmul.f32 -1.442695, %v3343_v61 }
0x2d1f   :  { %5044 = vrcp.f32 %v3042_v27 }
0x2d20   :  { %5046 = vpow2.f32 %v3632_v43 }
0x2d28   :  { %v5043_v26 = vpop.eup %5042 }
0x2d29   :  { %3355 = vrot.lane.b32.xlu1 %v5043_v26, %s5098_s28  ;;  %v5045_v2 = vpop.eup %5044 }
0x2d2a   :  { %v3049_v29 = vpop.permute.xlu0 %3048  ;;  %v5047_v33 = vpop.eup %5046  ;;  %v3046_v51 = vmul.f32 %v5045_v2, %v5897_v57 }
0x2d2b   :  { %v3051_v31 = vmul.f32 %v5045_v2, %v3049_v29  ;;  %v3349_v35 = vadd.f32 1.0, %v5047_v33 }
0x2d2d   :  { %3053 = vrot.lane.b32.xlu0 %v3051_v31, %s5099_s29  ;;  %5048 = vrcp.f32 %v3349_v35 }
0x2d37   :  { %v5049_v47 = vpop.eup %5048 }
0x2d38   :  { %v3353_v52 = vmul.f32 %v5049_v47, %v5905_v4 }
0x2d9b   :  { %v3356_v38 = vpop.permute.xlu1 %3355 }
0x2d9c   :  { %v3358_v50 = vmul.f32 %v5049_v47, %v3356_v38 }
0x2d9e   :  { %3360 = vrot.lane.b32.xlu1 %v3358_v50, %s5099_s29 }
0x2d9f   :  { %v3054_v49 = vpop.permute.xlu0 %3053 }
0x2da0   :  { %v3056_v15 = vadd.f32 %v3054_v49, %v3046_v51 }
0x2da2   :  { %5050 = vtanh.f32 %v3056_v15 }
0x2dac   :  { %v5051_v48 = vpop.eup %5050 }
0x2dad   :  { %3059 = vrot.lane.b32.xlu0 %v5051_v48, %s5098_s28 }
0x2e10   :  { %v3361_v56 = vpop.permute.xlu1 %3360 }
0x2e11   :  { %v3363_v54 = vadd.f32 %v3361_v56, %v3353_v52 }
0x2e13   :  { %5052 = vtanh.f32 %v3363_v54 }
0x2e1d   :  { %v5053_v46 = vpop.eup %5052 }
0x2e1e   :  { %3366 = vrot.lane.b32.xlu1 %v5053_v46, %s5098_s28 }
0x2e1f   :  { %v3060_v53 = vpop.permute.xlu0 %3059 }
0x2e20   :  { %v3062_v55 = vmul.f32 %v5045_v2, %v3060_v53 }
0x2e22   :  { %3375 = vrot.lane.b32.xlu1 %v3062_v55, %s5098_s28 }
0x2e90   :  { %v3367_v17 = vpop.permute.xlu1 %3366 }
0x2e91   :  { %v3369_v57 = vmul.f32 %v5049_v47, %v3367_v17 }
0x2e93   :  { %3371 = vrot.lane.b32.xlu0 %v3369_v57, %s5099_s29 }
0x2e94   :  { %v3376_v20 = vpop.permute.xlu1 %3375 }
0x2f05   :  { %v3372_v24 = vpop.permute.xlu0 %3371 }
0x2f06   :  { %v3378_v58 = vsel %vm161_vm1, %v3372_v24, %v3376_v20 }
0x2f07   :  { %4440 = vmatmul.mubr.msk.f32.vlgmr.msra.gmra.mrb[32].mxu0 %vm271_vm2, %v3378_v58 }
0x2fda   :  { %v3448_v0 = vpop.f32.mrb[32].mxu0 }
0x2fdb   :  { %v3449_v30 = vadd.f32 %v5788_v59, %v3448_v0  ;;  %v4441_v62 = vpop.f32.mrb[33].mxu0  ;;  %v156_v59 = vld [vmem:[%s5972_s5] sm:$0xff] }
0x2fdc   :  { %v4790_v37 = vpack.c.bf16 %v157_v44, %v156_v59 }
0x2fdd   :  { %5054 = vtanh.f32 %v3449_v30  ;;  %v3634_v21 = vmul.f32 -1.442695, %v3449_v30 }
0x2fde   :  { %4791 = vmatpush3.bf16.msra.mxu1 %v4790_v37 }
0x2fdf   :  { %5056 = vpow2.f32 %v3634_v21  ;;  %4792 = vmatprep.subr.bf16.mxu1 %v5094_v1 }
0x2fe2   :  { %4794 = vmatpush3.bf16.msra.mxu1 %v4793_v41 }
0x2fe7   :  { %v5055_v5 = vpop.eup %5054 }
0x2fe8   :  { %3461 = vrot.lane.b32.xlu0 %v5055_v5, %s5098_s28 }
0x2fe9   :  { %v5057_v7 = vpop.eup %5056 }
0x2fea   :  { %v3455_v10 = vadd.f32 1.0, %v5057_v7 }
0x2fec   :  { %5058 = vrcp.f32 %v3455_v10 }
0x2ff6   :  { %v5059_v32 = vpop.eup %5058 }
0x2ff7   :  { %v3459_v14 = vmul.f32 %v5059_v32, %v3056_v15 }
0x305a   :  { %v3462_v60 = vpop.permute.xlu0 %3461 }
0x305b   :  { %v3464_v4 = vmul.f32 %v5059_v32, %v3462_v60 }
0x305d   :  { %3466 = vrot.lane.b32.xlu1 %v3464_v4, %s5099_s29 }
0x30cf   :  { %v3467_v42 = vpop.permute.xlu1 %3466 }
0x30d0   :  { %v3469_v34 = vadd.f32 %v3467_v42, %v3459_v14 }
0x30d2   :  { %5060 = vtanh.f32 %v3469_v34 }
0x30dc   :  { %v5061_v39 = vpop.eup %5060 }
0x30dd   :  { %3472 = vrot.lane.b32.xlu0 %v5061_v39, %s5098_s28 }
0x314f   :  { %v3473_v9 = vpop.permute.xlu0 %3472 }
0x3150   :  { %v3475_v18 = vmul.f32 %v5059_v32, %v3473_v9 }
0x3152   :  { %3483 = vrot.lane.b32.xlu1 %v3475_v18, %s5099_s29 }
0x31c4   :  { %v3484_v28 = vpop.permute.xlu1 %3483 }
0x31c5   :  { %4451 = vmatmul.mubr.msk.f32.vlgmr.msra.gmra.mrb[30].mxu1 %vm161_vm1, %v3484_v28 }
0x3298   :  { %v3553_v25 = vpop.f32.mrb[30].mxu1 }
0x3299   :  { %v3554_v36 = vadd.f32 %v3635_v16, %v3553_v25  ;;  %v4452_v40 = vpop.f32.mrb[31].mxu1 }
0x329b   :  { %3558 = vst.msk [vmem:[%s5974_s7] sm:$0xff] %vm3557_vm3, %v3554_v36 }
0x329c   :  { %3563 = vsyncpa [#allocation4], 1 }

</bundles_post_ra>
